<compile_context>
chip_gen: v7x
topology: tpu7x:2x2x1
jax: 0.10.0
libtpu: 0.0.40
codegen_flags: <defaults>
</compile_context>

<pallas_src>
import functools

import jax
import jax.numpy as jnp
from jax.experimental import pallas as pl
from jax.experimental.pallas import tpu as pltpu


# ----------------------------------------------------------------------------
# Fused kernel: one batch element per grid step.
# ----------------------------------------------------------------------------
def _se_res_block_kernel(xp_ref, w1_ref, b1_ref, w2_ref, b2_ref,
                         sw1_ref, sb1_ref, sw2_ref, sb2_ref,
                         o_ref, patch_ref, hpad_ref, *, H, W, K, C):
    p = K // 2
    HW = H * W

    def im2col(src_f32):
        """Pack K*K shifted windows of src_f32 (Hp,Wp,C) into patch_ref (HW, K*K*C)."""
        t = 0
        for dy in range(K):
            for dx in range(K):
                blk = src_f32[dy:dy + H, dx:dx + W, :].reshape(HW, C)
                patch_ref[:, t * C:(t + 1) * C] = blk.astype(patch_ref.dtype)
                t += 1
        return patch_ref[...]                                   # (HW, K*K*C)

    xp = xp_ref[0]                                              # (Hp, Wp, C) f32

    # ---- conv1 + bias + ReLU: single MXU matmul with K*K*C contraction ----
    pat1 = im2col(xp)
    h = jnp.dot(pat1, w1_ref[...], preferred_element_type=jnp.float32)
    h = jnp.maximum(h + b1_ref[...], 0.0)                       # (HW, C) f32

    # ---- zero-pad h in VMEM for the second conv's halo (no HBM round-trip) ----
    hpad_ref[...] = jnp.zeros((H + 2 * p, W + 2 * p, C), jnp.float32)
    hpad_ref[p:p + H, p:p + W, :] = h.reshape(H, W, C)

    # ---- conv2 + bias ----
    pat2 = im2col(hpad_ref[...])
    res = jnp.dot(pat2, w2_ref[...], preferred_element_type=jnp.float32)
    res = res + b2_ref[...]                                     # (HW, C) f32

    # ---- SELayer: GAP -> 1x1 conv -> ReLU -> 1x1 conv -> sigmoid (all f32) ----
    pooled = jnp.mean(res, axis=0, keepdims=True)               # (1, C)
    a = jnp.dot(pooled, sw1_ref[...], preferred_element_type=jnp.float32)
    a = jnp.maximum(a + sb1_ref[...], 0.0)                      # (1, C//r)
    g = jnp.dot(a, sw2_ref[...], preferred_element_type=jnp.float32)
    gate = jax.nn.sigmoid(g + sb2_ref[...])                     # (1, C)

    # ---- channel scale + residual add with the (unpadded) input ----
    x_in = xp[p:p + H, p:p + W, :].reshape(HW, C)
    o_ref[...] = (res * gate + x_in).reshape(1, HW, C).astype(o_ref.dtype)


# ----------------------------------------------------------------------------
# SEResBlock forward (wrapper). Input follows PyTorch NCHW convention.
# ----------------------------------------------------------------------------
def se_res_block(x_nchw, params, *, matmul_dtype=jnp.float32):
    N, C, H, W = x_nchw.shape
    K = params["w1"].shape[0]
    Cr = params["se_w1"].shape[-1]
    p = K // 2
    Hp, Wp = H + 2 * p, W + 2 * p

    # NCHW -> NHWC + single halo pad (one tiny fused XLA pass under jit).
    # TODO(synk): consume NCHW directly with an in-kernel relayout to drop this pass.
    xp = jnp.pad(jnp.transpose(x_nchw, (0, 2, 3, 1)),
                 ((0, 0), (p, p), (p, p), (0, 0)))

    # HWIO -> (K*K*Cin, Cout); cast MXU operands (bf16 on v6e/v7x halves weight DMA).
    w1 = params["w1"].reshape(K * K * C, C).astype(matmul_dtype)
    w2 = params["w2"].reshape(K * K * C, C).astype(matmul_dtype)

    kernel = functools.partial(_se_res_block_kernel, H=H, W=W, K=K, C=C)
    out = pl.pallas_call(
        kernel,
        out_shape=jax.ShapeDtypeStruct((N, H * W, C), x_nchw.dtype),
        grid=(N,),
        in_specs=[
            pl.BlockSpec((1, Hp, Wp, C), lambda n: (n, 0, 0, 0)),   # padded input
            pl.BlockSpec((K * K * C, C), lambda n: (0, 0)),         # conv1 weight
            pl.BlockSpec((1, C), lambda n: (0, 0)),                 # conv1 bias
            pl.BlockSpec((K * K * C, C), lambda n: (0, 0)),         # conv2 weight
            pl.BlockSpec((1, C), lambda n: (0, 0)),                 # conv2 bias
            pl.BlockSpec((C, Cr), lambda n: (0, 0)),                # SE fc1 weight
            pl.BlockSpec((1, Cr), lambda n: (0, 0)),                # SE fc1 bias
            pl.BlockSpec((Cr, C), lambda n: (0, 0)),                # SE fc2 weight
            pl.BlockSpec((1, C), lambda n: (0, 0)),                 # SE fc2 bias
        ],
        out_specs=pl.BlockSpec((1, H * W, C), lambda n: (n, 0, 0)),
        scratch_shapes=[
            pltpu.VMEM((H * W, K * K * C), matmul_dtype),   # im2col patch matrix
            pltpu.VMEM((Hp, Wp, C), jnp.float32),           # zero-padded intermediate h
        ],
        compiler_params=pltpu.CompilerParams(
            dimension_semantics=("parallel",)),              # v7x: 1 image per TC
    )(xp, w1, params["b1"], w2, params["b2"],
      params["se_w1"], params["se_b1"], params["se_w2"], params["se_b2"])

    # (N, H*W, C) -> NCHW (reshape is free; transpose is one tiny pass).
    return jnp.transpose(out.reshape(N, H, W, C), (0, 3, 1, 2))


# ----------------------------------------------------------------------------
# Pure-JAX reference for verification.
# ----------------------------------------------------------------------------
def ref_forward(x_nchw, params):
    x = jnp.transpose(x_nchw, (0, 2, 3, 1))
    dn = jax.lax.conv_dimension_numbers(x.shape, params["w1"].shape,
                                        ("NHWC", "HWIO", "NHWC"))
    h = jax.lax.conv_general_dilated(x, params["w1"], (1, 1), "SAME",
                                     dimension_numbers=dn) + params["b1"].reshape(1, 1, 1, -1)
    h = jnp.maximum(h, 0.0)
    h = jax.lax.conv_general_dilated(h, params["w2"], (1, 1), "SAME",
                                     dimension_numbers=dn) + params["b2"].reshape(1, 1, 1, -1)
    pooled = jnp.mean(h, axis=(1, 2))                                  # (N, C)
    a = jnp.maximum(pooled @ params["se_w1"] + params["se_b1"], 0.0)
    s = jax.nn.sigmoid(a @ params["se_w2"] + params["se_b2"])
    out = h * s[:, None, None, :] + x
    return jnp.transpose(out, (0, 3, 1, 2))


def init_params(key, n_feat, kernel_size, reduction):
    ks = jax.random.split(key, 8)
    c_r = n_feat // reduction
    scale_conv = 1.0 / (n_feat * kernel_size * kernel_size) ** 0.5
    return {
        "w1": jax.random.normal(ks[0], (kernel_size, kernel_size, n_feat, n_feat),
                                jnp.float32) * scale_conv,
        "b1": (jax.random.normal(ks[1], (1, n_feat), jnp.float32) * 0.01),
        "w2": jax.random.normal(ks[2], (kernel_size, kernel_size, n_feat, n_feat),
                                jnp.float32) * scale_conv,
        "b2": (jax.random.normal(ks[3], (1, n_feat), jnp.float32) * 0.01),
        "se_w1": jax.random.normal(ks[4], (n_feat, c_r), jnp.float32) / n_feat ** 0.5,
        "se_b1": (jax.random.normal(ks[5], (1, c_r), jnp.float32) * 0.01),
        "se_w2": jax.random.normal(ks[6], (c_r, n_feat), jnp.float32) / c_r ** 0.5,
        "se_b2": (jax.random.normal(ks[7], (1, n_feat), jnp.float32) * 0.01),
    }


if __name__ == "__main__":
    N, n_feat, H, W = 2, 32, 16, 16
    kernel_size, reduction = 3, 4

    key = jax.random.PRNGKey(0)
    k_x, k_p = jax.random.split(key)
    x = jax.random.normal(k_x, (N, n_feat, H, W), jnp.float32)   # NCHW like PyTorch
    params = init_params(k_p, n_feat, kernel_size, reduction)

    fwd_f32 = jax.jit(lambda xx: se_res_block(xx, params))
    fwd_bf16 = jax.jit(lambda xx: se_res_block(xx, params, matmul_dtype=jnp.bfloat16))

    out = jax.block_until_ready(fwd_f32(x))
    ref = jax.block_until_ready(ref_forward(x, params))

    assert out.shape == x.shape and out.dtype == x.dtype
    assert jnp.allclose(out, ref, rtol=1e-3, atol=2e-3), "f32 kernel mismatch vs reference"

    # bf16 MXU-operand fast path (v6e/v7x); elementwise/SE math stays f32.
    out_bf16 = jax.block_until_ready(fwd_bf16(x))
    assert out_bf16.shape == x.shape
    assert float(jnp.max(jnp.abs(out_bf16 - ref))) < 0.2, "bf16 kernel sanity check failed"

    print("KERNEL_OK")
</pallas_src>

<mosaic_0001>
module attributes {stable_mosaic.version = 11 : i64} {
  func.func @_se_res_block_kernel(%arg0: i32, %arg1: memref<1x18x18x32xf32, #tpu.memory_space<vmem>>, %arg2: memref<288x32xf32, #tpu.memory_space<vmem>>, %arg3: memref<1x32xf32, #tpu.memory_space<vmem>>, %arg4: memref<288x32xf32, #tpu.memory_space<vmem>>, %arg5: memref<1x32xf32, #tpu.memory_space<vmem>>, %arg6: memref<32x8xf32, #tpu.memory_space<vmem>>, %arg7: memref<1x8xf32, #tpu.memory_space<vmem>>, %arg8: memref<8x32xf32, #tpu.memory_space<vmem>>, %arg9: memref<1x32xf32, #tpu.memory_space<vmem>>, %arg10: memref<1x256x32xf32, #tpu.memory_space<vmem>>, %arg11: memref<256x288xf32, #tpu.memory_space<vmem>>, %arg12: memref<18x18x32xf32, #tpu.memory_space<vmem>>) attributes {dimension_semantics = [#tpu.dimension_semantics<parallel>], iteration_bounds = array<i64: 2>, scalar_prefetch = 0 : i64, scratch_operands = 2 : i64, tpu.core_type = #tpu.core_type<tc>, window_params = [{transform_indices = @transform_0, window_bounds = array<i64: 1, 18, 18, 32>}, {pipeline_mode = #tpu.pipeline_mode<synchronous>, transform_indices = @transform_1, window_bounds = array<i64: 288, 32>}, {pipeline_mode = #tpu.pipeline_mode<synchronous>, transform_indices = @transform_2, window_bounds = array<i64: 1, 32>}, {pipeline_mode = #tpu.pipeline_mode<synchronous>, transform_indices = @transform_3, window_bounds = array<i64: 288, 32>}, {pipeline_mode = #tpu.pipeline_mode<synchronous>, transform_indices = @transform_4, window_bounds = array<i64: 1, 32>}, {pipeline_mode = #tpu.pipeline_mode<synchronous>, transform_indices = @transform_5, window_bounds = array<i64: 32, 8>}, {pipeline_mode = #tpu.pipeline_mode<synchronous>, transform_indices = @transform_6, window_bounds = array<i64: 1, 8>}, {pipeline_mode = #tpu.pipeline_mode<synchronous>, transform_indices = @transform_7, window_bounds = array<i64: 8, 32>}, {pipeline_mode = #tpu.pipeline_mode<synchronous>, transform_indices = @transform_8, window_bounds = array<i64: 1, 32>}, {transform_indices = @transform_9, window_bounds = array<i64: 1, 256, 32>}]} {
    %c0 = arith.constant 0 : index
    %c0_0 = arith.constant 0 : index
    %c0_1 = arith.constant 0 : index
    %c0_2 = arith.constant 0 : index
    %0 = vector.load %arg1[%c0, %c0_0, %c0_1, %c0_2] : memref<1x18x18x32xf32, #tpu.memory_space<vmem>>, vector<1x18x18x32xf32>
    %1 = vector.shape_cast %0 : vector<1x18x18x32xf32> to vector<18x18x32xf32>
    %2 = vector.extract_strided_slice %1 {offsets = [0, 0, 0], sizes = [16, 16, 32], strides = [1, 1, 1]} : vector<18x18x32xf32> to vector<16x16x32xf32>
    %3 = vector.shape_cast %2 : vector<16x16x32xf32> to vector<256x32xf32>
    %c0_3 = arith.constant 0 : index
    %c0_4 = arith.constant 0 : index
    %4 = vector.load %arg11[%c0_3, %c0_4] : memref<256x288xf32, #tpu.memory_space<vmem>>, vector<256x32xf32>
    tpu.vector_store %arg11[%c0_3, %c0_4], %3 {strides = array<i32>} : memref<256x288xf32, #tpu.memory_space<vmem>>, vector<256x32xf32>,
    %5 = vector.extract_strided_slice %1 {offsets = [0, 1, 0], sizes = [16, 16, 32], strides = [1, 1, 1]} : vector<18x18x32xf32> to vector<16x16x32xf32>
    %6 = vector.shape_cast %5 : vector<16x16x32xf32> to vector<256x32xf32>
    %c0_5 = arith.constant 0 : index
    %c32 = arith.constant 32 : index
    %7 = vector.load %arg11[%c0_5, %c32] : memref<256x288xf32, #tpu.memory_space<vmem>>, vector<256x32xf32>
    tpu.vector_store %arg11[%c0_5, %c32], %6 {strides = array<i32>} : memref<256x288xf32, #tpu.memory_space<vmem>>, vector<256x32xf32>,
    %8 = vector.extract_strided_slice %1 {offsets = [0, 2, 0], sizes = [16, 16, 32], strides = [1, 1, 1]} : vector<18x18x32xf32> to vector<16x16x32xf32>
    %9 = vector.shape_cast %8 : vector<16x16x32xf32> to vector<256x32xf32>
    %c0_6 = arith.constant 0 : index
    %c64 = arith.constant 64 : index
    %10 = vector.load %arg11[%c0_6, %c64] : memref<256x288xf32, #tpu.memory_space<vmem>>, vector<256x32xf32>
    tpu.vector_store %arg11[%c0_6, %c64], %9 {strides = array<i32>} : memref<256x288xf32, #tpu.memory_space<vmem>>, vector<256x32xf32>,
    %11 = vector.extract_strided_slice %1 {offsets = [1, 0, 0], sizes = [16, 16, 32], strides = [1, 1, 1]} : vector<18x18x32xf32> to vector<16x16x32xf32>
    %12 = vector.shape_cast %11 : vector<16x16x32xf32> to vector<256x32xf32>
    %c0_7 = arith.constant 0 : index
    %c96 = arith.constant 96 : index
    %13 = vector.load %arg11[%c0_7, %c96] : memref<256x288xf32, #tpu.memory_space<vmem>>, vector<256x32xf32>
    tpu.vector_store %arg11[%c0_7, %c96], %12 {strides = array<i32>} : memref<256x288xf32, #tpu.memory_space<vmem>>, vector<256x32xf32>,
    %14 = vector.extract_strided_slice %1 {offsets = [1, 1, 0], sizes = [16, 16, 32], strides = [1, 1, 1]} : vector<18x18x32xf32> to vector<16x16x32xf32>
    %15 = vector.shape_cast %14 : vector<16x16x32xf32> to vector<256x32xf32>
    %c0_8 = arith.constant 0 : index
    %c128 = arith.constant 128 : index
    %16 = vector.load %arg11[%c0_8, %c128] : memref<256x288xf32, #tpu.memory_space<vmem>>, vector<256x32xf32>
    tpu.vector_store %arg11[%c0_8, %c128], %15 {strides = array<i32>} : memref<256x288xf32, #tpu.memory_space<vmem>>, vector<256x32xf32>,
    %17 = vector.extract_strided_slice %1 {offsets = [1, 2, 0], sizes = [16, 16, 32], strides = [1, 1, 1]} : vector<18x18x32xf32> to vector<16x16x32xf32>
    %18 = vector.shape_cast %17 : vector<16x16x32xf32> to vector<256x32xf32>
    %c0_9 = arith.constant 0 : index
    %c160 = arith.constant 160 : index
    %19 = vector.load %arg11[%c0_9, %c160] : memref<256x288xf32, #tpu.memory_space<vmem>>, vector<256x32xf32>
    tpu.vector_store %arg11[%c0_9, %c160], %18 {strides = array<i32>} : memref<256x288xf32, #tpu.memory_space<vmem>>, vector<256x32xf32>,
    %20 = vector.extract_strided_slice %1 {offsets = [2, 0, 0], sizes = [16, 16, 32], strides = [1, 1, 1]} : vector<18x18x32xf32> to vector<16x16x32xf32>
    %21 = vector.shape_cast %20 : vector<16x16x32xf32> to vector<256x32xf32>
    %c0_10 = arith.constant 0 : index
    %c192 = arith.constant 192 : index
    %22 = vector.load %arg11[%c0_10, %c192] : memref<256x288xf32, #tpu.memory_space<vmem>>, vector<256x32xf32>
    tpu.vector_store %arg11[%c0_10, %c192], %21 {strides = array<i32>} : memref<256x288xf32, #tpu.memory_space<vmem>>, vector<256x32xf32>,
    %23 = vector.extract_strided_slice %1 {offsets = [2, 1, 0], sizes = [16, 16, 32], strides = [1, 1, 1]} : vector<18x18x32xf32> to vector<16x16x32xf32>
    %24 = vector.shape_cast %23 : vector<16x16x32xf32> to vector<256x32xf32>
    %c0_11 = arith.constant 0 : index
    %c224 = arith.constant 224 : index
    %25 = vector.load %arg11[%c0_11, %c224] : memref<256x288xf32, #tpu.memory_space<vmem>>, vector<256x32xf32>
    tpu.vector_store %arg11[%c0_11, %c224], %24 {strides = array<i32>} : memref<256x288xf32, #tpu.memory_space<vmem>>, vector<256x32xf32>,
    %26 = vector.extract_strided_slice %1 {offsets = [2, 2, 0], sizes = [16, 16, 32], strides = [1, 1, 1]} : vector<18x18x32xf32> to vector<16x16x32xf32>
    %27 = vector.shape_cast %26 : vector<16x16x32xf32> to vector<256x32xf32>
    %c0_12 = arith.constant 0 : index
    %c256 = arith.constant 256 : index
    %28 = vector.load %arg11[%c0_12, %c256] : memref<256x288xf32, #tpu.memory_space<vmem>>, vector<256x32xf32>
    tpu.vector_store %arg11[%c0_12, %c256], %27 {strides = array<i32>} : memref<256x288xf32, #tpu.memory_space<vmem>>, vector<256x32xf32>,
    %c0_13 = arith.constant 0 : index
    %c0_14 = arith.constant 0 : index
    %29 = vector.load %arg11[%c0_13, %c0_14] : memref<256x288xf32, #tpu.memory_space<vmem>>, vector<256x288xf32>
    %c0_15 = arith.constant 0 : index
    %c0_16 = arith.constant 0 : index
    %30 = vector.load %arg2[%c0_15, %c0_16] : memref<288x32xf32, #tpu.memory_space<vmem>>, vector<288x32xf32>
    %cst = arith.constant dense<0.000000e+00> : vector<256x32xf32>
    %31 = tpu.matmul %29, %30, %cst {dimension_numbers = #tpu.dot_dimension_numbers<[1], [0], [0], [1], [0, 0, 1, 1], [], []>} : vector<256x288xf32>, vector<288x32xf32>, vector<256x32xf32> -> vector<256x32xf32>
    %c0_17 = arith.constant 0 : index
    %c0_18 = arith.constant 0 : index
    %32 = vector.load %arg3[%c0_17, %c0_18] : memref<1x32xf32, #tpu.memory_space<vmem>>, vector<1x32xf32>
    %33 = vector.broadcast %32 : vector<1x32xf32> to vector<256x32xf32>
    %34 = arith.addf %31, %33 : vector<256x32xf32>
    %cst_19 = arith.constant 0.000000e+00 : f32
    %35 = vector.broadcast %cst_19 : f32 to vector<256x32xf32>
    %36 = arith.maximumf %34, %35 : vector<256x32xf32>
    %cst_20 = arith.constant 0.000000e+00 : f32
    %37 = vector.broadcast %cst_20 : f32 to vector<18x18x32xf32>
    %c0_21 = arith.constant 0 : index
    %c0_22 = arith.constant 0 : index
    %c0_23 = arith.constant 0 : index
    %38 = vector.load %arg12[%c0_21, %c0_22, %c0_23] : memref<18x18x32xf32, #tpu.memory_space<vmem>>, vector<18x18x32xf32>
    tpu.vector_store %arg12[%c0_21, %c0_22, %c0_23], %37 {strides = array<i32>} : memref<18x18x32xf32, #tpu.memory_space<vmem>>, vector<18x18x32xf32>,
    %39 = vector.shape_cast %36 : vector<256x32xf32> to vector<16x16x32xf32>
    %c1 = arith.constant 1 : index
    %c1_24 = arith.constant 1 : index
    %c0_25 = arith.constant 0 : index
    %40 = vector.load %arg12[%c1, %c1_24, %c0_25] : memref<18x18x32xf32, #tpu.memory_space<vmem>>, vector<16x16x32xf32>
    tpu.vector_store %arg12[%c1, %c1_24, %c0_25], %39 {strides = array<i32>} : memref<18x18x32xf32, #tpu.memory_space<vmem>>, vector<16x16x32xf32>,
    %c0_26 = arith.constant 0 : index
    %c0_27 = arith.constant 0 : index
    %c0_28 = arith.constant 0 : index
    %41 = vector.load %arg12[%c0_26, %c0_27, %c0_28] : memref<18x18x32xf32, #tpu.memory_space<vmem>>, vector<18x18x32xf32>
    %42 = vector.extract_strided_slice %41 {offsets = [0, 0, 0], sizes = [16, 16, 32], strides = [1, 1, 1]} : vector<18x18x32xf32> to vector<16x16x32xf32>
    %43 = vector.shape_cast %42 : vector<16x16x32xf32> to vector<256x32xf32>
    %c0_29 = arith.constant 0 : index
    %c0_30 = arith.constant 0 : index
    %44 = vector.load %arg11[%c0_29, %c0_30] : memref<256x288xf32, #tpu.memory_space<vmem>>, vector<256x32xf32>
    tpu.vector_store %arg11[%c0_29, %c0_30], %43 {strides = array<i32>} : memref<256x288xf32, #tpu.memory_space<vmem>>, vector<256x32xf32>,
    %45 = vector.extract_strided_slice %41 {offsets = [0, 1, 0], sizes = [16, 16, 32], strides = [1, 1, 1]} : vector<18x18x32xf32> to vector<16x16x32xf32>
    %46 = vector.shape_cast %45 : vector<16x16x32xf32> to vector<256x32xf32>
    %c0_31 = arith.constant 0 : index
    %c32_32 = arith.constant 32 : index
    %47 = vector.load %arg11[%c0_31, %c32_32] : memref<256x288xf32, #tpu.memory_space<vmem>>, vector<256x32xf32>
    tpu.vector_store %arg11[%c0_31, %c32_32], %46 {strides = array<i32>} : memref<256x288xf32, #tpu.memory_space<vmem>>, vector<256x32xf32>,
    %48 = vector.extract_strided_slice %41 {offsets = [0, 2, 0], sizes = [16, 16, 32], strides = [1, 1, 1]} : vector<18x18x32xf32> to vector<16x16x32xf32>
    %49 = vector.shape_cast %48 : vector<16x16x32xf32> to vector<256x32xf32>
    %c0_33 = arith.constant 0 : index
    %c64_34 = arith.constant 64 : index
    %50 = vector.load %arg11[%c0_33, %c64_34] : memref<256x288xf32, #tpu.memory_space<vmem>>, vector<256x32xf32>
    tpu.vector_store %arg11[%c0_33, %c64_34], %49 {strides = array<i32>} : memref<256x288xf32, #tpu.memory_space<vmem>>, vector<256x32xf32>,
    %51 = vector.extract_strided_slice %41 {offsets = [1, 0, 0], sizes = [16, 16, 32], strides = [1, 1, 1]} : vector<18x18x32xf32> to vector<16x16x32xf32>
    %52 = vector.shape_cast %51 : vector<16x16x32xf32> to vector<256x32xf32>
    %c0_35 = arith.constant 0 : index
    %c96_36 = arith.constant 96 : index
    %53 = vector.load %arg11[%c0_35, %c96_36] : memref<256x288xf32, #tpu.memory_space<vmem>>, vector<256x32xf32>
    tpu.vector_store %arg11[%c0_35, %c96_36], %52 {strides = array<i32>} : memref<256x288xf32, #tpu.memory_space<vmem>>, vector<256x32xf32>,
    %54 = vector.extract_strided_slice %41 {offsets = [1, 1, 0], sizes = [16, 16, 32], strides = [1, 1, 1]} : vector<18x18x32xf32> to vector<16x16x32xf32>
    %55 = vector.shape_cast %54 : vector<16x16x32xf32> to vector<256x32xf32>
    %c0_37 = arith.constant 0 : index
    %c128_38 = arith.constant 128 : index
    %56 = vector.load %arg11[%c0_37, %c128_38] : memref<256x288xf32, #tpu.memory_space<vmem>>, vector<256x32xf32>
    tpu.vector_store %arg11[%c0_37, %c128_38], %55 {strides = array<i32>} : memref<256x288xf32, #tpu.memory_space<vmem>>, vector<256x32xf32>,
    %57 = vector.extract_strided_slice %41 {offsets = [1, 2, 0], sizes = [16, 16, 32], strides = [1, 1, 1]} : vector<18x18x32xf32> to vector<16x16x32xf32>
    %58 = vector.shape_cast %57 : vector<16x16x32xf32> to vector<256x32xf32>
    %c0_39 = arith.constant 0 : index
    %c160_40 = arith.constant 160 : index
    %59 = vector.load %arg11[%c0_39, %c160_40] : memref<256x288xf32, #tpu.memory_space<vmem>>, vector<256x32xf32>
    tpu.vector_store %arg11[%c0_39, %c160_40], %58 {strides = array<i32>} : memref<256x288xf32, #tpu.memory_space<vmem>>, vector<256x32xf32>,
    %60 = vector.extract_strided_slice %41 {offsets = [2, 0, 0], sizes = [16, 16, 32], strides = [1, 1, 1]} : vector<18x18x32xf32> to vector<16x16x32xf32>
    %61 = vector.shape_cast %60 : vector<16x16x32xf32> to vector<256x32xf32>
    %c0_41 = arith.constant 0 : index
    %c192_42 = arith.constant 192 : index
    %62 = vector.load %arg11[%c0_41, %c192_42] : memref<256x288xf32, #tpu.memory_space<vmem>>, vector<256x32xf32>
    tpu.vector_store %arg11[%c0_41, %c192_42], %61 {strides = array<i32>} : memref<256x288xf32, #tpu.memory_space<vmem>>, vector<256x32xf32>,
    %63 = vector.extract_strided_slice %41 {offsets = [2, 1, 0], sizes = [16, 16, 32], strides = [1, 1, 1]} : vector<18x18x32xf32> to vector<16x16x32xf32>
    %64 = vector.shape_cast %63 : vector<16x16x32xf32> to vector<256x32xf32>
    %c0_43 = arith.constant 0 : index
    %c224_44 = arith.constant 224 : index
    %65 = vector.load %arg11[%c0_43, %c224_44] : memref<256x288xf32, #tpu.memory_space<vmem>>, vector<256x32xf32>
    tpu.vector_store %arg11[%c0_43, %c224_44], %64 {strides = array<i32>} : memref<256x288xf32, #tpu.memory_space<vmem>>, vector<256x32xf32>,
    %66 = vector.extract_strided_slice %41 {offsets = [2, 2, 0], sizes = [16, 16, 32], strides = [1, 1, 1]} : vector<18x18x32xf32> to vector<16x16x32xf32>
    %67 = vector.shape_cast %66 : vector<16x16x32xf32> to vector<256x32xf32>
    %c0_45 = arith.constant 0 : index
    %c256_46 = arith.constant 256 : index
    %68 = vector.load %arg11[%c0_45, %c256_46] : memref<256x288xf32, #tpu.memory_space<vmem>>, vector<256x32xf32>
    tpu.vector_store %arg11[%c0_45, %c256_46], %67 {strides = array<i32>} : memref<256x288xf32, #tpu.memory_space<vmem>>, vector<256x32xf32>,
    %c0_47 = arith.constant 0 : index
    %c0_48 = arith.constant 0 : index
    %69 = vector.load %arg11[%c0_47, %c0_48] : memref<256x288xf32, #tpu.memory_space<vmem>>, vector<256x288xf32>
    %c0_49 = arith.constant 0 : index
    %c0_50 = arith.constant 0 : index
    %70 = vector.load %arg4[%c0_49, %c0_50] : memref<288x32xf32, #tpu.memory_space<vmem>>, vector<288x32xf32>
    %cst_51 = arith.constant dense<0.000000e+00> : vector<256x32xf32>
    %71 = tpu.matmul %69, %70, %cst_51 {dimension_numbers = #tpu.dot_dimension_numbers<[1], [0], [0], [1], [0, 0, 1, 1], [], []>} : vector<256x288xf32>, vector<288x32xf32>, vector<256x32xf32> -> vector<256x32xf32>
    %c0_52 = arith.constant 0 : index
    %c0_53 = arith.constant 0 : index
    %72 = vector.load %arg5[%c0_52, %c0_53] : memref<1x32xf32, #tpu.memory_space<vmem>>, vector<1x32xf32>
    %73 = vector.broadcast %72 : vector<1x32xf32> to vector<256x32xf32>
    %74 = arith.addf %71, %73 : vector<256x32xf32>
    %cst_54 = arith.constant dense<0.000000e+00> : vector<32xf32>
    %75 = vector.multi_reduction <add>, %74, %cst_54 [0] : vector<256x32xf32> to vector<32xf32>
    %76 = vector.shape_cast %75 : vector<32xf32> to vector<1x32xf32>
    %cst_55 = arith.constant 2.560000e+02 : f32
    %77 = vector.broadcast %cst_55 : f32 to vector<1x32xf32>
    %78 = arith.divf %76, %77 : vector<1x32xf32>
    %c0_56 = arith.constant 0 : index
    %c0_57 = arith.constant 0 : index
    %79 = vector.load %arg6[%c0_56, %c0_57] : memref<32x8xf32, #tpu.memory_space<vmem>>, vector<32x8xf32>
    %cst_58 = arith.constant dense<0.000000e+00> : vector<1x8xf32>
    %80 = tpu.matmul %78, %79, %cst_58 {dimension_numbers = #tpu.dot_dimension_numbers<[1], [0], [0], [1], [0, 0, 1, 1], [], []>} : vector<1x32xf32>, vector<32x8xf32>, vector<1x8xf32> -> vector<1x8xf32>
    %c0_59 = arith.constant 0 : index
    %c0_60 = arith.constant 0 : index
    %81 = vector.load %arg7[%c0_59, %c0_60] : memref<1x8xf32, #tpu.memory_space<vmem>>, vector<1x8xf32>
    %82 = arith.addf %80, %81 : vector<1x8xf32>
    %cst_61 = arith.constant 0.000000e+00 : f32
    %83 = vector.broadcast %cst_61 : f32 to vector<1x8xf32>
    %84 = arith.maximumf %82, %83 : vector<1x8xf32>
    %c0_62 = arith.constant 0 : index
    %c0_63 = arith.constant 0 : index
    %85 = vector.load %arg8[%c0_62, %c0_63] : memref<8x32xf32, #tpu.memory_space<vmem>>, vector<8x32xf32>
    %cst_64 = arith.constant dense<0.000000e+00> : vector<1x32xf32>
    %86 = tpu.matmul %84, %85, %cst_64 {dimension_numbers = #tpu.dot_dimension_numbers<[1], [0], [0], [1], [0, 0, 1, 1], [], []>} : vector<1x8xf32>, vector<8x32xf32>, vector<1x32xf32> -> vector<1x32xf32>
    %c0_65 = arith.constant 0 : index
    %c0_66 = arith.constant 0 : index
    %87 = vector.load %arg9[%c0_65, %c0_66] : memref<1x32xf32, #tpu.memory_space<vmem>>, vector<1x32xf32>
    %88 = arith.addf %86, %87 : vector<1x32xf32>
    %89 = arith.negf %88 : vector<1x32xf32>
    %90 = math.exp %89 : vector<1x32xf32>
    %cst_67 = arith.constant 1.000000e+00 : f32
    %91 = vector.broadcast %cst_67 : f32 to vector<1x32xf32>
    %92 = arith.addf %91, %90 : vector<1x32xf32>
    %93 = arith.divf %91, %92 : vector<1x32xf32>
    %94 = vector.extract_strided_slice %1 {offsets = [1, 1, 0], sizes = [16, 16, 32], strides = [1, 1, 1]} : vector<18x18x32xf32> to vector<16x16x32xf32>
    %95 = vector.shape_cast %94 : vector<16x16x32xf32> to vector<256x32xf32>
    %96 = vector.broadcast %93 : vector<1x32xf32> to vector<256x32xf32>
    %97 = arith.mulf %74, %96 : vector<256x32xf32>
    %98 = arith.addf %97, %95 : vector<256x32xf32>
    %99 = vector.shape_cast %98 : vector<256x32xf32> to vector<1x256x32xf32>
    %c0_68 = arith.constant 0 : index
    %c0_69 = arith.constant 0 : index
    %c0_70 = arith.constant 0 : index
    %100 = vector.load %arg10[%c0_68, %c0_69, %c0_70] : memref<1x256x32xf32, #tpu.memory_space<vmem>>, vector<1x256x32xf32>
    tpu.vector_store %arg10[%c0_68, %c0_69, %c0_70], %99 {strides = array<i32>} : memref<1x256x32xf32, #tpu.memory_space<vmem>>, vector<1x256x32xf32>,
    return
  }
  func.func @transform_0(%arg0: i32) -> (i32, i32, i32, i32) {
    %c0_i32 = arith.constant 0 : i32
    %c0_i32_0 = arith.constant 0 : i32
    %c0_i32_1 = arith.constant 0 : i32
    %c0_i32_2 = arith.constant 0 : i32
    return %arg0, %c0_i32, %c0_i32_0, %c0_i32_1 : i32, i32, i32, i32
  }
  func.func @transform_1(%arg0: i32) -> (i32, i32) {
    %c0_i32 = arith.constant 0 : i32
    %c0_i32_0 = arith.constant 0 : i32
    %c0_i32_1 = arith.constant 0 : i32
    return %c0_i32, %c0_i32_0 : i32, i32
  }
  func.func @transform_2(%arg0: i32) -> (i32, i32) {
    %c0_i32 = arith.constant 0 : i32
    %c0_i32_0 = arith.constant 0 : i32
    %c0_i32_1 = arith.constant 0 : i32
    return %c0_i32, %c0_i32_0 : i32, i32
  }
  func.func @transform_3(%arg0: i32) -> (i32, i32) {
    %c0_i32 = arith.constant 0 : i32
    %c0_i32_0 = arith.constant 0 : i32
    %c0_i32_1 = arith.constant 0 : i32
    return %c0_i32, %c0_i32_0 : i32, i32
  }
  func.func @transform_4(%arg0: i32) -> (i32, i32) {
    %c0_i32 = arith.constant 0 : i32
    %c0_i32_0 = arith.constant 0 : i32
    %c0_i32_1 = arith.constant 0 : i32
    return %c0_i32, %c0_i32_0 : i32, i32
  }
  func.func @transform_5(%arg0: i32) -> (i32, i32) {
    %c0_i32 = arith.constant 0 : i32
    %c0_i32_0 = arith.constant 0 : i32
    %c0_i32_1 = arith.constant 0 : i32
    return %c0_i32, %c0_i32_0 : i32, i32
  }
  func.func @transform_6(%arg0: i32) -> (i32, i32) {
    %c0_i32 = arith.constant 0 : i32
    %c0_i32_0 = arith.constant 0 : i32
    %c0_i32_1 = arith.constant 0 : i32
    return %c0_i32, %c0_i32_0 : i32, i32
  }
  func.func @transform_7(%arg0: i32) -> (i32, i32) {
    %c0_i32 = arith.constant 0 : i32
    %c0_i32_0 = arith.constant 0 : i32
    %c0_i32_1 = arith.constant 0 : i32
    return %c0_i32, %c0_i32_0 : i32, i32
  }
  func.func @transform_8(%arg0: i32) -> (i32, i32) {
    %c0_i32 = arith.constant 0 : i32
    %c0_i32_0 = arith.constant 0 : i32
    %c0_i32_1 = arith.constant 0 : i32
    return %c0_i32, %c0_i32_0 : i32, i32
  }
  func.func @transform_9(%arg0: i32) -> (i32, i32, i32) {
    %c0_i32 = arith.constant 0 : i32
    %c0_i32_0 = arith.constant 0 : i32
    %c0_i32_1 = arith.constant 0 : i32
    return %arg0, %c0_i32, %c0_i32_0 : i32, i32, i32
  }
}

</mosaic_0001>

<bundles_post_ra>
// kernel: _lambda_.1
= control target key start
LH: loop header
LB: loop body
LE: loop exit
PB: predicated region body
PF: predicated region fallthrough
CT: control target
= control target key end

     0   :  { %14 = vsyncpa [#allocation5], 0  ;;  %s8713_s0 = inlined_call_operand.vmem [shape: f32[2,18,18,32], index: 0, kind: input, shape index: {}]   ;;  %s8714_s1 = inlined_call_operand.vmem [shape: f32[288,32], index: 1, kind: input, shape index: {}]   ;;  %s8715_s2 = inlined_call_operand.vmem [shape: f32[1,32], index: 2, kind: input, shape index: {}]   ;;  %s8716_s3 = inlined_call_operand.vmem [shape: f32[288,32], index: 3, kind: input, shape index: {}]   ;;  %s8717_s4 = inlined_call_operand.vmem [shape: f32[1,32], index: 4, kind: input, shape index: {}]   ;;  %s8718_s5 = inlined_call_operand.vmem [shape: f32[32,8], index: 5, kind: input, shape index: {}]   ;;  %s8719_s6 = inlined_call_operand.vmem [shape: f32[1,8], index: 6, kind: input, shape index: {}]   ;;  %s8720_s7 = inlined_call_operand.vmem [shape: f32[8,32], index: 7, kind: input, shape index: {}]   ;;  %s8721_s8 = inlined_call_operand.vmem [shape: f32[1,32], index: 8, kind: input, shape index: {}]   ;;  %s8722_s9 = inlined_call_operand.hbm [shape: f32[2,256,32], index: 9, kind: output, shape index: {}]  }
   0x1   :  { %16 = vsyncpa [#allocation5 + $0x1], 0  ;;  %s5257_s30 = smov 0   ;;  %s5259_s10 = smov 0  }
   0x2   :  { %s5261_s11 = smov 0   ;;  %s5263_s12 = smov 0  }
   0x3 LB: > { %s5278_s13 = sadd.s32 4294967295, %s5196_s12   ;;  %s4667_s14 = sadd.s32 4294967294, %s5196_s12   ;;  %s5196_s12 = sphi %s5263_s12, %s8793_s12   ;;  %s5192_s11 = sphi %s5261_s11, %s8792_s11   ;;  %s5188_s10 = sphi %s5259_s10, %s8791_s10   ;;  %s5184_s30 = sphi %s5257_s30, %s8790_s30  }
   0x4   : > { %s5282_s15 = sadd.s32 1, %s5196_s12   ;;  %s223_s16 = sadd.s32 1, %s5192_s11 }
   0x5   : > { %s220_s17 = ssub.s32 %s5196_s12, %s5282_s15  ;;  %p233_p0 = scmp.ne.s32.totalorder %s5192_s11, %s5188_s10 }
   0x6   : > { %p221_p1 = scmp.eq.s32.totalorder %s220_s17, 0  ;;  %p234_p2 = scmp.eq.s32.totalorder %s5278_s13, 1 }
   0x7   : > { %p239_p3 = scmp.ne.s32.totalorder %s5188_s10, %s5184_s30  ;;  %p240_p4 = scmp.eq.s32.totalorder %s4667_s14, 1 }
   0x8   : > { %s5293_s18 = scalar_select %p221_p1, %s5192_s11, %s223_s16  }
   0x9   : > { %p5295_p5 = por %p234_p2, %p233_p0  ;;  %p5299_p6 = por %p240_p4, %p239_p3 }
   0xa   : > { %p4670_p7 = scmp.ge.s32.totalorder %s5196_s12, 1  ;;  %p290_p8 = scmp.lt.s32.totalorder %s5196_s12, 3 }
   0xc   : > { %p291_p9 = pnand %p4670_p7, %p290_p8 }
   0xe   : > { %294 = sbr.rel (%p291_p9) target bundleno = 1699 (0x6a3), region = 56 }
  0x15   : > { %p326_p10 = scmp.lt.s32.totalorder %s5278_s13, 1  ;;  %v8723_v0 = vmov 0.0|0.0   ;;  %v1649_v1 = vld [vmem:[%s8714_s1] sm:$0xff]  ;;  %v1650_v2 = vld [vmem:[%s8714_s1 + $0x8] sm:$0xff]  ;;  %v1651_v3 = vld [vmem:[%s8714_s1 + $0x10] sm:$0xff]  ;;  %vm676_vm0 = vcmask 1045504  }
  0x16   : > { %4955 = vmatprep.subr.bf16.mxu0 %v8723_v0  ;;  %v4956_v4 = vpack.c.bf16 %v1650_v2, %v1649_v1  ;;  %v1652_v5 = vld [vmem:[%s8714_s1 + $0x18] sm:$0xff]  ;;  %v5323_v6 = vld [vmem:[%s8714_s1 + $0x20] sm:$0xff]  ;;  %v5328_v7 = vld [vmem:[%s8714_s1 + $0x28] sm:$0xff]  ;;  %vm466_vm1 = vcmask 1046528   ;;  %vm385_vm2 = vcmask 261120   ;;  %s5200_s28 = smov 32  }
  0x17   : > { %s327_s27 = scalar_select %p326_p10, %s5278_s13, 1  ;;  %v5333_v8 = vld [vmem:[%s8714_s1 + $0x30] sm:$0xff]  ;;  %v4959_v9 = vpack.c.bf16 %v1652_v5, %v1651_v3  ;;  %v5338_v10 = vld [vmem:[%s8714_s1 + $0x38] sm:$0xff]  ;;  %v5343_v11 = vld [vmem:[%s8714_s1 + $0x40] sm:$0xff]  ;;  %v4962_v18 = vpack.c.bf16 %v5328_v7, %v5323_v6  ;;  %vm643_vm3 = vcmask 523520   ;;  %vm853_vm4 = vcmask 785920  }
  0x18   : > { %4957 = vmatpush1.bf16.msra.mxu0 %v4956_v4  ;;  %v5348_v12 = vld [vmem:[%s8714_s1 + $0x48] sm:$0xff]  ;;  %v5354_v13 = vld [vmem:[%s8714_s1 + $0x50] sm:$0xff]  ;;  %v5359_v14 = vld [vmem:[%s8714_s1 + $0x58] sm:$0xff]  ;;  %v4965_v19 = vpack.c.bf16 %v5338_v10, %v5333_v8  ;;  %s5201_s29 = smov 96   ;;  %vm984_vm5 = vcmask 1048320   ;;  %vm2272_vm6 = vcmask 254976  }
  0x19   : > { %s5077_s24 = smul.u32 432, %s327_s27  ;;  %4958 = vmatprep.subr.bf16.mxu0 %v8723_v0  ;;  %v4968_v20 = vpack.c.bf16 %v5348_v12, %v5343_v11  ;;  %v4971_v27 = vpack.c.bf16 %v5359_v14, %v5354_v13  ;;  %v1661_v11 = vld [vmem:[%s8714_s1 + $0x60] sm:$0xff]  ;;  %v1662_v12 = vld [vmem:[%s8714_s1 + $0x68] sm:$0xff]  ;;  %v1684_v13 = vld [vmem:[%s8714_s1 + $0x118] sm:$0xff]  ;;  %vm5203_vm7 = vmmov 0   ;;  %vm4411_vm8 = vcmask 64512  }
  0x1a   : > { %s4747_s25 = sshll.u32 %s5278_s13, 12  ;;  %s5204_s22 = smov [#allocation4]  }
  0x1b   : > { %s5364_s26 = scalar_lea.vmem %s8713_s0, %s5077_s24  ;;  %s5199_s24 = smov 64  }
  0x1c   : > { %v5367_v15 = vld [vmem:[%s5364_s26 + $0x30] sm:$0xff]  ;;  %v5370_v16 = vld [vmem:[%s5364_s26 + $0x18] sm:$0xff]  ;;  %v5373_v17 = vld [vmem:[%s5364_s26 + $0x20] sm:$0xff]  ;;  %4960 = vmatpush1.bf16.msra.mxu0 %v4959_v9  ;;  %s8638_s27 = scalar_lea.hbm %s8722_s9, %s4747_s25 }
  0x1d   : > { %1222 = vrot.lane.b32.xlu1 %v5367_v15, %s5199_s24  ;;  %v682_v21 = vrot.slane %v5370_v16, 2  ;;  %v683_v22 = vrot.slane %v5373_v17, 2  ;;  %v331_v23 = vld [vmem:[%s5364_s26] sm:$0xff]  ;;  %v332_v24 = vld [vmem:[%s5364_s26 + $0x8] sm:$0xff]  ;;  %v5388_v25 = vld [vmem:[%s5364_s26 + $0x38] sm:$0xff]  ;;  %v477_v26 = vrot.slane %v5367_v15, 1  ;;  %4961 = vmatprep.subr.bf16.mxu0 %v8723_v0 }
  0x1e   : > { %388 = vst.msk [vmem:[#allocation2 + $0x30] sm:$0xff] %vm385_vm2, %v5370_v16  ;;  %389 = vst.msk [vmem:[#allocation2 + $0x48] sm:$0xff] %vm385_vm2, %v5373_v17  ;;  %v467_v28 = vrot.slane %v331_v23, 1  ;;  %v468_v29 = vrot.slane %v332_v24, 1  ;;  %v677_v30 = vrot.slane %v331_v23, 2  ;;  %v678_v31 = vrot.slane %v332_v24, 2 }
  0x1f   : > { %390 = vst.msk [vmem:[#allocation2 + $0x60] sm:$0xff] %vm385_vm2, %v5367_v15  ;;  %v333_v32 = vld [vmem:[%s5364_s26 + $0x10] sm:$0x3]  ;;  %386 = vst.msk [vmem:[#allocation2] sm:$0xff] %vm385_vm2, %v331_v23  ;;  %v5406_v33 = vsel %vm676_vm0, %v682_v21, %v683_v22  ;;  %v478_v34 = vrot.slane %v5388_v25, 1  ;;  %v5411_v38 = vld [vmem:[%s5364_s26 + $0x48] sm:$0xff] }
  0x20   : > { %387 = vst.msk [vmem:[#allocation2 + $0x18] sm:$0xff] %vm385_vm2, %v332_v24  ;;  %391 = vst.msk [vmem:[#allocation2 + $0x78] sm:$0xff] %vm385_vm2, %v5388_v25  ;;  %v470_v35 = vrot.slane %v333_v32, 1  ;;  %v336_v36 = vld [vmem:[%s5364_s26 + $0x28] sm:$0x3]  ;;  %v680_v37 = vrot.slane %v333_v32, 2  ;;  %1092 = vrot.lane.b32.xlu0 %v5406_v33, %s5200_s28  ;;  %v469_v39 = vsel %vm466_vm1, %v467_v28, %v468_v29  ;;  %v679_v40 = vsel %vm676_vm0, %v677_v30, %v678_v31 }
  0x21   : > { %v685_v41 = vrot.slane %v336_v36, 2  ;;  %v339_v42 = vld [vmem:[%s5364_s26 + $0x40] sm:$0x3]  ;;  %v472_v43 = vrot.slane %v5370_v16, 1  ;;  %392 = vst.msk [vmem:[#allocation2 + $0x90] sm:$0xff] %vm385_vm2, %v5411_v38  ;;  %v5422_v44 = vld [vmem:[%s5364_s26 + $0x50] sm:$0xff]  ;;  %888 = vrot.lane.b32.xlu1 %v5370_v16, %s5201_s29  ;;  %v5430_v46 = vsel %vm466_vm1, %v477_v26, %v478_v34  ;;  %4963 = vmatpush1.bf16.msra.mxu0 %v4962_v18 }
  0x22   : > { %v5425_v45 = vld [vmem:[%s5364_s26 + $0x60] sm:$0xff]  ;;  %v5433_v47 = vsel %vm466_vm1, %v468_v29, %v470_v35  ;;  %v5436_v48 = vsel %vm676_vm0, %v678_v31, %v680_v37  ;;  %v480_v49 = vrot.slane %v339_v42, 1  ;;  %393 = vst.msk [vmem:[#allocation2 + $0xa8] sm:$0xff] %vm385_vm2, %v5422_v44  ;;  %v5441_v50 = vld [vmem:[%s5364_s26 + $0x58] sm:$0x3]  ;;  %v5446_v51 = vld [vmem:[%s5364_s26 + $0x68] sm:$0xff]  ;;  %4964 = vmatprep.subr.bf16.mxu0 %v8723_v0 }
  0x23   : > { %394 = vst.msk [vmem:[#allocation2 + $0xc0] sm:$0xff] %vm385_vm2, %v5425_v45  ;;  %v5449_v52 = vsel %vm676_vm0, %v683_v22, %v685_v41  ;;  %v473_v53 = vrot.slane %v5373_v17, 1  ;;  %v687_v54 = vrot.slane %v5367_v15, 2  ;;  %v688_v55 = vrot.slane %v5388_v25, 2  ;;  %1057 = vst.msk [vmem:[#allocation2 + $0x38] sm:$0xff] %vm385_vm2, %v5430_v46  ;;  %v5459_v56 = vld [vmem:[%s5364_s26 + $0x78] sm:$0xff] }
  0x24   : > { %395 = vst.msk [vmem:[#allocation2 + $0xd8] sm:$0xff] %vm385_vm2, %v5446_v51  ;;  %v5463_v57 = vld [vmem:[%s5364_s26 + $0x80] sm:$0xff]  ;;  %v5466_v58 = vld [vmem:[%s5364_s26 + $0x90] sm:$0xff]  ;;  %v5469_v59 = vsel %vm466_vm1, %v478_v34, %v480_v49  ;;  %v482_v60 = vrot.slane %v5411_v38, 1  ;;  %v483_v61 = vrot.slane %v5422_v44, 1  ;;  %v475_v62 = vrot.slane %v336_v36, 1  ;;  %547 = vrot.lane.b32.xlu0 %v469_v39, %s5200_s28 }
  0x25   : > { %396 = vst.msk [vmem:[#allocation2 + $0xf0] sm:$0xff] %vm385_vm2, %v5459_v56  ;;  %397 = vst.msk [vmem:[#allocation2 + $0x108] sm:$0xff] %vm385_vm2, %v5463_v57  ;;  %v5480_v63 = vld [vmem:[%s5364_s26 + $0x98] sm:$0xff]  ;;  %v5484_v1 = vsel %vm466_vm1, %v472_v43, %v473_v53  ;;  %v5487_v2 = vsel %vm676_vm0, %v687_v54, %v688_v55  ;;  %v690_v3 = vrot.slane %v339_v42, 2  ;;  %v485_v4 = vrot.slane %v5441_v50, 1  ;;  %757 = vrot.lane.b32.xlu1 %v679_v40, %s5199_s24  ;;  %v5535_v28 = vld [vmem:[%s5364_s26 + $0xa8] sm:$0xff] }
  0x26   : > { %398 = vst.msk [vmem:[#allocation2 + $0x120] sm:$0xff] %vm385_vm2, %v5466_v58  ;;  %1058 = vst.msk [vmem:[#allocation2 + $0x50] sm:$0xff] %vm385_vm2, %v5469_v59  ;;  %v345_v5 = vld [vmem:[%s5364_s26 + $0x70] sm:$0x3]  ;;  %v5501_v6 = vsel %vm466_vm1, %v482_v60, %v483_v61  ;;  %v5504_v7 = vsel %vm466_vm1, %v473_v53, %v475_v62  ;;  %v692_v9 = vrot.slane %v5411_v38, 2  ;;  %v693_v16 = vrot.slane %v5422_v44, 2  ;;  %4966 = vmatpush1.bf16.msra.mxu0 %v4965_v19 }
  0x27   : > { %399 = vst.msk [vmem:[#allocation2 + $0x138] sm:$0xff] %vm385_vm2, %v5480_v63  ;;  %1521 = vst.msk [vmem:[#allocation2 + $0x10] sm:$0xff] %vm385_vm2, %v5487_v2  ;;  %v5516_v18 = vsel %vm676_vm0, %v688_v55, %v690_v3  ;;  %v5519_v21 = vsel %vm466_vm1, %v483_v61, %v485_v4  ;;  %v487_v22 = vrot.slane %v5425_v45, 1  ;;  %v488_v23 = vrot.slane %v5446_v51, 1  ;;  %4967 = vmatprep.subr.bf16.mxu0 %v8723_v0  ;;  %v348_v8 = vld [vmem:[%s5364_s26 + $0x88] sm:$0x3] }
  0x28   : > { %1055 = vst.msk [vmem:[#allocation2 + $0x8] sm:$0xff] %vm385_vm2, %v5484_v1  ;;  %1059 = vst.msk [vmem:[#allocation2 + $0x68] sm:$0xff] %vm385_vm2, %v5501_v6  ;;  %v5530_v10 = vsel %vm676_vm0, %v692_v9, %v693_v16  ;;  %v695_v19 = vrot.slane %v5441_v50, 2  ;;  %v490_v24 = vrot.slane %v345_v5, 1  ;;  %v697_v26 = vrot.slane %v5425_v45, 2  ;;  %1356 = vrot.lane.b32.xlu0 %v5430_v46, %s5201_s29  ;;  %v5563_v39 = vld [vmem:[%s5364_s26 + $0xb0] sm:$0xff] }
  0x29   : > { %1056 = vst.msk [vmem:[#allocation2 + $0x20] sm:$0xff] %vm385_vm2, %v5504_v7  ;;  %1522 = vst.msk [vmem:[#allocation2 + $0x28] sm:$0xff] %vm385_vm2, %v5516_v18  ;;  %v5542_v29 = vsel %vm466_vm1, %v487_v22, %v488_v23  ;;  %v698_v30 = vrot.slane %v5446_v51, 2  ;;  %v492_v31 = vrot.slane %v5459_v56, 1  ;;  %v493_v32 = vrot.slane %v5463_v57, 1  ;;  %549 = vrot.lane.b32.xlu1 %v5433_v47, %s5200_s28  ;;  %v5600_v50 = vld [vmem:[%s8714_s1 + $0x70] sm:$0xff] }
  0x2a   : > { %1060 = vst.msk [vmem:[#allocation2 + $0x80] sm:$0xff] %vm385_vm2, %v5519_v21  ;;  %1523 = vst.msk [vmem:[#allocation2 + $0x40] sm:$0xff] %vm385_vm2, %v5530_v10  ;;  %v5554_v34 = vsel %vm676_vm0, %v693_v16, %v695_v19  ;;  %v5557_v35 = vsel %vm466_vm1, %v488_v23, %v490_v24  ;;  %v700_v36 = vrot.slane %v345_v5, 2  ;;  %4969 = vmatpush1.bf16.msra.mxu0 %v4968_v20  ;;  %v495_v37 = vrot.slane %v348_v8, 1  ;;  %v351_v43 = vld [vmem:[%s5364_s26 + $0xa0] sm:$0x3] }
  0x2b   : > { %400 = vst.msk [vmem:[#allocation2 + $0x150] sm:$0xff] %vm385_vm2, %v5535_v28  ;;  %1061 = vst.msk [vmem:[#allocation2 + $0x98] sm:$0xff] %vm385_vm2, %v5542_v29  ;;  %v5570_v40 = vsel %vm676_vm0, %v697_v26, %v698_v30  ;;  %v5573_v41 = vsel %vm466_vm1, %v492_v31, %v493_v32  ;;  %4970 = vmatprep.subr.bf16.mxu0 %v8723_v0  ;;  %v702_v20 = vrot.slane %v5459_v56, 2  ;;  %v703_v42 = vrot.slane %v5463_v57, 2  ;;  %v1681_v61 = vld [vmem:[%s8714_s1 + $0x100] sm:$0xff]  ;;  %v1682_v62 = vld [vmem:[%s8714_s1 + $0x108] sm:$0xff] }
  0x2c   : > { %1524 = vst.msk [vmem:[#allocation2 + $0x58] sm:$0xff] %vm385_vm2, %v5554_v34  ;;  %1062 = vst.msk [vmem:[#allocation2 + $0xb0] sm:$0xff] %vm385_vm2, %v5557_v35  ;;  %v5592_v47 = vsel %vm676_vm0, %v698_v30, %v700_v36  ;;  %v5595_v49 = vsel %vm466_vm1, %v493_v32, %v495_v37  ;;  %v497_v53 = vrot.slane %v5466_v58, 1  ;;  %v498_v54 = vrot.slane %v5480_v63, 1  ;;  %1094 = vrot.lane.b32.xlu0 %v5449_v52, %s5200_s28  ;;  %v1664_v5 = vld [vmem:[%s8714_s1 + $0x78] sm:$0xff] }
  0x2d   : > { %401 = vst.msk [vmem:[#allocation2 + $0x168] sm:$0xff] %vm385_vm2, %v5563_v39  ;;  %1525 = vst.msk [vmem:[#allocation2 + $0x70] sm:$0xff] %vm385_vm2, %v5570_v40  ;;  %v5611_v55 = vsel %vm676_vm0, %v702_v20, %v703_v42  ;;  %v705_v60 = vrot.slane %v348_v8, 2  ;;  %759 = vrot.lane.b32.xlu1 %v5436_v48, %s5199_s24  ;;  %v4974_v4 = vpack.c.bf16 %v1662_v12, %v1661_v11  ;;  %v500_v16 = vrot.slane %v351_v43, 1  ;;  %v1683_v48 = vld [vmem:[%s8714_s1 + $0x110] sm:$0xff]  ;;  %v1665_v20 = vld [vmem:[%s8714_s1 + $0x80] sm:$0xff] }
  0x2e   : > { %1063 = vst.msk [vmem:[#allocation2 + $0xc8] sm:$0xff] %vm385_vm2, %v5573_v41  ;;  %1526 = vst.msk [vmem:[#allocation2 + $0x88] sm:$0xff] %vm385_vm2, %v5592_v47  ;;  %v1555_v3 = vld [vmem:[#allocation2 + $0x10] sm:$0xff]  ;;  %4972 = vmatpush1.bf16.msra.mxu0 %v4971_v27  ;;  %v5630_v9 = vsel %vm466_vm1, %v497_v53, %v498_v54  ;;  %v707_v27 = vrot.slane %v5466_v58, 2  ;;  %v708_v22 = vrot.slane %v5480_v63, 2  ;;  %v5003_v19 = vpack.c.bf16 %v1682_v62, %v1681_v61 }
  0x2f   : > { %1064 = vst.msk [vmem:[#allocation2 + $0xe0] sm:$0xff] %vm385_vm2, %v5595_v49  ;;  %1527 = vst.msk [vmem:[#allocation2 + $0xa0] sm:$0xff] %vm385_vm2, %v5611_v55  ;;  %4973 = vmatprep.subr.bf16.mxu0 %v8723_v0  ;;  %v5642_v14 = vsel %vm676_vm0, %v703_v42, %v705_v60  ;;  %4835 = vmatprep.mubr.msk.f32.mxu1 %vm385_vm2, %v1555_v3  ;;  %v354_v23 = vld [vmem:[%s5364_s26 + $0xb8] sm:$0x3]  ;;  %v5651_v8 = vsel %vm466_vm1, %v498_v54, %v500_v16  ;;  %v502_v24 = vrot.slane %v5535_v28, 1  ;;  %v5691_v54 = vld [vmem:[%s5364_s26 + $0xc0] sm:$0xff] }
  0x30   : > { %1065 = vst.msk [vmem:[#allocation2 + $0xf8] sm:$0xff] %vm385_vm2, %v5630_v9  ;;  %1528 = vst.msk [vmem:[#allocation2 + $0xb8] sm:$0xff] %vm385_vm2, %v5642_v14  ;;  %1224 = vrot.lane.b32.xlu0 %v5388_v25, %s5199_s24  ;;  %v4977_v26 = vpack.c.bf16 %v1664_v5, %v5600_v50  ;;  %v5660_v30 = vsel %vm676_vm0, %v707_v27, %v708_v22  ;;  %v503_v31 = vrot.slane %v5563_v39, 1  ;;  %v710_v36 = vrot.slane %v351_v43, 2  ;;  %v5704_v60 = vld [vmem:[%s5364_s26 + $0xc8] sm:$0xff]  ;;  %v1668_v5 = vld [vmem:[%s8714_s1 + $0x98] sm:$0xff] }
  0x31   : > { %8750 = vst [vmem:[#allocation7_spill] sm:$0xff] %v5651_v8  ;;  %1066 = vst.msk [vmem:[#allocation2 + $0x110] sm:$0xff] %vm385_vm2, %v5651_v8  ;;  %v5007_v32 = vpack.c.bf16 %v1684_v13, %v1683_v48  ;;  %890 = vrot.lane.b32.xlu1 %v5373_v17, %s5201_s29  ;;  %v505_v37 = vrot.slane %v354_v23, 1  ;;  %v712_v11 = vrot.slane %v5535_v28, 2  ;;  %v713_v12 = vrot.slane %v5563_v39, 2  ;;  %v1666_v17 = vld [vmem:[%s8714_s1 + $0x88] sm:$0xff]  ;;  %5004 = vmatprep.subr.bf16.mxu1 %v5003_v19 }
  0x32   : > { %4975 = vmatpush1.bf16.msra.mxu0 %v4974_v4  ;;  %1529 = vst.msk [vmem:[#allocation2 + $0xd0] sm:$0xff] %vm385_vm2, %v5660_v30  ;;  %v5677_v42 = vsel %vm466_vm1, %v502_v24, %v503_v31  ;;  %5006 = vmatpush3.bf16.msra.mxu1 %v5003_v19  ;;  %v5682_v43 = vsel %vm676_vm0, %v708_v22, %v710_v36  ;;  %402 = vst.msk [vmem:[#allocation2 + $0x180] sm:$0xff] %vm385_vm2, %v5691_v54  ;;  %v507_v62 = vrot.slane %v5691_v54, 1  ;;  %v1667_v4 = vld [vmem:[%s8714_s1 + $0x90] sm:$0xff]  ;;  %v1558_v16 = vld [vmem:[#allocation2 + $0x28] sm:$0xff] }
  0x33   : > { %4976 = vmatprep.subr.bf16.mxu0 %v8723_v0  ;;  %8751 = vst [vmem:[#allocation8_spill] sm:$0xff] %v5677_v42  ;;  %1067 = vst.msk [vmem:[#allocation2 + $0x128] sm:$0xff] %vm385_vm2, %v5677_v42  ;;  %v5685_v50 = vsel %vm466_vm1, %v503_v31, %v505_v37  ;;  %v5688_v53 = vsel %vm676_vm0, %v712_v11, %v713_v12  ;;  %5008 = vmatprep.subr.bf16.mxu1 %v5007_v32  ;;  %v508_v3 = vrot.slane %v5704_v60, 1  ;;  %v1669_v22 = vld [vmem:[%s8714_s1 + $0xa0] sm:$0xff]  ;;  %v1670_v19 = vld [vmem:[%s8714_s1 + $0xa8] sm:$0xff] }
  0x34   : > { %8752 = vst [vmem:[#allocation9_spill] sm:$0xff] %v5685_v50  ;;  %1358 = vrot.lane.b32.xlu0 %v5469_v59, %s5201_s29  ;;  %1530 = vst.msk [vmem:[#allocation2 + $0xe8] sm:$0xff] %vm385_vm2, %v5682_v43  ;;  %v4980_v61 = vpack.c.bf16 %v1666_v17, %v1665_v20  ;;  %v4983_v13 = vpack.c.bf16 %v1668_v5, %v1667_v4  ;;  %v715_v27 = vrot.slane %v354_v23, 2  ;;  %v1561_v24 = vld [vmem:[#allocation2 + $0x40] sm:$0xff]  ;;  %v1671_v31 = vld [vmem:[%s8714_s1 + $0xb0] sm:$0xff] }
  0x35   : > { %1068 = vst.msk [vmem:[#allocation2 + $0x140] sm:$0xff] %vm385_vm2, %v5685_v50  ;;  %1531 = vst.msk [vmem:[#allocation2 + $0x100] sm:$0xff] %vm385_vm2, %v5688_v53  ;;  %551 = vrot.lane.b32.xlu1 %v5484_v1, %s5200_s28  ;;  %v5720_v48 = vsel %vm466_vm1, %v507_v62, %v508_v3  ;;  %v4986_v23 = vpack.c.bf16 %v1670_v19, %v1669_v22  ;;  %v357_v36 = vld [vmem:[%s5364_s26 + $0xd0] sm:$0x3]  ;;  %v1673_v11 = vld [vmem:[%s8714_s1 + $0xc0] sm:$0xff]  ;;  %v718_v62 = vrot.slane %v5704_v60, 2 }
  0x36   : > { %4978 = vmatpush1.bf16.msra.mxu0 %v4977_v26  ;;  %403 = vst.msk [vmem:[#allocation2 + $0x198] sm:$0xff] %vm385_vm2, %v5704_v60  ;;  %5010 = vmatpush3.bf16.msra.mxu1 %v5007_v32  ;;  %8753 = vst [vmem:[#allocation10_spill] sm:$0xff] %v5720_v48  ;;  %v5738_v26 = vsel %vm676_vm0, %v713_v12, %v715_v27  ;;  %v1672_v32 = vld [vmem:[%s8714_s1 + $0xb8] sm:$0xff]  ;;  %v510_v37 = vrot.slane %v357_v36, 1  ;;  %v1674_v12 = vld [vmem:[%s8714_s1 + $0xc8] sm:$0xff] }
  0x37   : > { %4979 = vmatprep.subr.bf16.mxu0 %v8723_v0  ;;  %1069 = vst.msk [vmem:[#allocation2 + $0x158] sm:$0xff] %vm385_vm2, %v5720_v48  ;;  %5011 = vmatprep.subr.bf16.mxu1 %v8723_v0  ;;  %1532 = vst.msk [vmem:[#allocation2 + $0x118] sm:$0xff] %vm385_vm2, %v5738_v26  ;;  %v4992_v17 = vpack.c.bf16 %v1674_v12, %v1673_v11  ;;  %v1676_v4 = vld [vmem:[%s8714_s1 + $0xd8] sm:$0xff]  ;;  %v1570_v12 = vld [vmem:[#allocation2 + $0x88] sm:$0xff] }
  0x38   : > { %1096 = vrot.lane.b32.xlu0 %v5487_v2, %s5200_s28  ;;  %v5768_v20 = vsel %vm466_vm1, %v508_v3, %v510_v37  ;;  %v1675_v3 = vld [vmem:[%s8714_s1 + $0xd0] sm:$0xff]  ;;  %v5802_v27 = vld [vmem:[%s5364_s26 + $0xd8] sm:$0xff] }
  0x39   : > { %761 = vrot.lane.b32.xlu1 %v5406_v33, %s5199_s24  ;;  %4836 = vmatmul.mubr.msk.f32.vlgmr.msra.gmra.mrb[0].mxu1 %vm385_vm2, %v1558_v16  ;;  %v1564_v33 = vld [vmem:[#allocation2 + $0x58] sm:$0xff]  ;;  %8754 = vst [vmem:[#allocation11_spill] sm:$0xff] %v5768_v20  ;;  %1070 = vst.msk [vmem:[#allocation2 + $0x170] sm:$0xff] %vm385_vm2, %v5768_v20  ;;  %v4995_v5 = vpack.c.bf16 %v1676_v4, %v1675_v3  ;;  %v1677_v16 = vld [vmem:[%s8714_s1 + $0xe0] sm:$0xff]  ;;  %v512_v19 = vrot.slane %v5802_v27, 1 }
  0x3a   : > { %4981 = vmatpush1.bf16.msra.mxu0 %v4980_v61  ;;  %4838 = vmatprep.mubr.msk.f32.mxu1 %vm385_vm2, %v1561_v24  ;;  %v717_v61 = vrot.slane %v5691_v54, 2  ;;  %404 = vst.msk [vmem:[#allocation2 + $0x1b0] sm:$0xff] %vm385_vm2, %v5802_v27  ;;  %v1567_v37 = vld [vmem:[#allocation2 + $0x70] sm:$0xff] }
  0x3b   : > { %4982 = vmatprep.subr.bf16.mxu0 %v8723_v0  ;;  %v5871_v3 = vld [vmem:[%s5364_s26 + $0xf0] sm:$0xff] }
  0x3c   : > { %1226 = vrot.lane.b32.xlu0 %v5411_v38, %s5199_s24  ;;  %406 = vst.msk [vmem:[#allocation2 + $0x1e0] sm:$0xff] %vm385_vm2, %v5871_v3  ;;  %v517_v4 = vrot.slane %v5871_v3, 1 }
  0x3d   : > { %892 = vrot.lane.b32.xlu1 %v5367_v15, %s5201_s29  ;;  %4839 = vmatmul.mubr.msk.f32.gmra.mrb[2].mxu1 %vm385_vm2, %v1564_v33  ;;  %v4989_v15 = vpack.c.bf16 %v1672_v32, %v1671_v31  ;;  %v1679_v33 = vld [vmem:[%s8714_s1 + $0xf0] sm:$0xff] }
  0x3e   : > { %4984 = vmatpush1.bf16.msra.mxu0 %v4983_v13  ;;  %v1678_v13 = vld [vmem:[%s8714_s1 + $0xe8] sm:$0xff]  ;;  %4841 = vmatprep.mubr.msk.f32.mxu1 %vm385_vm2, %v1567_v37 }
  0x3f   : > { %4985 = vmatprep.subr.bf16.mxu0 %v8723_v0  ;;  %v4998_v22 = vpack.c.bf16 %v1678_v13, %v1677_v16  ;;  %v1573_v13 = vld [vmem:[#allocation2 + $0xa0] sm:$0xff] }
  0x40   : > { %1360 = vrot.lane.b32.xlu0 %v5501_v6, %s5201_s29 }
  0x41   : > { %553 = vrot.lane.b32.xlu1 %v5504_v7, %s5200_s28  ;;  %4842 = vmatmul.mubr.msk.f32.gmra.mrb[4].mxu1 %vm385_vm2, %v1570_v12 }
  0x42   : > { %4987 = vmatpush1.bf16.msra.mxu0 %v4986_v23  ;;  %v1680_v23 = vld [vmem:[%s8714_s1 + $0xf8] sm:$0xff]  ;;  %4844 = vmatprep.mubr.msk.f32.mxu1 %vm385_vm2, %v1573_v13 }
  0x43   : > { %4988 = vmatprep.subr.bf16.mxu0 %v8723_v0  ;;  %v5001_v32 = vpack.c.bf16 %v1680_v23, %v1679_v33 }
  0x44   : > { %1098 = vrot.lane.b32.xlu0 %v5516_v18, %s5200_s28 }
  0x45   : > { %763 = vrot.lane.b32.xlu1 %v5449_v52, %s5199_s24  ;;  %v5786_v52 = vsel %vm676_vm0, %v717_v61, %v718_v62 }
  0x46   : > { %4990 = vmatpush1.bf16.msra.mxu0 %v4989_v15  ;;  %1533 = vst.msk [vmem:[#allocation2 + $0x130] sm:$0xff] %vm385_vm2, %v5786_v52  ;;  %v720_v15 = vrot.slane %v357_v36, 2 }
  0x47   : > { %4991 = vmatprep.subr.bf16.mxu0 %v8723_v0 }
  0x48   : > { %1228 = vrot.lane.b32.xlu0 %v5422_v44, %s5199_s24  ;;  %v5835_v11 = vsel %vm676_vm0, %v718_v62, %v720_v15  ;;  %v5932_v15 = vld [vmem:[%s5364_s26 + $0x108] sm:$0xff] }
  0x49   : > { %894 = vrot.lane.b32.xlu1 %v5388_v25, %s5201_s29  ;;  %v5809_v25 = vld [vmem:[%s5364_s26 + $0xe0] sm:$0xff]  ;;  %1534 = vst.msk [vmem:[#allocation2 + $0x148] sm:$0xff] %vm385_vm2, %v5835_v11  ;;  %408 = vst.msk [vmem:[#allocation2 + $0x210] sm:$0xff] %vm385_vm2, %v5932_v15  ;;  %v522_v37 = vrot.slane %v5932_v15, 1 }
  0x4a   : > { %4993 = vmatpush1.bf16.msra.mxu0 %v4992_v17  ;;  %v513_v24 = vrot.slane %v5809_v25, 1  ;;  %405 = vst.msk [vmem:[#allocation2 + $0x1c8] sm:$0xff] %vm385_vm2, %v5809_v25  ;;  %v723_v61 = vrot.slane %v5809_v25, 2 }
  0x4b   : > { %4994 = vmatprep.subr.bf16.mxu0 %v8723_v0 }
  0x4c   : > { %1362 = vrot.lane.b32.xlu0 %v5519_v21, %s5201_s29  ;;  %v5825_v31 = vsel %vm466_vm1, %v512_v19, %v513_v24  ;;  %v1576_v19 = vld [vmem:[#allocation2 + $0xb8] sm:$0xff] }
  0x4d   : > { %555 = vrot.lane.b32.xlu1 %v5430_v46, %s5200_s28  ;;  %8755 = vst [vmem:[#allocation12_spill] sm:$0xff] %v5825_v31  ;;  %1071 = vst.msk [vmem:[#allocation2 + $0x188] sm:$0xff] %vm385_vm2, %v5825_v31  ;;  %4845 = vmatmul.mubr.msk.f32.gmra.mrb[6].mxu1 %vm385_vm2, %v1576_v19 }
  0x4e   : > { %4996 = vmatpush1.bf16.msra.mxu0 %v4995_v5 }
  0x4f   : > { %4997 = vmatprep.subr.bf16.mxu0 %v8723_v0 }
  0x50   : > { %1100 = vrot.lane.b32.xlu0 %v5530_v10, %s5200_s28 }
  0x51   : > { %765 = vrot.lane.b32.xlu1 %v5487_v2, %s5199_s24  ;;  %v360_v2 = vld [vmem:[%s5364_s26 + $0xe8] sm:$0x3] }
  0x52   : > { %4999 = vmatpush1.bf16.msra.mxu0 %v4998_v22  ;;  %v515_v36 = vrot.slane %v360_v2, 1  ;;  %v725_v16 = vrot.slane %v360_v2, 2 }
  0x53   : > { %5000 = vmatprep.subr.bf16.mxu0 %v8723_v0 }
  0x54   : > { %1230 = vrot.lane.b32.xlu0 %v5425_v45, %s5199_s24  ;;  %v5851_v17 = vsel %vm466_vm1, %v513_v24, %v515_v36  ;;  %v5896_v22 = vsel %vm676_vm0, %v723_v61, %v725_v16  ;;  %v1579_v36 = vld [vmem:[#allocation2 + $0xd0] sm:$0xff] }
  0x55   : > { %896 = vrot.lane.b32.xlu1 %v5411_v38, %s5201_s29  ;;  %8756 = vst [vmem:[#allocation13_spill] sm:$0xff] %v5851_v17  ;;  %1072 = vst.msk [vmem:[#allocation2 + $0x1a0] sm:$0xff] %vm385_vm2, %v5851_v17  ;;  %v722_v38 = vrot.slane %v5802_v27, 2  ;;  %4847 = vmatprep.mubr.msk.f32.mxu1 %vm385_vm2, %v1579_v36 }
  0x56   : > { %5002 = vmatpush1.bf16.msra.mxu0 %v5001_v32  ;;  %1536 = vst.msk [vmem:[#allocation2 + $0x178] sm:$0xff] %vm385_vm2, %v5896_v22 }
  0x57   : > { %v5862_v62 = vsel %vm676_vm0, %v722_v38, %v723_v61  ;;  %v1582_v61 = vld [vmem:[#allocation2 + $0xe8] sm:$0xff] }
  0x58   : > { %1364 = vrot.lane.b32.xlu0 %v5542_v29, %s5201_s29  ;;  %1535 = vst.msk [vmem:[#allocation2 + $0x160] sm:$0xff] %vm385_vm2, %v5862_v62  ;;  %4848 = vmatmul.mubr.msk.f32.gmra.mrb[8].mxu1 %vm385_vm2, %v1582_v61 }
  0x59   : > { %557 = vrot.lane.b32.xlu1 %v5469_v59, %s5200_s28 }
  0x5c   : > { %1102 = vrot.lane.b32.xlu0 %v5554_v34, %s5200_s28 }
  0x5d   : > { %767 = vrot.lane.b32.xlu1 %v5516_v18, %s5199_s24  ;;  %v5878_v18 = vld [vmem:[%s5364_s26 + $0xf8] sm:$0xff] }
  0x5e   : > { %v518_v5 = vrot.slane %v5878_v18, 1  ;;  %407 = vst.msk [vmem:[#allocation2 + $0x1f8] sm:$0xff] %vm385_vm2, %v5878_v18  ;;  %v728_v23 = vrot.slane %v5878_v18, 2 }
  0x60   : > { %1232 = vrot.lane.b32.xlu0 %v5446_v51, %s5199_s24 }
  0x61   : > { %898 = vrot.lane.b32.xlu1 %v5422_v44, %s5201_s29  ;;  %v5887_v44 = vsel %vm466_vm1, %v517_v4, %v518_v5 }
  0x62   : > { %8757 = vst [vmem:[#allocation14_spill] sm:$0xff] %v5887_v44  ;;  %1073 = vst.msk [vmem:[#allocation2 + $0x1b8] sm:$0xff] %vm385_vm2, %v5887_v44 }
  0x64   : > { %1366 = vrot.lane.b32.xlu0 %v5557_v35, %s5201_s29 }
  0x65   : > { %559 = vrot.lane.b32.xlu1 %v5501_v6, %s5200_s28 }
  0x68   : > { %1104 = vrot.lane.b32.xlu0 %v5570_v40, %s5200_s28 }
  0x69   : > { %769 = vrot.lane.b32.xlu1 %v5530_v10, %s5199_s24  ;;  %v363_v10 = vld [vmem:[%s5364_s26 + $0x100] sm:$0x3] }
  0x6a   : > { %v520_v24 = vrot.slane %v363_v10, 1  ;;  %v730_v2 = vrot.slane %v363_v10, 2 }
  0x6c   : > { %1234 = vrot.lane.b32.xlu0 %v5459_v56, %s5199_s24  ;;  %v5912_v33 = vsel %vm466_vm1, %v518_v5, %v520_v24  ;;  %v5957_v38 = vsel %vm676_vm0, %v728_v23, %v730_v2  ;;  %v5994_v24 = vld [vmem:[%s5364_s26 + $0x120] sm:$0xff] }
  0x6d   : > { %900 = vrot.lane.b32.xlu1 %v5425_v45, %s5201_s29  ;;  %8758 = vst [vmem:[#allocation15_spill] sm:$0xff] %v5912_v33  ;;  %1074 = vst.msk [vmem:[#allocation2 + $0x1d0] sm:$0xff] %vm385_vm2, %v5912_v33  ;;  %v727_v45 = vrot.slane %v5871_v3, 2 }
  0x6e   : > { %1538 = vst.msk [vmem:[#allocation2 + $0x1a8] sm:$0xff] %vm385_vm2, %v5957_v38  ;;  %410 = vst.msk [vmem:[#allocation2 + $0x240] sm:$0xff] %vm385_vm2, %v5994_v24 }
  0x6f   : > { %v5923_v32 = vsel %vm676_vm0, %v727_v45, %v728_v23  ;;  %v6002_v45 = vld [vmem:[%s5364_s26 + $0x128] sm:$0xff] }
  0x70   : > { %1368 = vrot.lane.b32.xlu0 %v5573_v41, %s5201_s29  ;;  %1537 = vst.msk [vmem:[#allocation2 + $0x190] sm:$0xff] %vm385_vm2, %v5923_v32  ;;  %v528_v23 = vrot.slane %v6002_v45, 1  ;;  %411 = vst.msk [vmem:[#allocation2 + $0x258] sm:$0xff] %vm385_vm2, %v6002_v45 }
  0x71   : > { %561 = vrot.lane.b32.xlu1 %v5519_v21, %s5200_s28 }
  0x74   : > { %1106 = vrot.lane.b32.xlu0 %v5592_v47, %s5200_s28 }
  0x75   : > { %771 = vrot.lane.b32.xlu1 %v5554_v34, %s5199_s24  ;;  %v5939_v34 = vld [vmem:[%s5364_s26 + $0x110] sm:$0xff] }
  0x76   : > { %v523_v12 = vrot.slane %v5939_v34, 1  ;;  %409 = vst.msk [vmem:[#allocation2 + $0x228] sm:$0xff] %vm385_vm2, %v5939_v34  ;;  %v733_v16 = vrot.slane %v5939_v34, 2 }
  0x78   : > { %1236 = vrot.lane.b32.xlu0 %v5463_v57, %s5199_s24 }
  0x79   : > { %902 = vrot.lane.b32.xlu1 %v5446_v51, %s5201_s29  ;;  %v5948_v51 = vsel %vm466_vm1, %v522_v37, %v523_v12 }
  0x7a   : > { %1075 = vst.msk [vmem:[#allocation2 + $0x1e8] sm:$0xff] %vm385_vm2, %v5948_v51 }
  0x7c   : > { %1370 = vrot.lane.b32.xlu0 %v5595_v49, %s5201_s29 }
  0x7d   : > { %563 = vrot.lane.b32.xlu1 %v5542_v29, %s5200_s28 }
  0x80   : > { %1108 = vrot.lane.b32.xlu0 %v5611_v55, %s5200_s28 }
  0x81   : > { %773 = vrot.lane.b32.xlu1 %v5570_v40, %s5199_s24  ;;  %v366_v40 = vld [vmem:[%s5364_s26 + $0x118] sm:$0x3] }
  0x82   : > { %v525_v4 = vrot.slane %v366_v40, 1  ;;  %v735_v36 = vrot.slane %v366_v40, 2 }
  0x84   : > { %1238 = vrot.lane.b32.xlu0 %v5466_v58, %s5199_s24  ;;  %v5973_v5 = vsel %vm466_vm1, %v523_v12, %v525_v4 }
  0x85   : > { %904 = vrot.lane.b32.xlu1 %v5459_v56, %s5201_s29  ;;  %1076 = vst.msk [vmem:[#allocation2 + $0x200] sm:$0xff] %vm385_vm2, %v5973_v5  ;;  %v732_v56 = vrot.slane %v5932_v15, 2 }
  0x87   : > { %v5984_v19 = vsel %vm676_vm0, %v732_v56, %v733_v16  ;;  %v1585_v56 = vld [vmem:[#allocation2 + $0x100] sm:$0xff] }
  0x88   : > { %1372 = vrot.lane.b32.xlu0 %v5630_v9, %s5201_s29  ;;  %1539 = vst.msk [vmem:[#allocation2 + $0x1c0] sm:$0xff] %vm385_vm2, %v5984_v19  ;;  %4850 = vmatprep.mubr.msk.f32.mxu1 %vm385_vm2, %v1585_v56 }
  0x89   : > { %565 = vrot.lane.b32.xlu1 %v5557_v35, %s5200_s28 }
  0x8c   : > { %1110 = vrot.lane.b32.xlu0 %v5642_v14, %s5200_s28 }
  0x8d   : > { %775 = vrot.lane.b32.xlu1 %v5592_v47, %s5199_s24 }
  0x8f   : > { %v1223_v13 = vpop.permute.xlu1 %1222 }
  0x90   : > { %1240 = vrot.lane.b32.xlu0 %v5480_v63, %s5199_s24 }
  0x91   : > { %906 = vrot.lane.b32.xlu1 %v5463_v57, %s5201_s29  ;;  %v527_v57 = vrot.slane %v5994_v24, 1 }
  0x92   : > { %v1093_v47 = vpop.permute.xlu0 %1092 }
  0x93   : > { %1188 = vst.msk [vmem:[#allocation2 + $0x8] sm:$0xff] %vm643_vm3, %v1093_v47  ;;  %v889_v10 = vpop.permute.xlu1 %888  ;;  %v6012_v2 = vsel %vm466_vm1, %v527_v57, %v528_v23  ;;  %v369_v47 = vld [vmem:[%s5364_s26 + $0x130] sm:$0x3] }
  0x94   : > { %1374 = vrot.lane.b32.xlu0 %v5651_v8, %s5201_s29  ;;  %1318 = vst.msk [vmem:[#allocation2 + $0x8] sm:$0xff] %vm853_vm4, %v1223_v13  ;;  %v6024_v13 = vsel %vm676_vm0, %v733_v16, %v735_v36 }
  0x95   : > { %567 = vrot.lane.b32.xlu1 %v5573_v41, %s5200_s28  ;;  %1077 = vst.msk [vmem:[#allocation2 + $0x218] sm:$0xff] %vm385_vm2, %v6012_v2  ;;  %1540 = vst.msk [vmem:[#allocation2 + $0x1d8] sm:$0xff] %vm385_vm2, %v6024_v13 }
  0x96   : > { %v548_v37 = vpop.permute.xlu0 %547 }
  0x97   : > { %644 = vst.msk [vmem:[#allocation2] sm:$0xff] %vm643_vm3, %v548_v37  ;;  %v758_v12 = vpop.permute.xlu1 %757 }
  0x98   : > { %854 = vst.msk [vmem:[#allocation2] sm:$0xff] %vm853_vm4, %v758_v12  ;;  %1112 = vrot.lane.b32.xlu0 %v5660_v30, %s5200_s28 }
  0x99   : > { %985 = vst.msk [vmem:[#allocation2] sm:$0xff] %vm984_vm5, %v889_v10  ;;  %777 = vrot.lane.b32.xlu1 %v5611_v55, %s5199_s24  ;;  %v1588_v55 = vld [vmem:[#allocation2 + $0x118] sm:$0xff]  ;;  %v530_v10 = vrot.slane %v369_v47, 1 }
  0x9a   : > { %v1357_v61 = vpop.permute.xlu0 %1356  ;;  %4851 = vmatmul.mubr.msk.f32.gmra.mrb[10].mxu1 %vm385_vm2, %v1588_v55 }
  0x9b   : > { %1452 = vst.msk [vmem:[#allocation2 + $0x8] sm:$0xff] %vm984_vm5, %v1357_v61  ;;  %v550_v4 = vpop.permute.xlu1 %549  ;;  %v6044_v36 = vsel %vm466_vm1, %v528_v23, %v530_v10  ;;  %v737_v61 = vrot.slane %v5994_v24, 2  ;;  %v6076_v10 = vld [vmem:[%s5364_s26 + $0x140] sm:$0xff] }
  0x9c   : > { %645 = vst.msk [vmem:[#allocation2 + $0x18] sm:$0xff] %vm643_vm3, %v550_v4  ;;  %1242 = vrot.lane.b32.xlu0 %v5535_v28, %s5199_s24  ;;  %v738_v4 = vrot.slane %v6002_v45, 2 }
  0x9d   : > { %908 = vrot.lane.b32.xlu1 %v5466_v58, %s5201_s29  ;;  %1078 = vst.msk [vmem:[#allocation2 + $0x230] sm:$0xff] %vm385_vm2, %v6044_v36  ;;  %413 = vst.msk [vmem:[#allocation2 + $0x288] sm:$0xff] %vm385_vm2, %v6076_v10 }
  0x9e   : > { %v1095_v40 = vpop.permute.xlu0 %1094  ;;  %v6057_v55 = vsel %vm676_vm0, %v737_v61, %v738_v4 }
  0x9f   : > { %1189 = vst.msk [vmem:[#allocation2 + $0x20] sm:$0xff] %vm643_vm3, %v1095_v40  ;;  %v760_v16 = vpop.permute.xlu1 %759 }
  0xa0   : > { %855 = vst.msk [vmem:[#allocation2 + $0x18] sm:$0xff] %vm853_vm4, %v760_v16  ;;  %1376 = vrot.lane.b32.xlu0 %v5677_v42, %s5201_s29  ;;  %v1553_v12 = vld [vmem:[#allocation2] sm:$0xff]  ;;  %v6068_v16 = vld [vmem:[%s5364_s26 + $0x138] sm:$0xff] }
  0xa1   : > { %569 = vrot.lane.b32.xlu1 %v5595_v49, %s5200_s28  ;;  %1541 = vst.msk [vmem:[#allocation2 + $0x1f0] sm:$0xff] %vm385_vm2, %v6057_v55  ;;  %412 = vst.msk [vmem:[#allocation2 + $0x270] sm:$0xff] %vm385_vm2, %v6068_v16 }
  0xa2   : > { %v1225_v57 = vpop.permute.xlu0 %1224  ;;  %v1554_v37 = vld [vmem:[#allocation2 + $0x8] sm:$0xff] }
  0xa3   : > { %1319 = vst.msk [vmem:[#allocation2 + $0x20] sm:$0xff] %vm853_vm4, %v1225_v57  ;;  %v891_v58 = vpop.permute.xlu1 %890  ;;  %1852 = vmatprep.mubr.f32.mxu0 %v1554_v37  ;;  %v532_v57 = vrot.slane %v6068_v16, 1  ;;  %v533_v37 = vrot.slane %v6076_v10, 1 }
  0xa4   : > { %986 = vst.msk [vmem:[#allocation2 + $0x18] sm:$0xff] %vm984_vm5, %v891_v58  ;;  %1114 = vrot.lane.b32.xlu0 %v5682_v43, %s5200_s28  ;;  %1853 = vmatmul.mubr.f32.vlgmr.msra.gmra.mrb[0].mxu0 %v1553_v12 }
  0xa5   : > { %779 = vrot.lane.b32.xlu1 %v5642_v14, %s5199_s24 }
  0xa6   : > { %v1359_v23 = vpop.permute.xlu0 %1358 }
  0xa7   : > { %1453 = vst.msk [vmem:[#allocation2 + $0x20] sm:$0xff] %vm984_vm5, %v1359_v23  ;;  %v552_v56 = vpop.permute.xlu1 %551  ;;  %v6086_v23 = vsel %vm466_vm1, %v532_v57, %v533_v37  ;;  %v1591_v57 = vld [vmem:[#allocation2 + $0x130] sm:$0xff] }
  0xa8   : > { %646 = vst.msk [vmem:[#allocation2 + $0x30] sm:$0xff] %vm643_vm3, %v552_v56  ;;  %1244 = vrot.lane.b32.xlu0 %v5563_v39, %s5199_s24  ;;  %8759 = vst [vmem:[#allocation16_spill] sm:$0xff] %v6086_v23  ;;  %v740_v56 = vrot.slane %v369_v47, 2  ;;  %4853 = vmatprep.mubr.msk.f32.mxu1 %vm385_vm2, %v1591_v57  ;;  %v742_v57 = vrot.slane %v6068_v16, 2 }
  0xa9   : > { %910 = vrot.lane.b32.xlu1 %v5480_v63, %s5201_s29  ;;  %1079 = vst.msk [vmem:[#allocation2 + $0x248] sm:$0xff] %vm385_vm2, %v6086_v23 }
  0xaa   : > { %v1097_v14 = vpop.permute.xlu0 %1096 }
  0xab   : > { %1190 = vst.msk [vmem:[#allocation2 + $0x38] sm:$0xff] %vm643_vm3, %v1097_v14  ;;  %v762_v40 = vpop.permute.xlu1 %761  ;;  %v1556_v63 = vld [vmem:[#allocation2 + $0x18] sm:$0xff] }
  0xac   : > { %856 = vst.msk [vmem:[#allocation2 + $0x30] sm:$0xff] %vm853_vm4, %v762_v40  ;;  %1378 = vrot.lane.b32.xlu0 %v5685_v50, %s5201_s29 }
  0xad   : > { %571 = vrot.lane.b32.xlu1 %v5630_v9, %s5200_s28 }
  0xae   : > { %v1227_v58 = vpop.permute.xlu0 %1226  ;;  %v1557_v12 = vld [vmem:[#allocation2 + $0x20] sm:$0xff] }
  0xaf   : > { %1320 = vst.msk [vmem:[#allocation2 + $0x38] sm:$0xff] %vm853_vm4, %v1227_v58  ;;  %v893_v61 = vpop.permute.xlu1 %892  ;;  %1857 = vmatprep.mubr.f32.mxu0 %v1557_v12  ;;  %v6097_v58 = vsel %vm676_vm0, %v738_v4, %v740_v56 }
  0xb0   : > { %987 = vst.msk [vmem:[#allocation2 + $0x30] sm:$0xff] %vm984_vm5, %v893_v61  ;;  %1116 = vrot.lane.b32.xlu0 %v5688_v53, %s5200_s28  ;;  %1858 = vmatmul.mubr.f32.gmra.mrb[2].mxu0 %v1556_v63  ;;  %v372_v63 = vld [vmem:[%s5364_s26 + $0x148] sm:$0x3] }
  0xb1   : > { %781 = vrot.lane.b32.xlu1 %v5660_v30, %s5199_s24  ;;  %1542 = vst.msk [vmem:[#allocation2 + $0x208] sm:$0xff] %vm385_vm2, %v6097_v58  ;;  %v1594_v30 = vld [vmem:[#allocation2 + $0x148] sm:$0xff]  ;;  %v535_v61 = vrot.slane %v372_v63, 1 }
  0xb2   : > { %v1361_v14 = vpop.permute.xlu0 %1360  ;;  %4854 = vmatmul.mubr.msk.f32.gmra.mrb[12].mxu1 %vm385_vm2, %v1594_v30  ;;  %v743_v30 = vrot.slane %v6076_v10, 2 }
  0xb3   : > { %1454 = vst.msk [vmem:[#allocation2 + $0x38] sm:$0xff] %vm984_vm5, %v1361_v14  ;;  %v554_v40 = vpop.permute.xlu1 %553 }
  0xb4   : > { %647 = vst.msk [vmem:[#allocation2 + $0x48] sm:$0xff] %vm643_vm3, %v554_v40  ;;  %1246 = vrot.lane.b32.xlu0 %v5691_v54, %s5199_s24  ;;  %v6117_v40 = vsel %vm466_vm1, %v533_v37, %v535_v61  ;;  %v6141_v61 = vld [vmem:[%s5364_s26 + $0x150] sm:$0xff] }
  0xb5   : > { %912 = vrot.lane.b32.xlu1 %v5535_v28, %s5201_s29  ;;  %8760 = vst [vmem:[#allocation17_spill] sm:$0xff] %v6117_v40  ;;  %1080 = vst.msk [vmem:[#allocation2 + $0x260] sm:$0xff] %vm385_vm2, %v6117_v40 }
  0xb6   : > { %v1099_v47 = vpop.permute.xlu0 %1098  ;;  %414 = vst.msk [vmem:[#allocation2 + $0x2a0] sm:$0xff] %vm385_vm2, %v6141_v61 }
  0xb7   : > { %1191 = vst.msk [vmem:[#allocation2 + $0x50] sm:$0xff] %vm643_vm3, %v1099_v47  ;;  %v764_v4 = vpop.permute.xlu1 %763  ;;  %v1559_v12 = vld [vmem:[#allocation2 + $0x30] sm:$0xff] }
  0xb8   : > { %857 = vst.msk [vmem:[#allocation2 + $0x48] sm:$0xff] %vm853_vm4, %v764_v4  ;;  %1380 = vrot.lane.b32.xlu0 %v5720_v48, %s5201_s29  ;;  %v6130_v4 = vsel %vm676_vm0, %v742_v57, %v743_v30 }
  0xb9   : > { %573 = vrot.lane.b32.xlu1 %v5651_v8, %s5200_s28  ;;  %1543 = vst.msk [vmem:[#allocation2 + $0x220] sm:$0xff] %vm385_vm2, %v6130_v4 }
  0xba   : > { %v1229_v56 = vpop.permute.xlu0 %1228  ;;  %v1560_v14 = vld [vmem:[#allocation2 + $0x38] sm:$0xff] }
  0xbb   : > { %1321 = vst.msk [vmem:[#allocation2 + $0x50] sm:$0xff] %vm853_vm4, %v1229_v56  ;;  %v895_v28 = vpop.permute.xlu1 %894  ;;  %1862 = vmatprep.mubr.f32.mxu0 %v1560_v14  ;;  %v6149_v56 = vld [vmem:[%s5364_s26 + $0x158] sm:$0xff]  ;;  %v537_v14 = vrot.slane %v6141_v61, 1 }
  0xbc   : > { %988 = vst.msk [vmem:[#allocation2 + $0x48] sm:$0xff] %vm984_vm5, %v895_v28  ;;  %1118 = vrot.lane.b32.xlu0 %v5738_v26, %s5200_s28  ;;  %1863 = vmatmul.mubr.f32.gmra.mrb[4].mxu0 %v1559_v12  ;;  %v538_v28 = vrot.slane %v6149_v56, 1 }
  0xbd   : > { %783 = vrot.lane.b32.xlu1 %v5682_v43, %s5199_s24  ;;  %415 = vst.msk [vmem:[#allocation2 + $0x2b8] sm:$0xff] %vm385_vm2, %v6149_v56 }
  0xbe   : > { %v1363_v37 = vpop.permute.xlu0 %1362 }
  0xbf   : > { %1455 = vst.msk [vmem:[#allocation2 + $0x50] sm:$0xff] %vm984_vm5, %v1363_v37  ;;  %v556_v47 = vpop.permute.xlu1 %555 }
  0xc0   : > { %648 = vst.msk [vmem:[#allocation2 + $0x60] sm:$0xff] %vm643_vm3, %v556_v47  ;;  %1248 = vrot.lane.b32.xlu0 %v5704_v60, %s5199_s24 }
  0xc1   : > { %914 = vrot.lane.b32.xlu1 %v5563_v39, %s5201_s29 }
  0xc2   : > { %v1101_v43 = vpop.permute.xlu0 %1100 }
  0xc3   : > { %1192 = vst.msk [vmem:[#allocation2 + $0x68] sm:$0xff] %vm643_vm3, %v1101_v43  ;;  %v766_v12 = vpop.permute.xlu1 %765  ;;  %v1562_v39 = vld [vmem:[#allocation2 + $0x48] sm:$0xff]  ;;  %v6159_v43 = vsel %vm466_vm1, %v537_v14, %v538_v28  ;;  %v1597_v14 = vld [vmem:[#allocation2 + $0x160] sm:$0xff] }
  0xc4   : > { %858 = vst.msk [vmem:[#allocation2 + $0x60] sm:$0xff] %vm853_vm4, %v766_v12  ;;  %1382 = vrot.lane.b32.xlu0 %v5768_v20, %s5201_s29  ;;  %8761 = vst [vmem:[#allocation18_spill] sm:$0xff] %v6159_v43  ;;  %v745_v12 = vrot.slane %v372_v63, 2  ;;  %4856 = vmatprep.mubr.msk.f32.mxu1 %vm385_vm2, %v1597_v14 }
  0xc5   : > { %575 = vrot.lane.b32.xlu1 %v5677_v42, %s5200_s28  ;;  %1081 = vst.msk [vmem:[#allocation2 + $0x278] sm:$0xff] %vm385_vm2, %v6159_v43 }
  0xc6   : > { %v1231_v57 = vpop.permute.xlu0 %1230  ;;  %v1563_v37 = vld [vmem:[#allocation2 + $0x50] sm:$0xff] }
  0xc7   : > { %1322 = vst.msk [vmem:[#allocation2 + $0x68] sm:$0xff] %vm853_vm4, %v1231_v57  ;;  %v897_v47 = vpop.permute.xlu1 %896  ;;  %1867 = vmatprep.mubr.f32.mxu0 %v1563_v37  ;;  %v6170_v37 = vsel %vm676_vm0, %v743_v30, %v745_v12  ;;  %v375_v30 = vld [vmem:[%s5364_s26 + $0x160] sm:$0x3] }
  0xc8   : > { %989 = vst.msk [vmem:[#allocation2 + $0x60] sm:$0xff] %vm984_vm5, %v897_v47  ;;  %1120 = vrot.lane.b32.xlu0 %v5786_v52, %s5200_s28  ;;  %1868 = vmatmul.mubr.f32.gmra.mrb[6].mxu0 %v1562_v39  ;;  %v540_v47 = vrot.slane %v375_v30, 1 }
  0xc9   : > { %785 = vrot.lane.b32.xlu1 %v5688_v53, %s5199_s24  ;;  %1544 = vst.msk [vmem:[#allocation2 + $0x238] sm:$0xff] %vm385_vm2, %v6170_v37  ;;  %v1600_v53 = vld [vmem:[#allocation2 + $0x178] sm:$0xff] }
  0xca   : > { %v1365_v0 = vpop.permute.xlu0 %1364  ;;  %4857 = vmatmul.mubr.msk.f32.gmra.mrb[14].mxu1 %vm385_vm2, %v1600_v53  ;;  %v6190_v14 = vsel %vm466_vm1, %v538_v28, %v540_v47  ;;  %v747_v53 = vrot.slane %v6141_v61, 2 }
  0xcb   : > { %1456 = vst.msk [vmem:[#allocation2 + $0x68] sm:$0xff] %vm984_vm5, %v1365_v0  ;;  %v558_v57 = vpop.permute.xlu1 %557  ;;  %8762 = vst [vmem:[#allocation19_spill] sm:$0xff] %v6190_v14 }
  0xcc   : > { %649 = vst.msk [vmem:[#allocation2 + $0x78] sm:$0xff] %vm643_vm3, %v558_v57  ;;  %1250 = vrot.lane.b32.xlu0 %v5802_v27, %s5199_s24 }
  0xcd   : > { %916 = vrot.lane.b32.xlu1 %v5691_v54, %s5201_s29  ;;  %1082 = vst.msk [vmem:[#allocation2 + $0x290] sm:$0xff] %vm385_vm2, %v6190_v14 }
  0xce   : > { %v1103_v0 = vpop.permute.xlu0 %1102 }
  0xcf   : > { %1193 = vst.msk [vmem:[#allocation2 + $0x80] sm:$0xff] %vm643_vm3, %v1103_v0  ;;  %v768_v63 = vpop.permute.xlu1 %767  ;;  %v1565_v39 = vld [vmem:[#allocation2 + $0x60] sm:$0xff]  ;;  %v748_v0 = vrot.slane %v6149_v56, 2 }
  0xd0   : > { %859 = vst.msk [vmem:[#allocation2 + $0x78] sm:$0xff] %vm853_vm4, %v768_v63  ;;  %1384 = vrot.lane.b32.xlu0 %v5825_v31, %s5201_s29 }
  0xd1   : > { %577 = vrot.lane.b32.xlu1 %v5685_v50, %s5200_s28  ;;  %v6203_v47 = vsel %vm676_vm0, %v747_v53, %v748_v0 }
  0xd2   : > { %v1233_v12 = vpop.permute.xlu0 %1232  ;;  %v1566_v57 = vld [vmem:[#allocation2 + $0x68] sm:$0xff]  ;;  %1545 = vst.msk [vmem:[#allocation2 + $0x250] sm:$0xff] %vm385_vm2, %v6203_v47 }
  0xd3   : > { %1323 = vst.msk [vmem:[#allocation2 + $0x80] sm:$0xff] %vm853_vm4, %v1233_v12  ;;  %v899_v54 = vpop.permute.xlu1 %898  ;;  %1872 = vmatprep.mubr.f32.mxu0 %v1566_v57  ;;  %v6214_v12 = vld [vmem:[%s5364_s26 + $0x168] sm:$0xff]  ;;  %v6222_v57 = vld [vmem:[%s5364_s26 + $0x170] sm:$0xff] }
  0xd4   : > { %990 = vst.msk [vmem:[#allocation2 + $0x78] sm:$0xff] %vm984_vm5, %v899_v54  ;;  %1122 = vrot.lane.b32.xlu0 %v5835_v11, %s5200_s28  ;;  %1873 = vmatmul.mubr.f32.gmra.mrb[8].mxu0 %v1565_v39  ;;  %v542_v54 = vrot.slane %v6214_v12, 1  ;;  %v543_v53 = vrot.slane %v6222_v57, 1 }
  0xd5   : > { %787 = vrot.lane.b32.xlu1 %v5738_v26, %s5199_s24  ;;  %416 = vst.msk [vmem:[#allocation2 + $0x2d0] sm:$0xff] %vm385_vm2, %v6214_v12  ;;  %417 = vst.msk [vmem:[#allocation2 + $0x2e8] sm:$0xff] %vm385_vm2, %v6222_v57 }
  0xd6   : > { %v1367_v28 = vpop.permute.xlu0 %1366 }
  0xd7   : > { %1457 = vst.msk [vmem:[#allocation2 + $0x80] sm:$0xff] %vm984_vm5, %v1367_v28  ;;  %v560_v63 = vpop.permute.xlu1 %559 }
  0xd8   : > { %650 = vst.msk [vmem:[#allocation2 + $0x90] sm:$0xff] %vm643_vm3, %v560_v63  ;;  %1252 = vrot.lane.b32.xlu0 %v5809_v25, %s5199_s24 }
  0xd9   : > { %918 = vrot.lane.b32.xlu1 %v5704_v60, %s5201_s29 }
  0xda   : > { %v1105_v26 = vpop.permute.xlu0 %1104 }
  0xdb   : > { %1194 = vst.msk [vmem:[#allocation2 + $0x98] sm:$0xff] %vm643_vm3, %v1105_v26  ;;  %v770_v39 = vpop.permute.xlu1 %769  ;;  %v1568_v60 = vld [vmem:[#allocation2 + $0x78] sm:$0xff] }
  0xdc   : > { %860 = vst.msk [vmem:[#allocation2 + $0x90] sm:$0xff] %vm853_vm4, %v770_v39  ;;  %1386 = vrot.lane.b32.xlu0 %v5851_v17, %s5201_s29  ;;  %v6232_v39 = vsel %vm466_vm1, %v542_v54, %v543_v53  ;;  %v1603_v54 = vld [vmem:[#allocation2 + $0x190] sm:$0xff] }
  0xdd   : > { %579 = vrot.lane.b32.xlu1 %v5720_v48, %s5200_s28  ;;  %8763 = vst [vmem:[#allocation20_spill] sm:$0xff] %v6232_v39  ;;  %1083 = vst.msk [vmem:[#allocation2 + $0x2a8] sm:$0xff] %vm385_vm2, %v6232_v39  ;;  %v750_v48 = vrot.slane %v375_v30, 2  ;;  %4859 = vmatprep.mubr.msk.f32.mxu1 %vm385_vm2, %v1603_v54  ;;  %v378_v30 = vld [vmem:[%s5364_s26 + $0x178] sm:$0x3] }
  0xde   : > { %v1235_v28 = vpop.permute.xlu0 %1234  ;;  %v1569_v63 = vld [vmem:[#allocation2 + $0x80] sm:$0xff] }
  0xdf   : > { %1324 = vst.msk [vmem:[#allocation2 + $0x98] sm:$0xff] %vm853_vm4, %v1235_v28  ;;  %v901_v26 = vpop.permute.xlu1 %900  ;;  %1877 = vmatprep.mubr.f32.mxu0 %v1569_v63  ;;  %v6243_v63 = vsel %vm676_vm0, %v748_v0, %v750_v48 }
  0xe0   : > { %991 = vst.msk [vmem:[#allocation2 + $0x90] sm:$0xff] %vm984_vm5, %v901_v26  ;;  %1124 = vrot.lane.b32.xlu0 %v5862_v62, %s5200_s28  ;;  %1878 = vmatmul.mubr.f32.gmra.mrb[10].mxu0 %v1568_v60  ;;  %v545_v60 = vrot.slane %v378_v30, 1 }
  0xe1   : > { %789 = vrot.lane.b32.xlu1 %v5786_v52, %s5199_s24  ;;  %1546 = vst.msk [vmem:[#allocation2 + $0x268] sm:$0xff] %vm385_vm2, %v6243_v63  ;;  %v1606_v52 = vld [vmem:[#allocation2 + $0x1a8] sm:$0xff] }
  0xe2   : > { %v1369_v50 = vpop.permute.xlu0 %1368  ;;  %4860 = vmatmul.mubr.msk.f32.gmra.mrb[16].mxu1 %vm385_vm2, %v1606_v52  ;;  %v6263_v54 = vsel %vm466_vm1, %v543_v53, %v545_v60  ;;  %v752_v52 = vrot.slane %v6214_v12, 2 }
  0xe3   : > { %1458 = vst.msk [vmem:[#allocation2 + $0x98] sm:$0xff] %vm984_vm5, %v1369_v50  ;;  %v562_v28 = vpop.permute.xlu1 %561  ;;  %8764 = vst [vmem:[#allocation21_spill] sm:$0xff] %v6263_v54 }
  0xe4   : > { %651 = vst.msk [vmem:[#allocation2 + $0xa8] sm:$0xff] %vm643_vm3, %v562_v28  ;;  %1254 = vrot.lane.b32.xlu0 %v5871_v3, %s5199_s24 }
  0xe5   : > { %920 = vrot.lane.b32.xlu1 %v5802_v27, %s5201_s29  ;;  %1084 = vst.msk [vmem:[#allocation2 + $0x2c0] sm:$0xff] %vm385_vm2, %v6263_v54 }
  0xe6   : > { %v1107_v50 = vpop.permute.xlu0 %1106 }
  0xe7   : > { %1195 = vst.msk [vmem:[#allocation2 + $0xb0] sm:$0xff] %vm643_vm3, %v1107_v50  ;;  %v772_v48 = vpop.permute.xlu1 %771  ;;  %v1571_v0 = vld [vmem:[#allocation2 + $0x90] sm:$0xff]  ;;  %v753_v50 = vrot.slane %v6222_v57, 2 }
  0xe8   : > { %861 = vst.msk [vmem:[#allocation2 + $0xa8] sm:$0xff] %vm853_vm4, %v772_v48  ;;  %1388 = vrot.lane.b32.xlu0 %v5887_v44, %s5201_s29 }
  0xe9   : > { %581 = vrot.lane.b32.xlu1 %v5768_v20, %s5200_s28  ;;  %v6276_v60 = vsel %vm676_vm0, %v752_v52, %v753_v50  ;;  %v1609_v20 = vld [vmem:[#allocation2 + $0x1c0] sm:$0xff] }
  0xea   : > { %v1237_v26 = vpop.permute.xlu0 %1236  ;;  %v1572_v28 = vld [vmem:[#allocation2 + $0x98] sm:$0xff]  ;;  %1547 = vst.msk [vmem:[#allocation2 + $0x280] sm:$0xff] %vm385_vm2, %v6276_v60  ;;  %4862 = vmatprep.mubr.msk.f32.mxu1 %vm385_vm2, %v1609_v20 }
  0xeb   : > { %1325 = vst.msk [vmem:[#allocation2 + $0xb0] sm:$0xff] %vm853_vm4, %v1237_v26  ;;  %v903_v27 = vpop.permute.xlu1 %902  ;;  %1882 = vmatprep.mubr.f32.mxu0 %v1572_v28  ;;  %v6287_v26 = vld [vmem:[%s5364_s26 + $0x180] sm:$0xff] }
  0xec   : > { %992 = vst.msk [vmem:[#allocation2 + $0xa8] sm:$0xff] %vm984_vm5, %v903_v27  ;;  %1126 = vrot.lane.b32.xlu0 %v5896_v22, %s5200_s28  ;;  %1883 = vmatmul.mubr.f32.gmra.mrb[12].mxu0 %v1571_v0  ;;  %v1018_v28 = vrot.slane %v6287_v26, 1  ;;  %v6294_v27 = vld [vmem:[%s5364_s26 + $0x188] sm:$0xff] }
  0xed   : > { %791 = vrot.lane.b32.xlu1 %v5835_v11, %s5199_s24 }
  0xee   : > { %v1371_v53 = vpop.permute.xlu0 %1370 }
  0xef   : > { %1459 = vst.msk [vmem:[#allocation2 + $0xb0] sm:$0xff] %vm984_vm5, %v1371_v53  ;;  %v564_v48 = vpop.permute.xlu1 %563 }
  0xf0   : > { %652 = vst.msk [vmem:[#allocation2 + $0xc0] sm:$0xff] %vm643_vm3, %v564_v48  ;;  %1256 = vrot.lane.b32.xlu0 %v5878_v18, %s5199_s24 }
  0xf1   : > { %922 = vrot.lane.b32.xlu1 %v5809_v25, %s5201_s29  ;;  %v1019_v25 = vrot.slane %v6294_v27, 1 }
  0xf2   : > { %v1109_v11 = vpop.permute.xlu0 %1108 }
  0xf3   : > { %1196 = vst.msk [vmem:[#allocation2 + $0xc8] sm:$0xff] %vm643_vm3, %v1109_v11  ;;  %v774_v0 = vpop.permute.xlu1 %773  ;;  %v1574_v52 = vld [vmem:[#allocation2 + $0xa8] sm:$0xff] }
  0xf4   : > { %862 = vst.msk [vmem:[#allocation2 + $0xc0] sm:$0xff] %vm853_vm4, %v774_v0  ;;  %1390 = vrot.lane.b32.xlu0 %v5912_v33, %s5201_s29  ;;  %v6303_v0 = vsel %vm466_vm1, %v1018_v28, %v1019_v25 }
  0xf5   : > { %583 = vrot.lane.b32.xlu1 %v5825_v31, %s5200_s28  ;;  %8765 = vst [vmem:[#allocation22_spill] sm:$0xff] %v6303_v0  ;;  %1085 = vst.msk [vmem:[#allocation2 + $0x2d8] sm:$0xff] %vm385_vm2, %v6303_v0 }
  0xf6   : > { %v1239_v53 = vpop.permute.xlu0 %1238  ;;  %v1575_v48 = vld [vmem:[#allocation2 + $0xb0] sm:$0xff] }
  0xf7   : > { %1326 = vst.msk [vmem:[#allocation2 + $0xc8] sm:$0xff] %vm853_vm4, %v1239_v53  ;;  %v905_v11 = vpop.permute.xlu1 %904  ;;  %1887 = vmatprep.mubr.f32.mxu0 %v1575_v48  ;;  %v755_v53 = vrot.slane %v378_v30, 2  ;;  %v6402_v30 = vld [vmem:[%s5364_s26 + $0x190] sm:$0x3] }
  0xf8   : > { %993 = vst.msk [vmem:[#allocation2 + $0xc0] sm:$0xff] %vm984_vm5, %v905_v11  ;;  %1128 = vrot.lane.b32.xlu0 %v5923_v32, %s5200_s28  ;;  %1888 = vmatmul.mubr.f32.gmra.mrb[14].mxu0 %v1574_v52  ;;  %v1021_v52 = vrot.slane %v6402_v30, 1 }
  0xf9   : > { %793 = vrot.lane.b32.xlu1 %v5862_v62, %s5199_s24  ;;  %v6314_v28 = vsel %vm676_vm0, %v753_v50, %v755_v53  ;;  %v1612_v62 = vld [vmem:[#allocation2 + $0x1d8] sm:$0xff] }
  0xfa   : > { %v1373_v31 = vpop.permute.xlu0 %1372  ;;  %1548 = vst.msk [vmem:[#allocation2 + $0x298] sm:$0xff] %vm385_vm2, %v6314_v28  ;;  %4863 = vmatmul.mubr.msk.f32.gmra.mrb[18].mxu1 %vm385_vm2, %v1612_v62  ;;  %v1087_v62 = vrot.slane %v6287_v26, 2 }
  0xfb   : > { %1460 = vst.msk [vmem:[#allocation2 + $0xc8] sm:$0xff] %vm984_vm5, %v1373_v31  ;;  %v566_v48 = vpop.permute.xlu1 %565  ;;  %v8729_v31 = vmov 0.0  }
  0xfc   : > { %653 = vst.msk [vmem:[#allocation2 + $0xd8] sm:$0xff] %vm643_vm3, %v566_v48  ;;  %1258 = vrot.lane.b32.xlu0 %v5932_v15, %s5199_s24 }
  0xfd   : > { %924 = vrot.lane.b32.xlu1 %v5871_v3, %s5201_s29  ;;  %2274 = vst.msk [vmem:[#allocation3 + $0x18] sm:$0xff] %vm385_vm2, %v8729_v31  ;;  %2275 = vst.msk [vmem:[#allocation3 + $0x20] sm:$0xff] %vm385_vm2, %v8729_v31 }
  0xfe   : > { %2270 = vst.msk [vmem:[#allocation3] sm:$0xff] %vm385_vm2, %v8729_v31  ;;  %2271 = vst.msk [vmem:[#allocation3 + $0x8] sm:$0xff] %vm385_vm2, %v8729_v31  ;;  %v1111_v20 = vpop.permute.xlu0 %1110 }
  0xff   : > { %2277 = vst.msk [vmem:[#allocation3 + $0x30] sm:$0xff] %vm385_vm2, %v8729_v31  ;;  %2278 = vst.msk [vmem:[#allocation3 + $0x38] sm:$0xff] %vm385_vm2, %v8729_v31  ;;  %v776_v3 = vpop.permute.xlu1 %775  ;;  %v1577_v50 = vld [vmem:[#allocation2 + $0xc0] sm:$0xff] }
 0x100   : > { %2280 = vst.msk [vmem:[#allocation3 + $0x48] sm:$0xff] %vm385_vm2, %v8729_v31  ;;  %2281 = vst.msk [vmem:[#allocation3 + $0x50] sm:$0xff] %vm385_vm2, %v8729_v31  ;;  %1392 = vrot.lane.b32.xlu0 %v5948_v51, %s5201_s29 }
 0x101   : > { %2283 = vst.msk [vmem:[#allocation3 + $0x60] sm:$0xff] %vm385_vm2, %v8729_v31  ;;  %2284 = vst.msk [vmem:[#allocation3 + $0x68] sm:$0xff] %vm385_vm2, %v8729_v31  ;;  %585 = vrot.lane.b32.xlu1 %v5851_v17, %s5200_s28 }
 0x102   : > { %2286 = vst.msk [vmem:[#allocation3 + $0x78] sm:$0xff] %vm385_vm2, %v8729_v31  ;;  %2287 = vst.msk [vmem:[#allocation3 + $0x80] sm:$0xff] %vm385_vm2, %v8729_v31  ;;  %v1241_v11 = vpop.permute.xlu0 %1240  ;;  %v1578_v53 = vld [vmem:[#allocation2 + $0xc8] sm:$0xff] }
 0x103   : > { %2289 = vst.msk [vmem:[#allocation3 + $0x90] sm:$0xff] %vm385_vm2, %v8729_v31  ;;  %2290 = vst.msk [vmem:[#allocation3 + $0x98] sm:$0xff] %vm385_vm2, %v8729_v31  ;;  %v907_v48 = vpop.permute.xlu1 %906  ;;  %1892 = vmatprep.mubr.f32.mxu0 %v1578_v53 }
 0x104   : > { %2292 = vst.msk [vmem:[#allocation3 + $0xa8] sm:$0xff] %vm385_vm2, %v8729_v31  ;;  %2293 = vst.msk [vmem:[#allocation3 + $0xb0] sm:$0xff] %vm385_vm2, %v8729_v31  ;;  %1130 = vrot.lane.b32.xlu0 %v5957_v38, %s5200_s28  ;;  %1893 = vmatmul.mubr.f32.gmra.mrb[16].mxu0 %v1577_v50  ;;  %v6471_v50 = vld [vmem:[%s5364_s26 + $0x198] sm:$0xff] }
 0x105   : > { %2295 = vst.msk [vmem:[#allocation3 + $0xc0] sm:$0xff] %vm385_vm2, %v8729_v31  ;;  %2296 = vst.msk [vmem:[#allocation3 + $0xc8] sm:$0xff] %vm385_vm2, %v8729_v31  ;;  %795 = vrot.lane.b32.xlu1 %v5896_v22, %s5199_s24 }
 0x106   : > { %2298 = vst.msk [vmem:[#allocation3 + $0xd8] sm:$0xff] %vm385_vm2, %v8729_v31  ;;  %2299 = vst.msk [vmem:[#allocation3 + $0xe0] sm:$0xff] %vm385_vm2, %v8729_v31 }
 0x107   : > { %2301 = vst.msk [vmem:[#allocation3 + $0xf0] sm:$0xff] %vm385_vm2, %v8729_v31  ;;  %2302 = vst.msk [vmem:[#allocation3 + $0xf8] sm:$0xff] %vm385_vm2, %v8729_v31  ;;  %v568_v53 = vpop.permute.xlu1 %567 }
 0x108   : > { %2304 = vst.msk [vmem:[#allocation3 + $0x108] sm:$0xff] %vm385_vm2, %v8729_v31  ;;  %2305 = vst.msk [vmem:[#allocation3 + $0x110] sm:$0xff] %vm385_vm2, %v8729_v31  ;;  %1260 = vrot.lane.b32.xlu0 %v5939_v34, %s5199_s24 }
 0x109   : > { %2307 = vst.msk [vmem:[#allocation3 + $0x120] sm:$0xff] %vm385_vm2, %v8729_v31  ;;  %2308 = vst.msk [vmem:[#allocation3 + $0x128] sm:$0xff] %vm385_vm2, %v8729_v31  ;;  %926 = vrot.lane.b32.xlu1 %v5878_v18, %s5201_s29 }
 0x10a   : > { %2310 = vst.msk [vmem:[#allocation3 + $0x138] sm:$0xff] %vm385_vm2, %v8729_v31  ;;  %2311 = vst.msk [vmem:[#allocation3 + $0x140] sm:$0xff] %vm385_vm2, %v8729_v31 }
 0x10b   : > { %2313 = vst.msk [vmem:[#allocation3 + $0x150] sm:$0xff] %vm385_vm2, %v8729_v31  ;;  %2314 = vst.msk [vmem:[#allocation3 + $0x158] sm:$0xff] %vm385_vm2, %v8729_v31  ;;  %v778_v22 = vpop.permute.xlu1 %777 }
 0x10c   : > { %2316 = vst.msk [vmem:[#allocation3 + $0x168] sm:$0xff] %vm385_vm2, %v8729_v31  ;;  %2317 = vst.msk [vmem:[#allocation3 + $0x170] sm:$0xff] %vm385_vm2, %v8729_v31  ;;  %1394 = vrot.lane.b32.xlu0 %v5973_v5, %s5201_s29 }
 0x10d   : > { %2319 = vst.msk [vmem:[#allocation3 + $0x180] sm:$0xff] %vm385_vm2, %v8729_v31  ;;  %2320 = vst.msk [vmem:[#allocation3 + $0x188] sm:$0xff] %vm385_vm2, %v8729_v31  ;;  %587 = vrot.lane.b32.xlu1 %v5887_v44, %s5200_s28 }
 0x10e   : > { %2322 = vst.msk [vmem:[#allocation3 + $0x198] sm:$0xff] %vm385_vm2, %v8729_v31  ;;  %2323 = vst.msk [vmem:[#allocation3 + $0x1a0] sm:$0xff] %vm385_vm2, %v8729_v31 }
 0x10f   : > { %1197 = vst.msk [vmem:[#allocation2 + $0xe0] sm:$0xff] %vm643_vm3, %v1111_v20  ;;  %v6412_v20 = vsel %vm466_vm1, %v1019_v25, %v1021_v52  ;;  %654 = vst.msk [vmem:[#allocation2 + $0xf0] sm:$0xff] %vm643_vm3, %v568_v53  ;;  %v6477_v52 = vld [vmem:[%s5364_s26 + $0x1a0] sm:$0xff] }
 0x110   : > { %863 = vst.msk [vmem:[#allocation2 + $0xd8] sm:$0xff] %vm853_vm4, %v776_v3  ;;  %1327 = vst.msk [vmem:[#allocation2 + $0xe0] sm:$0xff] %vm853_vm4, %v1241_v11  ;;  %v1088_v3 = vrot.slane %v6294_v27, 2  ;;  %v1375_v11 = vpop.permute.xlu0 %1374  ;;  %v8735_v53 = vrot.slane %v6477_v52, 2  ;;  %1132 = vrot.lane.b32.xlu0 %v5984_v19, %s5200_s28 }
 0x111   : > { %8766 = vst [vmem:[#allocation23_spill] sm:$0xff] %v6412_v20  ;;  %994 = vst.msk [vmem:[#allocation2 + $0xd8] sm:$0xff] %vm984_vm5, %v907_v48  ;;  %v1484_v48 = vrot.slane %v6471_v50, 2  ;;  %797 = vrot.lane.b32.xlu1 %v5923_v32, %s5199_s24 }
 0x112   : > { %1086 = vst.msk [vmem:[#allocation2 + $0x2f0] sm:$0xff] %vm385_vm2, %v6412_v20  ;;  %v6424_v25 = vsel %vm676_vm0, %v1087_v62, %v1088_v3 }
 0x113   : > { %1461 = vst.msk [vmem:[#allocation2 + $0xe0] sm:$0xff] %vm984_vm5, %v1375_v11  ;;  %v6482_v11 = vpop.f32.mrb[0].mxu1  ;;  %v1486_v42 = vsel %vm676_vm0, %v1484_v48, %v8735_v53 }
 0x114   : > { %1549 = vst.msk [vmem:[#allocation2 + $0x2b0] sm:$0xff] %vm385_vm2, %v6424_v25  ;;  %v1113_v18 = vpop.permute.xlu0 %1112  ;;  %v6485_v17 = vpop.f32.mrb[1].mxu1  ;;  %1551 = vst.msk [vmem:[#allocation2 + $0x2e0] sm:$0xff] %vm385_vm2, %v1486_v42  ;;  %1262 = vrot.lane.b32.xlu0 %v5994_v24, %s5199_s24  ;;  %v1618_v42 = vld [vmem:[#allocation2 + $0x208] sm:$0xff] }
 0x115   : > { %2276 = vst.msk [vmem:[#allocation3 + $0x28] sm:$0x3] %vm2272_vm6, %v8729_v31  ;;  %2273 = vst.msk [vmem:[#allocation3 + $0x10] sm:$0x3] %vm2272_vm6, %v8729_v31  ;;  %v6497_v44 = vpop.f32.mrb[2].mxu1  ;;  %928 = vrot.lane.b32.xlu1 %v5932_v15, %s5201_s29 }
 0x116   : > { %2279 = vst.msk [vmem:[#allocation3 + $0x40] sm:$0x3] %vm2272_vm6, %v8729_v31  ;;  %2282 = vst.msk [vmem:[#allocation3 + $0x58] sm:$0x3] %vm2272_vm6, %v8729_v31  ;;  %v6500_v8 = vpop.f32.mrb[3].mxu1 }
 0x117   : > { %2285 = vst.msk [vmem:[#allocation3 + $0x70] sm:$0x3] %vm2272_vm6, %v8729_v31  ;;  %2288 = vst.msk [vmem:[#allocation3 + $0x88] sm:$0x3] %vm2272_vm6, %v8729_v31 }
 0x118   : > { %2291 = vst.msk [vmem:[#allocation3 + $0xa0] sm:$0x3] %vm2272_vm6, %v8729_v31  ;;  %2294 = vst.msk [vmem:[#allocation3 + $0xb8] sm:$0x3] %vm2272_vm6, %v8729_v31  ;;  %v1580_v62 = vld [vmem:[#allocation2 + $0xd8] sm:$0xff]  ;;  %1396 = vrot.lane.b32.xlu0 %v6012_v2, %s5201_s29 }
 0x119   : > { %2297 = vst.msk [vmem:[#allocation3 + $0xd0] sm:$0x3] %vm2272_vm6, %v8729_v31  ;;  %2300 = vst.msk [vmem:[#allocation3 + $0xe8] sm:$0x3] %vm2272_vm6, %v8729_v31  ;;  %589 = vrot.lane.b32.xlu1 %v5912_v33, %s5200_s28 }
 0x11a   : > { %2303 = vst.msk [vmem:[#allocation3 + $0x100] sm:$0x3] %vm2272_vm6, %v8729_v31  ;;  %2306 = vst.msk [vmem:[#allocation3 + $0x118] sm:$0x3] %vm2272_vm6, %v8729_v31 }
 0x11b   : > { %2309 = vst.msk [vmem:[#allocation3 + $0x130] sm:$0x3] %vm2272_vm6, %v8729_v31  ;;  %2312 = vst.msk [vmem:[#allocation3 + $0x148] sm:$0x3] %vm2272_vm6, %v8729_v31 }
 0x11c   : > { %2315 = vst.msk [vmem:[#allocation3 + $0x160] sm:$0x3] %vm2272_vm6, %v8729_v31  ;;  %2318 = vst.msk [vmem:[#allocation3 + $0x178] sm:$0x3] %vm2272_vm6, %v8729_v31  ;;  %1134 = vrot.lane.b32.xlu0 %v6024_v13, %s5200_s28 }
 0x11d   : > { %2321 = vst.msk [vmem:[#allocation3 + $0x190] sm:$0x3] %vm2272_vm6, %v8729_v31  ;;  %2324 = vst.msk [vmem:[#allocation3 + $0x1a8] sm:$0x3] %vm2272_vm6, %v8729_v31  ;;  %v1581_v31 = vld [vmem:[#allocation2 + $0xe0] sm:$0xff]  ;;  %799 = vrot.lane.b32.xlu1 %v5957_v38, %s5199_s24 }
 0x11e   : > { %1198 = vst.msk [vmem:[#allocation2 + $0xf8] sm:$0xff] %vm643_vm3, %v1113_v18  ;;  %v1243_v18 = vpop.permute.xlu0 %1242  ;;  %1897 = vmatprep.mubr.f32.mxu0 %v1581_v31 }
 0x11f   : > { %864 = vst.msk [vmem:[#allocation2 + $0xf0] sm:$0xff] %vm853_vm4, %v778_v22  ;;  %1328 = vst.msk [vmem:[#allocation2 + $0xf8] sm:$0xff] %vm853_vm4, %v1243_v18  ;;  %v909_v22 = vpop.permute.xlu1 %908  ;;  %1898 = vmatmul.mubr.f32.gmra.mrb[18].mxu0 %v1580_v62  ;;  %v1090_v18 = vrot.slane %v6402_v30, 2  ;;  %v2358_v62 = vld [vmem:[#allocation3] sm:$0xff] }
 0x120   : > { %995 = vst.msk [vmem:[#allocation2 + $0xf0] sm:$0xff] %vm984_vm5, %v909_v22  ;;  %v1615_v22 = vld [vmem:[#allocation2 + $0x1f0] sm:$0xff]  ;;  %v2700_v33 = vrot.slane %v2358_v62, 2  ;;  %1264 = vrot.lane.b32.xlu0 %v6002_v45, %s5199_s24 }
 0x121   : > { %v6504_v53 = vsel %vm676_vm0, %v1088_v3, %v1090_v18  ;;  %4865 = vmatprep.mubr.msk.f32.mxu1 %vm385_vm2, %v1615_v22  ;;  %v6521_v18 = vld [vmem:[#allocation3 + $0x8] sm:$0xff]  ;;  %2412 = vst.msk [vmem:[#allocation2] sm:$0xff] %vm385_vm2, %v2358_v62  ;;  %930 = vrot.lane.b32.xlu1 %v5939_v34, %s5201_s29  ;;  %v6562_v34 = vpop.f32.mrb[4].mxu1 }
 0x122   : > { %v1377_v31 = vpop.permute.xlu0 %1376  ;;  %1550 = vst.msk [vmem:[#allocation2 + $0x2c8] sm:$0xff] %vm385_vm2, %v6504_v53  ;;  %4866 = vmatmul.mubr.msk.f32.gmra.mrb[20].mxu1 %vm385_vm2, %v1618_v42  ;;  %v2493_v22 = vrot.slane %v6521_v18, 1  ;;  %2413 = vst.msk [vmem:[#allocation2 + $0x18] sm:$0xff] %vm385_vm2, %v6521_v18 }
 0x123   : > { %1462 = vst.msk [vmem:[#allocation2 + $0xf8] sm:$0xff] %vm984_vm5, %v1377_v31  ;;  %v570_v48 = vpop.permute.xlu1 %569 }
 0x124   : > { %655 = vst.msk [vmem:[#allocation2 + $0x108] sm:$0xff] %vm643_vm3, %v570_v48  ;;  %v2492_v48 = vrot.slane %v2358_v62, 1  ;;  %1398 = vrot.lane.b32.xlu0 %v6044_v36, %s5201_s29 }
 0x125   : > { %591 = vrot.lane.b32.xlu1 %v5948_v51, %s5200_s28 }
 0x126   : > { %v1115_v32 = vpop.permute.xlu0 %1114 }
 0x127   : > { %1199 = vst.msk [vmem:[#allocation2 + $0x110] sm:$0xff] %vm643_vm3, %v1115_v32  ;;  %v780_v30 = vpop.permute.xlu1 %779  ;;  %v1583_v3 = vld [vmem:[#allocation2 + $0xf0] sm:$0xff]  ;;  %v6534_v32 = vsel %vm466_vm1, %v2492_v48, %v2493_v22 }
 0x128   : > { %865 = vst.msk [vmem:[#allocation2 + $0x108] sm:$0xff] %vm853_vm4, %v780_v30  ;;  %1136 = vrot.lane.b32.xlu0 %v6057_v55, %s5200_s28 }
 0x129   : > { %801 = vrot.lane.b32.xlu1 %v5984_v19, %s5199_s24 }
 0x12a   : > { %v1245_v31 = vpop.permute.xlu0 %1244  ;;  %v1584_v15 = vld [vmem:[#allocation2 + $0xf8] sm:$0xff] }
 0x12b   : > { %1329 = vst.msk [vmem:[#allocation2 + $0x110] sm:$0xff] %vm853_vm4, %v1245_v31  ;;  %v911_v42 = vpop.permute.xlu1 %910  ;;  %1902 = vmatprep.mubr.f32.mxu0 %v1584_v15  ;;  %v8737_v31 = vrot.slane %v6521_v18, 2 }
 0x12c   : > { %996 = vst.msk [vmem:[#allocation2 + $0x108] sm:$0xff] %vm984_vm5, %v911_v42  ;;  %1903 = vmatmul.mubr.f32.gmra.mrb[20].mxu0 %v1583_v3  ;;  %1266 = vrot.lane.b32.xlu0 %v6068_v16, %s5199_s24 }
 0x12d   : > { %v6546_v3 = vsel %vm676_vm0, %v2700_v33, %v8737_v31  ;;  %932 = vrot.lane.b32.xlu1 %v5994_v24, %s5201_s29  ;;  %v3702_v31 = vld [vmem:[%s8716_s3 + $0x100] sm:$0xff] }
 0x12e   : > { %v1379_v30 = vpop.permute.xlu0 %1378 }
 0x12f   : > { %1463 = vst.msk [vmem:[#allocation2 + $0x110] sm:$0xff] %vm984_vm5, %v1379_v30  ;;  %v572_v15 = vpop.permute.xlu1 %571 }
 0x130   : > { %656 = vst.msk [vmem:[#allocation2 + $0x120] sm:$0xff] %vm643_vm3, %v572_v15  ;;  %1400 = vrot.lane.b32.xlu0 %v6086_v23, %s5201_s29 }
 0x131   : > { %593 = vrot.lane.b32.xlu1 %v5973_v5, %s5200_s28 }
 0x132   : > { %v1117_v38 = vpop.permute.xlu0 %1116 }
 0x133   : > { %1200 = vst.msk [vmem:[#allocation2 + $0x128] sm:$0xff] %vm643_vm3, %v1117_v38  ;;  %v782_v62 = vpop.permute.xlu1 %781  ;;  %v1586_v48 = vld [vmem:[#allocation2 + $0x108] sm:$0xff]  ;;  %v6564_v38 = vpop.f32.mrb[5].mxu1 }
 0x134   : > { %866 = vst.msk [vmem:[#allocation2 + $0x120] sm:$0xff] %vm853_vm4, %v782_v62  ;;  %1138 = vrot.lane.b32.xlu0 %v6097_v58, %s5200_s28 }
 0x135   : > { %803 = vrot.lane.b32.xlu1 %v6024_v13, %s5199_s24 }
 0x136   : > { %v1247_v42 = vpop.permute.xlu0 %1246  ;;  %v1587_v30 = vld [vmem:[#allocation2 + $0x110] sm:$0xff] }
 0x137   : > { %1330 = vst.msk [vmem:[#allocation2 + $0x128] sm:$0xff] %vm853_vm4, %v1247_v42  ;;  %v913_v33 = vpop.permute.xlu1 %912  ;;  %1907 = vmatprep.mubr.f32.mxu0 %v1587_v30  ;;  %v1621_v42 = vld [vmem:[#allocation2 + $0x220] sm:$0xff] }
 0x138   : > { %997 = vst.msk [vmem:[#allocation2 + $0x120] sm:$0xff] %vm984_vm5, %v913_v33  ;;  %1908 = vmatmul.mubr.f32.gmra.mrb[22].mxu0 %v1586_v48  ;;  %4868 = vmatprep.mubr.msk.f32.mxu1 %vm385_vm2, %v1621_v42  ;;  %v1624_v48 = vld [vmem:[#allocation2 + $0x238] sm:$0xff] }
 0x139   : > { %4869 = vmatmul.mubr.msk.f32.gmra.mrb[22].mxu1 %vm385_vm2, %v1624_v48  ;;  %1268 = vrot.lane.b32.xlu0 %v6076_v10, %s5199_s24 }
 0x13a   : > { %v1381_v15 = vpop.permute.xlu0 %1380  ;;  %934 = vrot.lane.b32.xlu1 %v6002_v45, %s5201_s29  ;;  %v6602_v45 = vpop.f32.mrb[6].mxu1 }
 0x13b   : > { %1464 = vst.msk [vmem:[#allocation2 + $0x128] sm:$0xff] %vm984_vm5, %v1381_v15  ;;  %v574_v62 = vpop.permute.xlu1 %573 }
 0x13c   : > { %657 = vst.msk [vmem:[#allocation2 + $0x138] sm:$0xff] %vm643_vm3, %v574_v62 }
 0x13d   : > { %1402 = vrot.lane.b32.xlu0 %v6117_v40, %s5201_s29 }
 0x13e   : > { %v1119_v19 = vpop.permute.xlu0 %1118  ;;  %595 = vrot.lane.b32.xlu1 %v6012_v2, %s5200_s28 }
 0x13f   : > { %1201 = vst.msk [vmem:[#allocation2 + $0x140] sm:$0xff] %vm643_vm3, %v1119_v19  ;;  %v784_v30 = vpop.permute.xlu1 %783  ;;  %v1589_v33 = vld [vmem:[#allocation2 + $0x120] sm:$0xff] }
 0x140   : > { %867 = vst.msk [vmem:[#allocation2 + $0x138] sm:$0xff] %vm853_vm4, %v784_v30 }
 0x141   : > { %1140 = vrot.lane.b32.xlu0 %v6130_v4, %s5200_s28 }
 0x142   : > { %v1249_v15 = vpop.permute.xlu0 %1248  ;;  %v1590_v62 = vld [vmem:[#allocation2 + $0x128] sm:$0xff]  ;;  %805 = vrot.lane.b32.xlu1 %v6057_v55, %s5199_s24 }
 0x143   : > { %1331 = vst.msk [vmem:[#allocation2 + $0x140] sm:$0xff] %vm853_vm4, %v1249_v15  ;;  %v915_v24 = vpop.permute.xlu1 %914  ;;  %1912 = vmatprep.mubr.f32.mxu0 %v1590_v62 }
 0x144   : > { %998 = vst.msk [vmem:[#allocation2 + $0x138] sm:$0xff] %vm984_vm5, %v915_v24  ;;  %1913 = vmatmul.mubr.f32.gmra.mrb[24].mxu0 %v1589_v33  ;;  %v6606_v24 = vpop.f32.mrb[7].mxu1 }
 0x145   : > { %1270 = vrot.lane.b32.xlu0 %v6141_v61, %s5199_s24 }
 0x146   : > { %v1383_v42 = vpop.permute.xlu0 %1382  ;;  %936 = vrot.lane.b32.xlu1 %v6068_v16, %s5201_s29 }
 0x147   : > { %1465 = vst.msk [vmem:[#allocation2 + $0x140] sm:$0xff] %vm984_vm5, %v1383_v42  ;;  %v576_v48 = vpop.permute.xlu1 %575 }
 0x148   : > { %658 = vst.msk [vmem:[#allocation2 + $0x150] sm:$0xff] %vm643_vm3, %v576_v48 }
 0x149   : > { %1404 = vrot.lane.b32.xlu0 %v6159_v43, %s5201_s29 }
 0x14a   : > { %v1121_v19 = vpop.permute.xlu0 %1120  ;;  %597 = vrot.lane.b32.xlu1 %v6044_v36, %s5200_s28 }
 0x14b   : > { %1202 = vst.msk [vmem:[#allocation2 + $0x158] sm:$0xff] %vm643_vm3, %v1121_v19  ;;  %v786_v30 = vpop.permute.xlu1 %785  ;;  %v1592_v13 = vld [vmem:[#allocation2 + $0x138] sm:$0xff]  ;;  %v1627_v19 = vld [vmem:[#allocation2 + $0x250] sm:$0xff] }
 0x14c   : > { %868 = vst.msk [vmem:[#allocation2 + $0x150] sm:$0xff] %vm853_vm4, %v786_v30  ;;  %4871 = vmatprep.mubr.msk.f32.mxu1 %vm385_vm2, %v1627_v19  ;;  %v1630_v30 = vld [vmem:[#allocation2 + $0x268] sm:$0xff] }
 0x14d   : > { %4872 = vmatmul.mubr.msk.f32.gmra.mrb[24].mxu1 %vm385_vm2, %v1630_v30  ;;  %1142 = vrot.lane.b32.xlu0 %v6170_v37, %s5200_s28 }
 0x14e   : > { %v1251_v33 = vpop.permute.xlu0 %1250  ;;  %v1593_v15 = vld [vmem:[#allocation2 + $0x140] sm:$0xff]  ;;  %807 = vrot.lane.b32.xlu1 %v6097_v58, %s5199_s24 }
 0x14f   : > { %1332 = vst.msk [vmem:[#allocation2 + $0x158] sm:$0xff] %vm853_vm4, %v1251_v33  ;;  %v917_v62 = vpop.permute.xlu1 %916  ;;  %1917 = vmatprep.mubr.f32.mxu0 %v1593_v15 }
 0x150   : > { %999 = vst.msk [vmem:[#allocation2 + $0x150] sm:$0xff] %vm984_vm5, %v917_v62  ;;  %1918 = vmatmul.mubr.f32.gmra.mrb[26].mxu0 %v1592_v13 }
 0x151   : > { %1272 = vrot.lane.b32.xlu0 %v6149_v56, %s5199_s24 }
 0x152   : > { %v1385_v42 = vpop.permute.xlu0 %1384  ;;  %938 = vrot.lane.b32.xlu1 %v6076_v10, %s5201_s29  ;;  %v6644_v10 = vpop.f32.mrb[8].mxu1 }
 0x153   : > { %1466 = vst.msk [vmem:[#allocation2 + $0x158] sm:$0xff] %vm984_vm5, %v1385_v42  ;;  %v578_v48 = vpop.permute.xlu1 %577 }
 0x154   : > { %659 = vst.msk [vmem:[#allocation2 + $0x168] sm:$0xff] %vm643_vm3, %v578_v48 }
 0x155   : > { %1406 = vrot.lane.b32.xlu0 %v6190_v14, %s5201_s29 }
 0x156   : > { %v1123_v13 = vpop.permute.xlu0 %1122  ;;  %599 = vrot.lane.b32.xlu1 %v6086_v23, %s5200_s28 }
 0x157   : > { %1203 = vst.msk [vmem:[#allocation2 + $0x170] sm:$0xff] %vm643_vm3, %v1123_v13  ;;  %v788_v55 = vpop.permute.xlu1 %787  ;;  %v1595_v33 = vld [vmem:[#allocation2 + $0x150] sm:$0xff] }
 0x158   : > { %869 = vst.msk [vmem:[#allocation2 + $0x168] sm:$0xff] %vm853_vm4, %v788_v55 }
 0x159   : > { %1144 = vrot.lane.b32.xlu0 %v6203_v47, %s5200_s28 }
 0x15a   : > { %v1253_v15 = vpop.permute.xlu0 %1252  ;;  %v1596_v16 = vld [vmem:[#allocation2 + $0x158] sm:$0xff]  ;;  %809 = vrot.lane.b32.xlu1 %v6130_v4, %s5199_s24 }
 0x15b   : > { %1333 = vst.msk [vmem:[#allocation2 + $0x170] sm:$0xff] %vm853_vm4, %v1253_v15  ;;  %v919_v62 = vpop.permute.xlu1 %918  ;;  %1922 = vmatprep.mubr.f32.mxu0 %v1596_v16  ;;  %v6648_v15 = vpop.f32.mrb[9].mxu1 }
 0x15c   : > { %1000 = vst.msk [vmem:[#allocation2 + $0x168] sm:$0xff] %vm984_vm5, %v919_v62  ;;  %1923 = vmatmul.mubr.f32.gmra.mrb[28].mxu0 %v1595_v33 }
 0x15d   : > { %1274 = vrot.lane.b32.xlu0 %v6214_v12, %s5199_s24 }
 0x15e   : > { %v1387_v42 = vpop.permute.xlu0 %1386  ;;  %940 = vrot.lane.b32.xlu1 %v6141_v61, %s5201_s29 }
 0x15f   : > { %1467 = vst.msk [vmem:[#allocation2 + $0x170] sm:$0xff] %vm984_vm5, %v1387_v42  ;;  %v580_v48 = vpop.permute.xlu1 %579  ;;  %v1633_v42 = vld [vmem:[#allocation2 + $0x280] sm:$0xff] }
 0x160   : > { %660 = vst.msk [vmem:[#allocation2 + $0x180] sm:$0xff] %vm643_vm3, %v580_v48  ;;  %4874 = vmatprep.mubr.msk.f32.mxu1 %vm385_vm2, %v1633_v42  ;;  %v1636_v48 = vld [vmem:[#allocation2 + $0x298] sm:$0xff] }
 0x161   : > { %4875 = vmatmul.mubr.msk.f32.gmra.mrb[26].mxu1 %vm385_vm2, %v1636_v48  ;;  %1408 = vrot.lane.b32.xlu0 %v6232_v39, %s5201_s29 }
 0x162   : > { %v1125_v19 = vpop.permute.xlu0 %1124  ;;  %601 = vrot.lane.b32.xlu1 %v6117_v40, %s5200_s28 }
 0x163   : > { %1204 = vst.msk [vmem:[#allocation2 + $0x188] sm:$0xff] %vm643_vm3, %v1125_v19  ;;  %v790_v30 = vpop.permute.xlu1 %789  ;;  %v1598_v58 = vld [vmem:[#allocation2 + $0x168] sm:$0xff] }
 0x164   : > { %870 = vst.msk [vmem:[#allocation2 + $0x180] sm:$0xff] %vm853_vm4, %v790_v30 }
 0x165   : > { %1146 = vrot.lane.b32.xlu0 %v6243_v63, %s5200_s28 }
 0x166   : > { %v1255_v13 = vpop.permute.xlu0 %1254  ;;  %v1599_v55 = vld [vmem:[#allocation2 + $0x170] sm:$0xff]  ;;  %811 = vrot.lane.b32.xlu1 %v6170_v37, %s5199_s24 }
 0x167   : > { %1334 = vst.msk [vmem:[#allocation2 + $0x188] sm:$0xff] %vm853_vm4, %v1255_v13  ;;  %v921_v33 = vpop.permute.xlu1 %920  ;;  %1927 = vmatprep.mubr.f32.mxu0 %v1599_v55 }
 0x168   : > { %1001 = vst.msk [vmem:[#allocation2 + $0x180] sm:$0xff] %vm984_vm5, %v921_v33  ;;  %1928 = vmatmul.mubr.f32.gmra.mrb[30].mxu0 %v1598_v58 }
 0x169   : > { %1276 = vrot.lane.b32.xlu0 %v6222_v57, %s5199_s24 }
 0x16a   : > { %v1389_v16 = vpop.permute.xlu0 %1388  ;;  %942 = vrot.lane.b32.xlu1 %v6149_v56, %s5201_s29  ;;  %v3673_v56 = vld [vmem:[%s8716_s3 + $0x18] sm:$0xff] }
 0x16b   : > { %1468 = vst.msk [vmem:[#allocation2 + $0x188] sm:$0xff] %vm984_vm5, %v1389_v16  ;;  %v582_v62 = vpop.permute.xlu1 %581  ;;  %v3670_v16 = vld [vmem:[%s8716_s3] sm:$0xff] }
 0x16c   : > { %661 = vst.msk [vmem:[#allocation2 + $0x198] sm:$0xff] %vm643_vm3, %v582_v62  ;;  %v3671_v62 = vld [vmem:[%s8716_s3 + $0x8] sm:$0xff] }
 0x16d   : > { %v5012_v37 = vpack.c.bf16 %v3671_v62, %v3670_v16  ;;  %1410 = vrot.lane.b32.xlu0 %v6263_v54, %s5201_s29  ;;  %v3674_v16 = vld [vmem:[%s8716_s3 + $0x20] sm:$0xff]  ;;  %v3675_v62 = vld [vmem:[%s8716_s3 + $0x28] sm:$0xff] }
 0x16e   : > { %v1127_v19 = vpop.permute.xlu0 %1126  ;;  %603 = vrot.lane.b32.xlu1 %v6159_v43, %s5200_s28 }
 0x16f   : > { %1205 = vst.msk [vmem:[#allocation2 + $0x1a0] sm:$0xff] %vm643_vm3, %v1127_v19  ;;  %v792_v4 = vpop.permute.xlu1 %791  ;;  %v1601_v30 = vld [vmem:[#allocation2 + $0x180] sm:$0xff]  ;;  %5013 = vmatpush1.bf16.msra.mxu1 %v5012_v37  ;;  %v8767_v19 = vmov 0.0|0.0  }
 0x170   : > { %871 = vst.msk [vmem:[#allocation2 + $0x198] sm:$0xff] %vm853_vm4, %v792_v4  ;;  %5014 = vmatprep.subr.bf16.mxu1 %v8767_v19  ;;  %v3672_v4 = vld [vmem:[%s8716_s3 + $0x10] sm:$0xff] }
 0x171   : > { %1148 = vrot.lane.b32.xlu0 %v6276_v60, %s5200_s28 }
 0x172   : > { %v1257_v58 = vpop.permute.xlu0 %1256  ;;  %v1602_v61 = vld [vmem:[#allocation2 + $0x188] sm:$0xff]  ;;  %813 = vrot.lane.b32.xlu1 %v6203_v47, %s5199_s24  ;;  %v3676_v47 = vld [vmem:[%s8716_s3 + $0x30] sm:$0xff] }
 0x173   : > { %1335 = vst.msk [vmem:[#allocation2 + $0x1a0] sm:$0xff] %vm853_vm4, %v1257_v58  ;;  %v923_v13 = vpop.permute.xlu1 %922  ;;  %1932 = vmatprep.mubr.f32.mxu0 %v1602_v61  ;;  %v5015_v58 = vpack.c.bf16 %v3673_v56, %v3672_v4  ;;  %v1639_v56 = vld [vmem:[#allocation2 + $0x2b0] sm:$0xff] }
 0x174   : > { %1002 = vst.msk [vmem:[#allocation2 + $0x198] sm:$0xff] %vm984_vm5, %v923_v13  ;;  %1933 = vmatmul.mubr.f32.gmra.mrb[32].mxu0 %v1601_v30  ;;  %4877 = vmatprep.mubr.msk.f32.mxu1 %vm385_vm2, %v1639_v56 }
 0x175   : > { %5016 = vmatpush1.bf16.msra.mxu1 %v5015_v58  ;;  %1278 = vrot.lane.b32.xlu0 %v6287_v26, %s5199_s24  ;;  %v6728_v58 = vld [vmem:[%s8715_s2] ss:$0 sm:$0xff] }
 0x176   : > { %v1391_v55 = vpop.permute.xlu0 %1390  ;;  %5017 = vmatprep.subr.bf16.mxu1 %v8767_v19  ;;  %944 = vrot.lane.b32.xlu1 %v6214_v12, %s5201_s29 }
 0x177   : > { %1469 = vst.msk [vmem:[#allocation2 + $0x1a0] sm:$0xff] %vm984_vm5, %v1391_v55  ;;  %v584_v33 = vpop.permute.xlu1 %583 }
 0x178   : > { %662 = vst.msk [vmem:[#allocation2 + $0x1b0] sm:$0xff] %vm643_vm3, %v584_v33  ;;  %v6699_v33 = vpop.f32.mrb[10].mxu1 }
 0x179   : > { %v6709_v37 = vpop.f32.mrb[11].mxu1  ;;  %1412 = vrot.lane.b32.xlu0 %v6303_v0, %s5201_s29 }
 0x17a   : > { %v1129_v42 = vpop.permute.xlu0 %1128  ;;  %605 = vrot.lane.b32.xlu1 %v6190_v14, %s5200_s28 }
 0x17b   : > { %1206 = vst.msk [vmem:[#allocation2 + $0x1b8] sm:$0xff] %vm643_vm3, %v1129_v42  ;;  %v794_v48 = vpop.permute.xlu1 %793  ;;  %v1604_v30 = vld [vmem:[#allocation2 + $0x198] sm:$0xff]  ;;  %v5018_v42 = vpack.c.bf16 %v3675_v62, %v3674_v16  ;;  %v1854_v62 = vpop.f32.mrb[0].mxu0 }
 0x17c   : > { %872 = vst.msk [vmem:[#allocation2 + $0x1b0] sm:$0xff] %vm853_vm4, %v794_v48  ;;  %v1855_v12 = vadd.f32 %v6728_v58, %v1854_v62  ;;  %v3680_v62 = vld [vmem:[%s8716_s3 + $0x50] sm:$0xff] }
 0x17d   : > { %5019 = vmatpush1.bf16.msra.mxu1 %v5018_v42  ;;  %v1856_v42 = vpop.f32.mrb[1].mxu0  ;;  %1150 = vrot.lane.b32.xlu0 %v6314_v28, %s5200_s28 }
 0x17e   : > { %v1259_v61 = vpop.permute.xlu0 %1258  ;;  %v1605_v13 = vld [vmem:[#allocation2 + $0x1a0] sm:$0xff]  ;;  %5020 = vmatprep.subr.bf16.mxu1 %v8767_v19  ;;  %815 = vrot.lane.b32.xlu1 %v6243_v63, %s5199_s24 }
 0x17f   : > { %1336 = vst.msk [vmem:[#allocation2 + $0x1b8] sm:$0xff] %vm853_vm4, %v1259_v61  ;;  %v925_v55 = vpop.permute.xlu1 %924  ;;  %1937 = vmatprep.mubr.f32.mxu0 %v1605_v13  ;;  %v1642_v61 = vld [vmem:[#allocation2 + $0x2c8] sm:$0xff]  ;;  %v3682_v63 = vld [vmem:[%s8716_s3 + $0x60] sm:$0xff] }
 0x180   : > { %1003 = vst.msk [vmem:[#allocation2 + $0x1b0] sm:$0xff] %vm984_vm5, %v925_v55  ;;  %1938 = vmatmul.mubr.f32.gmra.mrb[34].mxu0 %v1604_v30  ;;  %v3677_v30 = vld [vmem:[%s8716_s3 + $0x38] sm:$0xff]  ;;  %4878 = vmatmul.mubr.msk.f32.gmra.mrb[28].mxu1 %vm385_vm2, %v1642_v61 }
 0x181   : > { %v5021_v13 = vpack.c.bf16 %v3677_v30, %v3676_v47  ;;  %v2080_v30 = vadd.f32 %v6485_v17, %v1855_v12  ;;  %v3681_v17 = vld [vmem:[%s8716_s3 + $0x58] sm:$0xff]  ;;  %1280 = vrot.lane.b32.xlu0 %v6294_v27, %s5199_s24 }
 0x182   : > { %v1393_v48 = vpop.permute.xlu0 %1392  ;;  %v5027_v12 = vpack.c.bf16 %v3681_v17, %v3680_v62  ;;  %946 = vrot.lane.b32.xlu1 %v6222_v57, %s5201_s29  ;;  %v3684_v57 = vld [vmem:[%s8716_s3 + $0x70] sm:$0xff]  ;;  %v3685_v62 = vld [vmem:[%s8716_s3 + $0x78] sm:$0xff] }
 0x183   : > { %1470 = vst.msk [vmem:[#allocation2 + $0x1b8] sm:$0xff] %vm984_vm5, %v1393_v48  ;;  %v586_v4 = vpop.permute.xlu1 %585  ;;  %5022 = vmatpush1.bf16.msra.mxu1 %v5021_v13  ;;  %v3678_v48 = vld [vmem:[%s8716_s3 + $0x40] sm:$0xff] }
 0x184   : > { %663 = vst.msk [vmem:[#allocation2 + $0x1c8] sm:$0xff] %vm643_vm3, %v586_v4  ;;  %5023 = vmatprep.subr.bf16.mxu1 %v8767_v19  ;;  %v3679_v4 = vld [vmem:[%s8716_s3 + $0x48] sm:$0xff] }
 0x185   : > { %v5024_v47 = vpack.c.bf16 %v3679_v4, %v3678_v48  ;;  %v6766_v4 = vld [vmem:[%s5364_s26 + $0x1a8] sm:$0x3]  ;;  %1414 = vrot.lane.b32.xlu0 %v6412_v20, %s5201_s29 }
 0x186   : > { %v1131_v55 = vpop.permute.xlu0 %1130  ;;  %607 = vrot.lane.b32.xlu1 %v6232_v39, %s5200_s28 }
 0x187   : > { %1207 = vst.msk [vmem:[#allocation2 + $0x1d0] sm:$0xff] %vm643_vm3, %v1131_v55  ;;  %v796_v16 = vpop.permute.xlu1 %795  ;;  %v1607_v56 = vld [vmem:[#allocation2 + $0x1b0] sm:$0xff]  ;;  %5025 = vmatpush1.bf16.msra.mxu1 %v5024_v47  ;;  %v1487_v47 = vrot.slane %v6766_v4, 2 }
 0x188   : > { %873 = vst.msk [vmem:[#allocation2 + $0x1c8] sm:$0xff] %vm853_vm4, %v796_v16  ;;  %v2238_v16 = vmax.f32 %v2080_v30, 0.0  ;;  %5026 = vmatprep.subr.bf16.mxu1 %v8767_v19 }
 0x189   : > { %1152 = vrot.lane.b32.xlu0 %v6424_v25, %s5200_s28 }
 0x18a   : > { %v1261_v61 = vpop.permute.xlu0 %1260  ;;  %v1608_v13 = vld [vmem:[#allocation2 + $0x1b8] sm:$0xff]  ;;  %2326 = vst.msk [vmem:[#allocation3 + $0x19] sm:$0xff] %vm385_vm2, %v2238_v16  ;;  %817 = vrot.lane.b32.xlu1 %v6276_v60, %s5199_s24  ;;  %v1645_v60 = vld [vmem:[#allocation2 + $0x2e0] sm:$0xff] }
 0x18b   : > { %1337 = vst.msk [vmem:[#allocation2 + $0x1d0] sm:$0xff] %vm853_vm4, %v1261_v61  ;;  %v927_v55 = vpop.permute.xlu1 %926  ;;  %1942 = vmatprep.mubr.f32.mxu0 %v1608_v13  ;;  %5028 = vmatpush1.bf16.msra.mxu1 %v5027_v12  ;;  %v1859_v13 = vpop.f32.mrb[2].mxu0 }
 0x18c   : > { %1004 = vst.msk [vmem:[#allocation2 + $0x1c8] sm:$0xff] %vm984_vm5, %v927_v55  ;;  %1943 = vmatmul.mubr.f32.gmra.mrb[36].mxu0 %v1607_v56  ;;  %5029 = vmatprep.subr.bf16.mxu1 %v8767_v19  ;;  %v3683_v56 = vld [vmem:[%s8716_s3 + $0x68] sm:$0xff]  ;;  %v1860_v55 = vadd.f32 %v6728_v58, %v1859_v13  ;;  %v1861_v16 = vpop.f32.mrb[3].mxu0 }
 0x18d   : > { %v5030_v30 = vpack.c.bf16 %v3683_v56, %v3682_v63  ;;  %v1351_v16 = vrot.slane %v6471_v50, 1  ;;  %1282 = vrot.lane.b32.xlu0 %v6471_v50, %s5199_s24  ;;  %4880 = vmatprep.mubr.msk.f32.mxu1 %vm385_vm2, %v1645_v60  ;;  %v3691_v60 = vld [vmem:[%s8716_s3 + $0xa8] sm:$0xff] }
 0x18e   : > { %v1395_v42 = vpop.permute.xlu0 %1394  ;;  %v2085_v56 = vadd.f32 %v6482_v11, %v1860_v55  ;;  %v6805_v11 = vpop.f32.mrb[12].mxu1  ;;  %v3687_v55 = vld [vmem:[%s8716_s3 + $0x88] sm:$0xff]  ;;  %948 = vrot.lane.b32.xlu1 %v6287_v26, %s5201_s29 }
 0x18f   : > { %1471 = vst.msk [vmem:[#allocation2 + $0x1d0] sm:$0xff] %vm984_vm5, %v1395_v42  ;;  %v588_v48 = vpop.permute.xlu1 %587  ;;  %5031 = vmatpush1.bf16.msra.mxu1 %v5030_v30  ;;  %v5033_v42 = vpack.c.bf16 %v3685_v62, %v3684_v57  ;;  %v1352_v57 = vrot.slane %v6477_v52, 1  ;;  %v6817_v62 = vpop.f32.mrb[13].mxu1 }
 0x190   : > { %664 = vst.msk [vmem:[#allocation2 + $0x1e0] sm:$0xff] %vm643_vm3, %v588_v48  ;;  %5032 = vmatprep.subr.bf16.mxu1 %v8767_v19  ;;  %v8768_v48 = vrot.slane %v6477_v52, 2  ;;  %v2239_v13 = vmax.f32 %v2085_v56, 0.0 }
 0x191   : > { %v6792_v12 = vld [vmem:[#allocation3 + $0x18] sm:$0xff]  ;;  %v1353_v56 = vsel %vm466_vm1, %v1351_v16, %v1352_v57 }
 0x192   : > { %v1133_v61 = vpop.permute.xlu0 %1132  ;;  %v1488_v63 = vsel %vm676_vm0, %v8768_v48, %v1487_v47  ;;  %2414 = vst.msk [vmem:[#allocation2 + $0x30] sm:$0xff] %vm385_vm2, %v6792_v12  ;;  %v3686_v47 = vld [vmem:[%s8716_s3 + $0x80] sm:$0xff]  ;;  %2327 = vst.msk [vmem:[#allocation3 + $0x21] sm:$0xff] %vm385_vm2, %v2239_v13  ;;  %v3688_v48 = vld [vmem:[%s8716_s3 + $0x90] sm:$0xff]  ;;  %1416 = vrot.lane.b32.xlu0 %v1353_v56, %s5201_s29  ;;  %609 = vrot.lane.b32.xlu1 %v6263_v54, %s5200_s28 }
 0x193   : > { %1208 = vst.msk [vmem:[#allocation2 + $0x1e8] sm:$0xff] %vm643_vm3, %v1133_v61  ;;  %v798_v27 = vpop.permute.xlu1 %797  ;;  %v1610_v17 = vld [vmem:[#allocation2 + $0x1c8] sm:$0xff]  ;;  %5034 = vmatpush1.bf16.msra.mxu1 %v5033_v42  ;;  %v5036_v25 = vpack.c.bf16 %v3687_v55, %v3686_v47  ;;  %v1864_v55 = vpop.f32.mrb[4].mxu0 }
 0x194   : > { %874 = vst.msk [vmem:[#allocation2 + $0x1e0] sm:$0xff] %vm853_vm4, %v798_v27  ;;  %5035 = vmatprep.subr.bf16.mxu1 %v8767_v19  ;;  %v2411_v13 = vld [vmem:[#allocation3 + $0x1a8] sm:$0x3]  ;;  %v1865_v16 = vadd.f32 %v6728_v58, %v1864_v55  ;;  %v2497_v55 = vrot.slane %v6792_v12, 1 }
 0x195   : > { %1552 = vst.msk [vmem:[#allocation2 + $0x2f8] sm:$0xff] %vm385_vm2, %v1488_v63  ;;  %v3689_v63 = vld [vmem:[%s8716_s3 + $0x98] sm:$0xff] }
 0x196   : > { %v1263_v30 = vpop.permute.xlu0 %1262  ;;  %v1611_v61 = vld [vmem:[#allocation2 + $0x1d0] sm:$0xff]  ;;  %1154 = vrot.lane.b32.xlu0 %v6504_v53, %s5200_s28  ;;  %819 = vrot.lane.b32.xlu1 %v6314_v28, %s5199_s24 }
 0x197   : > { %1338 = vst.msk [vmem:[#allocation2 + $0x1e8] sm:$0xff] %vm853_vm4, %v1263_v30  ;;  %v929_v27 = vpop.permute.xlu1 %928  ;;  %1947 = vmatprep.mubr.f32.mxu0 %v1611_v61  ;;  %5037 = vmatpush1.bf16.msra.mxu1 %v5036_v25  ;;  %v5039_v30 = vpack.c.bf16 %v3689_v63, %v3688_v48  ;;  %v3508_v25 = vrot.slane %v2411_v13, 2  ;;  %v3704_v28 = vld [vmem:[%s8716_s3 + $0x110] sm:$0xff] }
 0x198   : > { %1005 = vst.msk [vmem:[#allocation2 + $0x1e0] sm:$0xff] %vm984_vm5, %v929_v27  ;;  %1948 = vmatmul.mubr.f32.gmra.mrb[38].mxu0 %v1610_v17  ;;  %5038 = vmatprep.subr.bf16.mxu1 %v8767_v19  ;;  %v6839_v27 = vld [vmem:[#allocation3 + $0x1a0] sm:$0xff] }
 0x199   : > { %v8738_v26 = vrot.slane %v6839_v27, 2  ;;  %v6855_v63 = vld [vmem:[#allocation3 + $0x20] sm:$0xff] }
 0x19a   : > { %v1397_v17 = vpop.permute.xlu0 %1396  ;;  %2415 = vst.msk [vmem:[#allocation2 + $0x48] sm:$0xff] %vm385_vm2, %v6855_v63  ;;  %1284 = vrot.lane.b32.xlu0 %v6477_v52, %s5199_s24 }
 0x19b   : > { %1472 = vst.msk [vmem:[#allocation2 + $0x1e8] sm:$0xff] %vm984_vm5, %v1397_v17  ;;  %v590_v42 = vpop.permute.xlu1 %589  ;;  %5040 = vmatpush1.bf16.msra.mxu1 %v5039_v30  ;;  %v1866_v17 = vpop.f32.mrb[5].mxu0  ;;  %v3509_v56 = vsel %vm676_vm0, %v8738_v26, %v3508_v25  ;;  %v3703_v25 = vld [vmem:[%s8716_s3 + $0x108] sm:$0xff] }
 0x19c   : > { %665 = vst.msk [vmem:[#allocation2 + $0x1f8] sm:$0xff] %vm643_vm3, %v590_v42  ;;  %v1648_v50 = vld [vmem:[#allocation2 + $0x2f8] sm:$0xff]  ;;  %5041 = vmatprep.subr.bf16.mxu1 %v8767_v19  ;;  %v3690_v42 = vld [vmem:[%s8716_s3 + $0xa0] sm:$0xff]  ;;  %v2498_v17 = vrot.slane %v6855_v63, 1 }
 0x19d   : > { %4881 = vmatmul.mubr.msk.f32.gmra.mrb[30].mxu1 %vm385_vm2, %v1648_v50  ;;  %v6857_v50 = vld [vmem:[#allocation3 + $0x28] sm:$0x3]  ;;  %v5042_v30 = vpack.c.bf16 %v3691_v60, %v3690_v42  ;;  %3573 = vst.msk [vmem:[#allocation2 + $0x2f8] sm:$0xff] %vm385_vm2, %v3509_v56  ;;  %v6876_v42 = vpack.c.bf16 %v3703_v25, %v3702_v31  ;;  %v1354_v31 = vrot.slane %v6766_v4, 1  ;;  %v3705_v4 = vld [vmem:[%s8716_s3 + $0x118] sm:$0xff] }
 0x19e   : > { %v1135_v61 = vpop.permute.xlu0 %1134  ;;  %v6882_v56 = vsel %vm466_vm1, %v2497_v55, %v2498_v17  ;;  %v6911_v55 = vpack.c.bf16 %v3705_v4, %v3704_v28  ;;  %v3695_v25 = vld [vmem:[%s8716_s3 + $0xc8] sm:$0xff] }
 0x19f   : > { %1209 = vst.msk [vmem:[#allocation2 + $0x200] sm:$0xff] %vm643_vm3, %v1135_v61  ;;  %v800_v47 = vpop.permute.xlu1 %799  ;;  %v1613_v48 = vld [vmem:[#allocation2 + $0x1e0] sm:$0xff]  ;;  %v2090_v61 = vadd.f32 %v6500_v8, %v1865_v16  ;;  %v2500_v16 = vrot.slane %v6857_v50, 1  ;;  %5043 = vmatpush1.bf16.msra.mxu1 %v5042_v30  ;;  %v3693_v30 = vld [vmem:[%s8716_s3 + $0xb8] sm:$0xff]  ;;  %5060 = vmatprep.subr.bf16.mxu0 %v6876_v42 }
 0x1a0   : > { %875 = vst.msk [vmem:[#allocation2 + $0x1f8] sm:$0xff] %vm853_vm4, %v800_v47  ;;  %5044 = vmatprep.subr.bf16.mxu1 %v8767_v19  ;;  %5062 = vmatpush3.bf16.msra.mxu0 %v6876_v42 }
 0x1a1   : > { %v2240_v60 = vmax.f32 %v2090_v61, 0.0  ;;  %3076 = vst.msk [vmem:[#allocation2 + $0x8] sm:$0xff] %vm385_vm2, %v6882_v56  ;;  %v6896_v53 = vsel %vm466_vm1, %v2498_v17, %v2500_v16  ;;  %v3694_v17 = vld [vmem:[%s8716_s3 + $0xc0] sm:$0xff]  ;;  %v1355_v16 = vsel %vm466_vm1, %v1352_v57, %v1354_v31  ;;  %5064 = vmatprep.subr.bf16.mxu0 %v6911_v55  ;;  %v3696_v57 = vld [vmem:[%s8716_s3 + $0xd0] sm:$0xff]  ;;  %v3697_v31 = vld [vmem:[%s8716_s3 + $0xd8] sm:$0xff] }
 0x1a2   : > { %v1265_v13 = vpop.permute.xlu0 %1264  ;;  %v1614_v47 = vld [vmem:[#allocation2 + $0x1e8] sm:$0xff]  ;;  %3077 = vst.msk [vmem:[#allocation2 + $0x20] sm:$0xff] %vm385_vm2, %v6896_v53  ;;  %1418 = vrot.lane.b32.xlu0 %v1355_v16, %s5201_s29 }
 0x1a3   : > { %1339 = vst.msk [vmem:[#allocation2 + $0x200] sm:$0xff] %vm853_vm4, %v1265_v13  ;;  %v931_v8 = vpop.permute.xlu1 %930  ;;  %1952 = vmatprep.mubr.f32.mxu0 %v1614_v47  ;;  %v3692_v13 = vld [vmem:[%s8716_s3 + $0xb0] sm:$0xff] }
 0x1a4   : > { %1006 = vst.msk [vmem:[#allocation2 + $0x1f8] sm:$0xff] %vm984_vm5, %v931_v8  ;;  %1953 = vmatmul.mubr.f32.gmra.mrb[40].mxu0 %v1613_v48  ;;  %v5045_v48 = vpack.c.bf16 %v3693_v30, %v3692_v13  ;;  %v5129_v8 = vld [vmem:[%s5364_s26 + $0x188] sm:$0xff] }
 0x1a5   : > { %2328 = vst.msk [vmem:[#allocation3 + $0x31] sm:$0xff] %vm385_vm2, %v2240_v60  ;;  %950 = vrot.lane.b32.xlu1 %v5129_v8, %s5201_s29  ;;  %v5048_v60 = vpack.c.bf16 %v3695_v25, %v3694_v17  ;;  %5066 = vmatpush3.bf16.msra.mxu0 %v6911_v55  ;;  %v5051_v25 = vpack.c.bf16 %v3697_v31, %v3696_v57 }
 0x1a6   : > { %v1399_v61 = vpop.permute.xlu0 %1398  ;;  %5046 = vmatpush1.bf16.msra.mxu1 %v5045_v48  ;;  %v1869_v48 = vpop.f32.mrb[6].mxu0 }
 0x1a7   : > { %1473 = vst.msk [vmem:[#allocation2 + $0x200] sm:$0xff] %vm984_vm5, %v1399_v61  ;;  %v592_v47 = vpop.permute.xlu1 %591  ;;  %5047 = vmatprep.subr.bf16.mxu1 %v8767_v19  ;;  %v8739_v61 = vrot.slane %v6855_v63, 2  ;;  %v1870_v28 = vadd.f32 %v6728_v58, %v1869_v48  ;;  %v1871_v52 = vpop.f32.mrb[7].mxu0 }
 0x1a8   : > { %666 = vst.msk [vmem:[#allocation2 + $0x210] sm:$0xff] %vm643_vm3, %v592_v47  ;;  %v2705_v47 = vrot.slane %v6792_v12, 2  ;;  %v6967_v52 = vpop.f32.mrb[14].mxu1 }
 0x1a9   : > { %2572 = vrot.lane.b32.xlu1 %v6534_v32, %s5200_s28  ;;  %v2095_v8 = vadd.f32 %v6497_v44, %v1870_v28  ;;  %v3698_v44 = vld [vmem:[%s8716_s3 + $0xe0] sm:$0xff]  ;;  %v3699_v28 = vld [vmem:[%s8716_s3 + $0xe8] sm:$0xff] }
 0x1aa   : > { %v1137_v13 = vpop.permute.xlu0 %1136  ;;  %5049 = vmatpush1.bf16.msra.mxu1 %v5048_v60  ;;  %v6954_v32 = vsel %vm676_vm0, %v2705_v47, %v8739_v61  ;;  %v5054_v57 = vpack.c.bf16 %v3699_v28, %v3698_v44  ;;  %v6971_v47 = vpop.f32.mrb[15].mxu1 }
 0x1ab   : > { %1210 = vst.msk [vmem:[#allocation2 + $0x218] sm:$0xff] %vm643_vm3, %v1137_v13  ;;  %v802_v30 = vpop.permute.xlu1 %801  ;;  %5050 = vmatprep.subr.bf16.mxu1 %v8767_v19  ;;  %v1616_v4 = vld [vmem:[#allocation2 + $0x1f8] sm:$0xff]  ;;  %v2241_v48 = vmax.f32 %v2095_v8, 0.0  ;;  %3113 = vrot.lane.b32.xlu0 %v6954_v32, %s5200_s28  ;;  %v1874_v28 = vpop.f32.mrb[8].mxu0 }
 0x1ac   : > { %876 = vst.msk [vmem:[#allocation2 + $0x210] sm:$0xff] %vm853_vm4, %v802_v30  ;;  %v6945_v17 = vld [vmem:[#allocation3 + $0x30] sm:$0xff]  ;;  %v3701_v8 = vld [vmem:[%s8716_s3 + $0xf8] sm:$0xff] }
 0x1ad   : > { %2416 = vst.msk [vmem:[#allocation2 + $0x60] sm:$0xff] %vm385_vm2, %v6945_v17  ;;  %v2360_v30 = vld [vmem:[#allocation3 + $0x10] sm:$0x3]  ;;  %2780 = vrot.lane.b32.xlu1 %v6546_v3, %s5199_s24  ;;  %2329 = vst.msk [vmem:[#allocation3 + $0x39] sm:$0xff] %vm385_vm2, %v2241_v48 }
 0x1ae   : > { %v1267_v16 = vpop.permute.xlu0 %1266  ;;  %v1617_v60 = vld [vmem:[#allocation2 + $0x200] sm:$0xff]  ;;  %5052 = vmatpush1.bf16.msra.mxu1 %v5051_v25  ;;  %v3700_v3 = vld [vmem:[%s8716_s3 + $0xf0] sm:$0xff] }
 0x1af   : > { %1340 = vst.msk [vmem:[#allocation2 + $0x218] sm:$0xff] %vm853_vm4, %v1267_v16  ;;  %v933_v13 = vpop.permute.xlu1 %932  ;;  %1957 = vmatprep.mubr.f32.mxu0 %v1617_v60  ;;  %5053 = vmatprep.subr.bf16.mxu1 %v8767_v19  ;;  %v2703_v16 = vrot.slane %v2360_v30, 2  ;;  %v5057_v60 = vpack.c.bf16 %v3701_v8, %v3700_v3  ;;  %v2710_v8 = vrot.slane %v6945_v17, 2 }
 0x1b0   : > { %1007 = vst.msk [vmem:[#allocation2 + $0x210] sm:$0xff] %vm984_vm5, %v933_v13  ;;  %1958 = vmatmul.mubr.f32.gmra.mrb[42].mxu0 %v1616_v4  ;;  %v2495_v4 = vrot.slane %v2360_v30, 1  ;;  %3243 = vrot.lane.b32.xlu0 %v6945_v17, %s5199_s24  ;;  %v8769_v30 = vrot.slane %v6521_v18, 2 }
 0x1b1   : > { %2910 = vrot.lane.b32.xlu1 %v6792_v12, %s5201_s29 }
 0x1b2   : > { %v1401_v31 = vpop.permute.xlu0 %1400  ;;  %5055 = vmatpush1.bf16.msra.mxu1 %v5054_v57  ;;  %v2496_v48 = vsel %vm466_vm1, %v2493_v22, %v2495_v4  ;;  %v1875_v57 = vadd.f32 %v6728_v58, %v1874_v28  ;;  %v2502_v4 = vrot.slane %v6945_v17, 1 }
 0x1b3   : > { %1474 = vst.msk [vmem:[#allocation2 + $0x218] sm:$0xff] %vm984_vm5, %v1401_v31  ;;  %v594_v25 = vpop.permute.xlu1 %593  ;;  %5056 = vmatprep.subr.bf16.mxu1 %v8767_v19  ;;  %v1876_v31 = vpop.f32.mrb[9].mxu0 }
 0x1b4   : > { %667 = vst.msk [vmem:[#allocation2 + $0x228] sm:$0xff] %vm643_vm3, %v594_v25  ;;  %v2704_v25 = vsel %vm676_vm0, %v8769_v30, %v2703_v16  ;;  %v6997_v22 = vld [vmem:[#allocation3 + $0x38] sm:$0xff]  ;;  %v2366_v3 = vld [vmem:[#allocation3 + $0x40] sm:$0x3]  ;;  %v2708_v31 = vrot.slane %v6857_v50, 2 }
 0x1b5   : > { %2574 = vrot.lane.b32.xlu1 %v2496_v48, %s5200_s28  ;;  %v2503_v28 = vrot.slane %v6997_v22, 1  ;;  %2417 = vst.msk [vmem:[#allocation2 + $0x78] sm:$0xff] %vm385_vm2, %v6997_v22  ;;  %v2505_v48 = vrot.slane %v2366_v3, 1  ;;  %v2711_v18 = vrot.slane %v6997_v22, 2  ;;  %v2713_v30 = vrot.slane %v2366_v3, 2 }
 0x1b6   : > { %v1139_v13 = vpop.permute.xlu0 %1138  ;;  %5058 = vmatpush1.bf16.msra.mxu1 %v5057_v60  ;;  %v2100_v60 = vadd.f32 %v6564_v38, %v1875_v57 }
 0x1b7   : > { %1211 = vst.msk [vmem:[#allocation2 + $0x230] sm:$0xff] %vm643_vm3, %v1139_v13  ;;  %v804_v44 = vpop.permute.xlu1 %803  ;;  %5073 = vmatprep.subr.bf16.mxu1 %v6876_v42  ;;  %v1619_v12 = vld [vmem:[#allocation2 + $0x210] sm:$0xff]  ;;  %v7010_v38 = vsel %vm466_vm1, %v2502_v4, %v2503_v28  ;;  %v7013_v57 = vsel %vm466_vm1, %v2503_v28, %v2505_v48  ;;  %v7016_v61 = vsel %vm676_vm0, %v2710_v8, %v2711_v18  ;;  %v8770_v4 = vrot.slane %v6855_v63, 2 }
 0x1b8   : > { %877 = vst.msk [vmem:[#allocation2 + $0x228] sm:$0xff] %vm853_vm4, %v804_v44  ;;  %v2242_v26 = vmax.f32 %v2100_v60, 0.0  ;;  %3377 = vrot.lane.b32.xlu0 %v7010_v38, %s5201_s29  ;;  %v7028_v50 = vsel %vm676_vm0, %v2711_v18, %v2713_v30  ;;  %v1879_v60 = vpop.f32.mrb[10].mxu0 }
 0x1b9   : > { %2782 = vrot.lane.b32.xlu1 %v2704_v25, %s5199_s24  ;;  %3078 = vst.msk [vmem:[#allocation2 + $0x38] sm:$0xff] %vm385_vm2, %v7010_v38  ;;  %3079 = vst.msk [vmem:[#allocation2 + $0x50] sm:$0xff] %vm385_vm2, %v7013_v57  ;;  %v7038_v3 = vsel %vm676_vm0, %v8770_v4, %v2708_v31 }
 0x1ba   : > { %v1269_v13 = vpop.permute.xlu0 %1268  ;;  %v1620_v44 = vld [vmem:[#allocation2 + $0x218] sm:$0xff]  ;;  %3542 = vst.msk [vmem:[#allocation2 + $0x10] sm:$0xff] %vm385_vm2, %v7016_v61  ;;  %2330 = vst.msk [vmem:[#allocation3 + $0x49] sm:$0xff] %vm385_vm2, %v2242_v26 }
 0x1bb   : > { %1341 = vst.msk [vmem:[#allocation2 + $0x230] sm:$0xff] %vm853_vm4, %v1269_v13  ;;  %v935_v16 = vpop.permute.xlu1 %934  ;;  %1962 = vmatprep.mubr.f32.mxu0 %v1620_v44  ;;  %v1880_v13 = vadd.f32 %v6728_v58, %v1879_v60  ;;  %v1881_v44 = vpop.f32.mrb[11].mxu0 }
 0x1bc   : > { %1008 = vst.msk [vmem:[#allocation2 + $0x228] sm:$0xff] %vm984_vm5, %v935_v16  ;;  %1963 = vmatmul.mubr.f32.gmra.mrb[44].mxu0 %v1619_v12  ;;  %3115 = vrot.lane.b32.xlu0 %v7038_v3, %s5200_s28 }
 0x1bd   : > { %3543 = vst.msk [vmem:[#allocation2 + $0x28] sm:$0xff] %vm385_vm2, %v7028_v50  ;;  %2912 = vrot.lane.b32.xlu1 %v6855_v63, %s5201_s29  ;;  %v2105_v48 = vadd.f32 %v6562_v34, %v1880_v13  ;;  %v7062_v34 = vpop.f32.mrb[16].mxu1 }
 0x1be   : > { %v1403_v12 = vpop.permute.xlu0 %1402 }
 0x1bf   : > { %1475 = vst.msk [vmem:[#allocation2 + $0x230] sm:$0xff] %vm984_vm5, %v1403_v12  ;;  %v596_v25 = vpop.permute.xlu1 %595  ;;  %v2243_v30 = vmax.f32 %v2105_v48, 0.0  ;;  %v7065_v12 = vpop.f32.mrb[17].mxu1 }
 0x1c0   : > { %668 = vst.msk [vmem:[#allocation2 + $0x240] sm:$0xff] %vm643_vm3, %v596_v25  ;;  %3245 = vrot.lane.b32.xlu0 %v6997_v22, %s5199_s24 }
 0x1c1   : > { %2576 = vrot.lane.b32.xlu1 %v6882_v56, %s5200_s28  ;;  %v7051_v28 = vld [vmem:[#allocation3 + $0x48] sm:$0xff]  ;;  %2331 = vst.msk [vmem:[#allocation3 + $0x51] sm:$0xff] %vm385_vm2, %v2243_v30 }
 0x1c2   : > { %v1141_v26 = vpop.permute.xlu0 %1140  ;;  %2418 = vst.msk [vmem:[#allocation2 + $0x90] sm:$0xff] %vm385_vm2, %v7051_v28  ;;  %v2715_v48 = vrot.slane %v7051_v28, 2 }
 0x1c3   : > { %1212 = vst.msk [vmem:[#allocation2 + $0x248] sm:$0xff] %vm643_vm3, %v1141_v26  ;;  %v806_v8 = vpop.permute.xlu1 %805  ;;  %v1622_v63 = vld [vmem:[#allocation2 + $0x228] sm:$0xff]  ;;  %v1884_v26 = vpop.f32.mrb[12].mxu0 }
 0x1c4   : > { %878 = vst.msk [vmem:[#allocation2 + $0x240] sm:$0xff] %vm853_vm4, %v806_v8  ;;  %3379 = vrot.lane.b32.xlu0 %v7013_v57, %s5201_s29  ;;  %v1885_v8 = vadd.f32 %v6728_v58, %v1884_v26  ;;  %v1886_v60 = vpop.f32.mrb[13].mxu0 }
 0x1c5   : > { %2784 = vrot.lane.b32.xlu1 %v6954_v32, %s5199_s24 }
 0x1c6   : > { %v1271_v18 = vpop.permute.xlu0 %1270  ;;  %v1623_v16 = vld [vmem:[#allocation2 + $0x230] sm:$0xff] }
 0x1c7   : > { %1342 = vst.msk [vmem:[#allocation2 + $0x248] sm:$0xff] %vm853_vm4, %v1271_v18  ;;  %v937_v31 = vpop.permute.xlu1 %936  ;;  %1967 = vmatprep.mubr.f32.mxu0 %v1623_v16  ;;  %v2110_v18 = vadd.f32 %v6606_v24, %v1885_v8 }
 0x1c8   : > { %1009 = vst.msk [vmem:[#allocation2 + $0x240] sm:$0xff] %vm984_vm5, %v937_v31  ;;  %1968 = vmatmul.mubr.f32.gmra.mrb[46].mxu0 %v1622_v63  ;;  %3117 = vrot.lane.b32.xlu0 %v7016_v61, %s5200_s28  ;;  %v7080_v44 = vld [vmem:[#allocation3 + $0x50] sm:$0xff]  ;;  %v2369_v63 = vld [vmem:[#allocation3 + $0x58] sm:$0x3] }
 0x1c9   : > { %2914 = vrot.lane.b32.xlu1 %v6945_v17, %s5201_s29  ;;  %v2507_v17 = vrot.slane %v7051_v28, 1  ;;  %v2508_v30 = vrot.slane %v7080_v44, 1  ;;  %2419 = vst.msk [vmem:[#allocation2 + $0xa8] sm:$0xff] %vm385_vm2, %v7080_v44 }
 0x1ca   : > { %v1405_v56 = vpop.permute.xlu0 %1404 }
 0x1cb   : > { %1476 = vst.msk [vmem:[#allocation2 + $0x248] sm:$0xff] %vm984_vm5, %v1405_v56  ;;  %v598_v25 = vpop.permute.xlu1 %597  ;;  %v2510_v56 = vrot.slane %v2369_v63, 1  ;;  %v7092_v24 = vsel %vm466_vm1, %v2507_v17, %v2508_v30 }
 0x1cc   : > { %669 = vst.msk [vmem:[#allocation2 + $0x258] sm:$0xff] %vm643_vm3, %v598_v25  ;;  %3247 = vrot.lane.b32.xlu0 %v7051_v28, %s5199_s24 }
 0x1cd   : > { %2578 = vrot.lane.b32.xlu1 %v6896_v53, %s5200_s28  ;;  %v2716_v53 = vrot.slane %v7080_v44, 2  ;;  %v7095_v26 = vsel %vm466_vm1, %v2508_v30, %v2510_v56  ;;  %3080 = vst.msk [vmem:[#allocation2 + $0x68] sm:$0xff] %vm385_vm2, %v7092_v24 }
 0x1ce   : > { %v1143_v4 = vpop.permute.xlu0 %1142  ;;  %3081 = vst.msk [vmem:[#allocation2 + $0x80] sm:$0xff] %vm385_vm2, %v7095_v26 }
 0x1cf   : > { %1213 = vst.msk [vmem:[#allocation2 + $0x260] sm:$0xff] %vm643_vm3, %v1143_v4  ;;  %v808_v32 = vpop.permute.xlu1 %807  ;;  %v1625_v13 = vld [vmem:[#allocation2 + $0x240] sm:$0xff]  ;;  %v2718_v4 = vrot.slane %v2369_v63, 2  ;;  %v7098_v8 = vsel %vm676_vm0, %v2715_v48, %v2716_v53  ;;  %v1889_v48 = vpop.f32.mrb[14].mxu0 }
 0x1d0   : > { %879 = vst.msk [vmem:[#allocation2 + $0x258] sm:$0xff] %vm853_vm4, %v808_v32  ;;  %v2244_v32 = vmax.f32 %v2110_v18, 0.0  ;;  %3381 = vrot.lane.b32.xlu0 %v7092_v24, %s5201_s29  ;;  %v1890_v18 = vadd.f32 %v6728_v58, %v1889_v48 }
 0x1d1   : > { %2786 = vrot.lane.b32.xlu1 %v7038_v3, %s5199_s24  ;;  %3544 = vst.msk [vmem:[#allocation2 + $0x40] sm:$0xff] %vm385_vm2, %v7098_v8  ;;  %v7111_v60 = vsel %vm676_vm0, %v2716_v53, %v2718_v4 }
 0x1d2   : > { %v1273_v16 = vpop.permute.xlu0 %1272  ;;  %v1626_v31 = vld [vmem:[#allocation2 + $0x248] sm:$0xff]  ;;  %2332 = vst.msk [vmem:[#allocation3 + $0x61] sm:$0xff] %vm385_vm2, %v2244_v32  ;;  %3545 = vst.msk [vmem:[#allocation2 + $0x58] sm:$0xff] %vm385_vm2, %v7111_v60 }
 0x1d3   : > { %1343 = vst.msk [vmem:[#allocation2 + $0x260] sm:$0xff] %vm853_vm4, %v1273_v16  ;;  %v939_v25 = vpop.permute.xlu1 %938  ;;  %1972 = vmatprep.mubr.f32.mxu0 %v1626_v31  ;;  %v1891_v16 = vpop.f32.mrb[15].mxu0 }
 0x1d4   : > { %1010 = vst.msk [vmem:[#allocation2 + $0x258] sm:$0xff] %vm984_vm5, %v939_v25  ;;  %1973 = vmatmul.mubr.f32.gmra.mrb[48].mxu0 %v1625_v13  ;;  %3119 = vrot.lane.b32.xlu0 %v7028_v50, %s5200_s28 }
 0x1d5   : > { %2916 = vrot.lane.b32.xlu1 %v6997_v22, %s5201_s29  ;;  %v2115_v22 = vadd.f32 %v6602_v45, %v1890_v18  ;;  %v7140_v45 = vpop.f32.mrb[18].mxu1 }
 0x1d6   : > { %v1407_v13 = vpop.permute.xlu0 %1406  ;;  %v7143_v32 = vpop.f32.mrb[19].mxu1 }
 0x1d7   : > { %1477 = vst.msk [vmem:[#allocation2 + $0x260] sm:$0xff] %vm984_vm5, %v1407_v13  ;;  %v600_v17 = vpop.permute.xlu1 %599  ;;  %v2245_v4 = vmax.f32 %v2115_v22, 0.0 }
 0x1d8   : > { %670 = vst.msk [vmem:[#allocation2 + $0x270] sm:$0xff] %vm643_vm3, %v600_v17  ;;  %3249 = vrot.lane.b32.xlu0 %v7080_v44, %s5199_s24 }
 0x1d9   : > { %2580 = vrot.lane.b32.xlu1 %v7010_v38, %s5200_s28  ;;  %v7129_v30 = vld [vmem:[#allocation3 + $0x60] sm:$0xff]  ;;  %2333 = vst.msk [vmem:[#allocation3 + $0x69] sm:$0xff] %vm385_vm2, %v2245_v4 }
 0x1da   : > { %v1145_v3 = vpop.permute.xlu0 %1144  ;;  %2420 = vst.msk [vmem:[#allocation2 + $0xc0] sm:$0xff] %vm385_vm2, %v7129_v30  ;;  %v2720_v22 = vrot.slane %v7129_v30, 2 }
 0x1db   : > { %1214 = vst.msk [vmem:[#allocation2 + $0x278] sm:$0xff] %vm643_vm3, %v1145_v3  ;;  %v810_v63 = vpop.permute.xlu1 %809  ;;  %v1628_v31 = vld [vmem:[#allocation2 + $0x258] sm:$0xff]  ;;  %v1894_v3 = vpop.f32.mrb[16].mxu0 }
 0x1dc   : > { %880 = vst.msk [vmem:[#allocation2 + $0x270] sm:$0xff] %vm853_vm4, %v810_v63  ;;  %3383 = vrot.lane.b32.xlu0 %v7095_v26, %s5201_s29  ;;  %v1895_v63 = vadd.f32 %v6728_v58, %v1894_v3  ;;  %v1896_v48 = vpop.f32.mrb[17].mxu0 }
 0x1dd   : > { %2788 = vrot.lane.b32.xlu1 %v7016_v61, %s5199_s24 }
 0x1de   : > { %v1275_v56 = vpop.permute.xlu0 %1274  ;;  %v1629_v53 = vld [vmem:[#allocation2 + $0x260] sm:$0xff] }
 0x1df   : > { %1344 = vst.msk [vmem:[#allocation2 + $0x278] sm:$0xff] %vm853_vm4, %v1275_v56  ;;  %v941_v25 = vpop.permute.xlu1 %940  ;;  %1977 = vmatprep.mubr.f32.mxu0 %v1629_v53  ;;  %v2120_v56 = vadd.f32 %v6648_v15, %v1895_v63 }
 0x1e0   : > { %1011 = vst.msk [vmem:[#allocation2 + $0x270] sm:$0xff] %vm984_vm5, %v941_v25  ;;  %1978 = vmatmul.mubr.f32.gmra.mrb[50].mxu0 %v1628_v31  ;;  %3121 = vrot.lane.b32.xlu0 %v7098_v8, %s5200_s28  ;;  %v7158_v16 = vld [vmem:[#allocation3 + $0x68] sm:$0xff]  ;;  %v2372_v31 = vld [vmem:[#allocation3 + $0x70] sm:$0x3] }
 0x1e1   : > { %2918 = vrot.lane.b32.xlu1 %v7051_v28, %s5201_s29  ;;  %v2512_v28 = vrot.slane %v7129_v30, 1  ;;  %v2513_v4 = vrot.slane %v7158_v16, 1  ;;  %2421 = vst.msk [vmem:[#allocation2 + $0xd8] sm:$0xff] %vm385_vm2, %v7158_v16 }
 0x1e2   : > { %v1409_v38 = vpop.permute.xlu0 %1408 }
 0x1e3   : > { %1478 = vst.msk [vmem:[#allocation2 + $0x278] sm:$0xff] %vm984_vm5, %v1409_v38  ;;  %v602_v13 = vpop.permute.xlu1 %601  ;;  %v2515_v38 = vrot.slane %v2372_v31, 1  ;;  %v7170_v15 = vsel %vm466_vm1, %v2512_v28, %v2513_v4 }
 0x1e4   : > { %671 = vst.msk [vmem:[#allocation2 + $0x288] sm:$0xff] %vm643_vm3, %v602_v13  ;;  %3251 = vrot.lane.b32.xlu0 %v7129_v30, %s5199_s24 }
 0x1e5   : > { %2582 = vrot.lane.b32.xlu1 %v7013_v57, %s5200_s28  ;;  %v2721_v57 = vrot.slane %v7158_v16, 2  ;;  %v7173_v3 = vsel %vm466_vm1, %v2513_v4, %v2515_v38  ;;  %3082 = vst.msk [vmem:[#allocation2 + $0x98] sm:$0xff] %vm385_vm2, %v7170_v15 }
 0x1e6   : > { %v1147_v17 = vpop.permute.xlu0 %1146  ;;  %3083 = vst.msk [vmem:[#allocation2 + $0xb0] sm:$0xff] %vm385_vm2, %v7173_v3 }
 0x1e7   : > { %1215 = vst.msk [vmem:[#allocation2 + $0x290] sm:$0xff] %vm643_vm3, %v1147_v17  ;;  %v812_v61 = vpop.permute.xlu1 %811  ;;  %v1631_v18 = vld [vmem:[#allocation2 + $0x270] sm:$0xff]  ;;  %v2723_v17 = vrot.slane %v2372_v31, 2  ;;  %v7176_v63 = vsel %vm676_vm0, %v2720_v22, %v2721_v57 }
 0x1e8   : > { %881 = vst.msk [vmem:[#allocation2 + $0x288] sm:$0xff] %vm853_vm4, %v812_v61  ;;  %v2246_v61 = vmax.f32 %v2120_v56, 0.0  ;;  %3385 = vrot.lane.b32.xlu0 %v7170_v15, %s5201_s29 }
 0x1e9   : > { %2790 = vrot.lane.b32.xlu1 %v7028_v50, %s5199_s24  ;;  %3546 = vst.msk [vmem:[#allocation2 + $0x70] sm:$0xff] %vm385_vm2, %v7176_v63  ;;  %v7189_v48 = vsel %vm676_vm0, %v2721_v57, %v2723_v17 }
 0x1ea   : > { %v1277_v53 = vpop.permute.xlu0 %1276  ;;  %v1632_v25 = vld [vmem:[#allocation2 + $0x278] sm:$0xff]  ;;  %2334 = vst.msk [vmem:[#allocation3 + $0x79] sm:$0xff] %vm385_vm2, %v2246_v61  ;;  %3547 = vst.msk [vmem:[#allocation2 + $0x88] sm:$0xff] %vm385_vm2, %v7189_v48 }
 0x1eb   : > { %1345 = vst.msk [vmem:[#allocation2 + $0x290] sm:$0xff] %vm853_vm4, %v1277_v53  ;;  %v943_v13 = vpop.permute.xlu1 %942  ;;  %1982 = vmatprep.mubr.f32.mxu0 %v1632_v25 }
 0x1ec   : > { %1012 = vst.msk [vmem:[#allocation2 + $0x288] sm:$0xff] %vm984_vm5, %v943_v13  ;;  %1983 = vmatmul.mubr.f32.gmra.mrb[52].mxu0 %v1631_v18  ;;  %3123 = vrot.lane.b32.xlu0 %v7111_v60, %s5200_s28 }
 0x1ed   : > { %2920 = vrot.lane.b32.xlu1 %v7080_v44, %s5201_s29 }
 0x1ee   : > { %v1411_v18 = vpop.permute.xlu0 %1410 }
 0x1ef   : > { %1479 = vst.msk [vmem:[#allocation2 + $0x290] sm:$0xff] %vm984_vm5, %v1411_v18  ;;  %v604_v28 = vpop.permute.xlu1 %603 }
 0x1f0   : > { %672 = vst.msk [vmem:[#allocation2 + $0x2a0] sm:$0xff] %vm643_vm3, %v604_v28  ;;  %3253 = vrot.lane.b32.xlu0 %v7158_v16, %s5199_s24 }
 0x1f1   : > { %2584 = vrot.lane.b32.xlu1 %v7092_v24, %s5200_s28  ;;  %v7207_v4 = vld [vmem:[#allocation3 + $0x78] sm:$0xff] }
 0x1f2   : > { %v1149_v50 = vpop.permute.xlu0 %1148  ;;  %v1899_v22 = vpop.f32.mrb[18].mxu0  ;;  %2422 = vst.msk [vmem:[#allocation2 + $0xf0] sm:$0xff] %vm385_vm2, %v7207_v4 }
 0x1f3   : > { %1216 = vst.msk [vmem:[#allocation2 + $0x2a8] sm:$0xff] %vm643_vm3, %v1149_v50  ;;  %v814_v31 = vpop.permute.xlu1 %813  ;;  %v1900_v56 = vadd.f32 %v6728_v58, %v1899_v22  ;;  %v1901_v53 = vpop.f32.mrb[19].mxu0  ;;  %v1634_v25 = vld [vmem:[#allocation2 + $0x288] sm:$0xff] }
 0x1f4   : > { %882 = vst.msk [vmem:[#allocation2 + $0x2a0] sm:$0xff] %vm853_vm4, %v814_v31  ;;  %3387 = vrot.lane.b32.xlu0 %v7173_v3, %s5201_s29 }
 0x1f5   : > { %v2125_v44 = vadd.f32 %v6644_v10, %v1900_v56  ;;  %2792 = vrot.lane.b32.xlu1 %v7098_v8, %s5199_s24  ;;  %v7218_v10 = vpop.f32.mrb[20].mxu1 }
 0x1f6   : > { %v1279_v38 = vpop.permute.xlu0 %1278  ;;  %v1635_v57 = vld [vmem:[#allocation2 + $0x290] sm:$0xff]  ;;  %v7221_v61 = vpop.f32.mrb[21].mxu1 }
 0x1f7   : > { %1346 = vst.msk [vmem:[#allocation2 + $0x2a8] sm:$0xff] %vm853_vm4, %v1279_v38  ;;  %v945_v13 = vpop.permute.xlu1 %944  ;;  %1987 = vmatprep.mubr.f32.mxu0 %v1635_v57  ;;  %v2247_v17 = vmax.f32 %v2125_v44, 0.0  ;;  %v2725_v44 = vrot.slane %v7207_v4, 2 }
 0x1f8   : > { %1013 = vst.msk [vmem:[#allocation2 + $0x2a0] sm:$0xff] %vm984_vm5, %v945_v13  ;;  %1988 = vmatmul.mubr.f32.gmra.mrb[54].mxu0 %v1634_v25  ;;  %3125 = vrot.lane.b32.xlu0 %v7176_v63, %s5200_s28 }
 0x1f9   : > { %2335 = vst.msk [vmem:[#allocation3 + $0x81] sm:$0xff] %vm385_vm2, %v2247_v17  ;;  %2922 = vrot.lane.b32.xlu1 %v7129_v30, %s5201_s29  ;;  %v2517_v30 = vrot.slane %v7207_v4, 1 }
 0x1fa   : > { %v1413_v24 = vpop.permute.xlu0 %1412 }
 0x1fb   : > { %1480 = vst.msk [vmem:[#allocation2 + $0x2a8] sm:$0xff] %vm984_vm5, %v1413_v24  ;;  %v606_v18 = vpop.permute.xlu1 %605 }
 0x1fc   : > { %673 = vst.msk [vmem:[#allocation2 + $0x2b8] sm:$0xff] %vm643_vm3, %v606_v18  ;;  %3255 = vrot.lane.b32.xlu0 %v7207_v4, %s5199_s24 }
 0x1fd   : > { %2586 = vrot.lane.b32.xlu1 %v7095_v26, %s5200_s28 }
 0x1fe   : > { %v1151_v28 = vpop.permute.xlu0 %1150 }
 0x1ff   : > { %1217 = vst.msk [vmem:[#allocation2 + $0x2c0] sm:$0xff] %vm643_vm3, %v1151_v28  ;;  %v816_v8 = vpop.permute.xlu1 %815  ;;  %v1904_v50 = vpop.f32.mrb[20].mxu0  ;;  %v1637_v56 = vld [vmem:[#allocation2 + $0x2a0] sm:$0xff] }
 0x200   : > { %883 = vst.msk [vmem:[#allocation2 + $0x2b8] sm:$0xff] %vm853_vm4, %v816_v8  ;;  %v1905_v31 = vadd.f32 %v6728_v58, %v1904_v50  ;;  %v1906_v22 = vpop.f32.mrb[21].mxu0  ;;  %v7236_v53 = vld [vmem:[#allocation3 + $0x80] sm:$0xff]  ;;  %v2375_v25 = vld [vmem:[#allocation3 + $0x88] sm:$0x3] }
 0x201   : > { %v2518_v58 = vrot.slane %v7236_v53, 1  ;;  %2423 = vst.msk [vmem:[#allocation2 + $0x108] sm:$0xff] %vm385_vm2, %v7236_v53  ;;  %v2520_v17 = vrot.slane %v2375_v25, 1  ;;  %v2726_v26 = vrot.slane %v7236_v53, 2  ;;  %v2728_v18 = vrot.slane %v2375_v25, 2  ;;  %2794 = vrot.lane.b32.xlu1 %v7111_v60, %s5199_s24 }
 0x202   : > { %v2130_v38 = vadd.f32 %v6709_v37, %v1905_v31  ;;  %v1281_v57 = vpop.permute.xlu0 %1280  ;;  %v1638_v13 = vld [vmem:[#allocation2 + $0x2a8] sm:$0xff] }
 0x203   : > { %1347 = vst.msk [vmem:[#allocation2 + $0x2c0] sm:$0xff] %vm853_vm4, %v1281_v57  ;;  %v947_v24 = vpop.permute.xlu1 %946  ;;  %1992 = vmatprep.mubr.f32.mxu0 %v1638_v13  ;;  %v7248_v37 = vsel %vm466_vm1, %v2517_v30, %v2518_v58  ;;  %v7251_v8 = vsel %vm466_vm1, %v2518_v58, %v2520_v17  ;;  %v7254_v50 = vsel %vm676_vm0, %v2725_v44, %v2726_v26  ;;  %v7283_v44 = vld [vmem:[%s8715_s2] ss:$0 sm:$0xff] }
 0x204   : > { %v2248_v28 = vmax.f32 %v2130_v38, 0.0  ;;  %1014 = vst.msk [vmem:[#allocation2 + $0x2b8] sm:$0xff] %vm984_vm5, %v947_v24  ;;  %1993 = vmatmul.mubr.f32.gmra.mrb[56].mxu0 %v1637_v56  ;;  %3389 = vrot.lane.b32.xlu0 %v7248_v37, %s5201_s29  ;;  %v7267_v31 = vsel %vm676_vm0, %v2726_v26, %v2728_v18 }
 0x205   : > { %3084 = vst.msk [vmem:[#allocation2 + $0xc8] sm:$0xff] %vm385_vm2, %v7248_v37  ;;  %3085 = vst.msk [vmem:[#allocation2 + $0xe0] sm:$0xff] %vm385_vm2, %v7251_v8  ;;  %2924 = vrot.lane.b32.xlu1 %v7158_v16, %s5201_s29 }
 0x206   : > { %3548 = vst.msk [vmem:[#allocation2 + $0xa0] sm:$0xff] %vm385_vm2, %v7254_v50  ;;  %2336 = vst.msk [vmem:[#allocation3 + $0x91] sm:$0xff] %vm385_vm2, %v2248_v28  ;;  %v1415_v22 = vpop.permute.xlu0 %1414 }
 0x207   : > { %3549 = vst.msk [vmem:[#allocation2 + $0xb8] sm:$0xff] %vm385_vm2, %v7267_v31  ;;  %v608_v56 = vpop.permute.xlu1 %607 }
 0x208   : > { %1481 = vst.msk [vmem:[#allocation2 + $0x2c0] sm:$0xff] %vm984_vm5, %v1415_v22  ;;  %3127 = vrot.lane.b32.xlu0 %v7189_v48, %s5200_s28 }
 0x209   : > { %674 = vst.msk [vmem:[#allocation2 + $0x2d0] sm:$0xff] %vm643_vm3, %v608_v56  ;;  %2588 = vrot.lane.b32.xlu1 %v7170_v15, %s5200_s28 }
 0x20a   : > { %v1153_v60 = vpop.permute.xlu0 %1152 }
 0x20b   : > { %1218 = vst.msk [vmem:[#allocation2 + $0x2d8] sm:$0xff] %vm643_vm3, %v1153_v60  ;;  %v818_v30 = vpop.permute.xlu1 %817  ;;  %v1909_v25 = vpop.f32.mrb[22].mxu0  ;;  %v1640_v16 = vld [vmem:[#allocation2 + $0x2b8] sm:$0xff] }
 0x20c   : > { %884 = vst.msk [vmem:[#allocation2 + $0x2d0] sm:$0xff] %vm853_vm4, %v818_v30  ;;  %v1910_v38 = vadd.f32 %v7283_v44, %v1909_v25  ;;  %v1911_v57 = vpop.f32.mrb[23].mxu0  ;;  %3257 = vrot.lane.b32.xlu0 %v7236_v53, %s5199_s24 }
 0x20d   : > { %v7290_v13 = vld [vmem:[#allocation3 + $0x90] sm:$0xff]  ;;  %2796 = vrot.lane.b32.xlu1 %v7176_v63, %s5199_s24 }
 0x20e   : > { %v2135_v58 = vadd.f32 %v6699_v33, %v1910_v38  ;;  %v1283_v17 = vpop.permute.xlu0 %1282  ;;  %2424 = vst.msk [vmem:[#allocation2 + $0x120] sm:$0xff] %vm385_vm2, %v7290_v13  ;;  %v7301_v33 = vpop.f32.mrb[22].mxu1 }
 0x20f   : > { %v1641_v26 = vld [vmem:[#allocation2 + $0x2c0] sm:$0xff]  ;;  %1348 = vst.msk [vmem:[#allocation2 + $0x2d8] sm:$0xff] %vm853_vm4, %v1283_v17  ;;  %v949_v24 = vpop.permute.xlu1 %948  ;;  %v7304_v28 = vpop.f32.mrb[23].mxu1 }
 0x210   : > { %1997 = vmatprep.mubr.f32.mxu0 %v1641_v26  ;;  %v2249_v18 = vmax.f32 %v2135_v58, 0.0  ;;  %1015 = vst.msk [vmem:[#allocation2 + $0x2d0] sm:$0xff] %vm984_vm5, %v949_v24  ;;  %3391 = vrot.lane.b32.xlu0 %v7251_v8, %s5201_s29  ;;  %v2730_v58 = vrot.slane %v7290_v13, 2 }
 0x211   : > { %1998 = vmatmul.mubr.f32.gmra.mrb[58].mxu0 %v1640_v16  ;;  %2926 = vrot.lane.b32.xlu1 %v7207_v4, %s5201_s29  ;;  %v2522_v4 = vrot.slane %v7290_v13, 1 }
 0x212   : > { %2337 = vst.msk [vmem:[#allocation3 + $0x99] sm:$0xff] %vm385_vm2, %v2249_v18  ;;  %v1417_v15 = vpop.permute.xlu0 %1416 }
 0x213   : > { %1482 = vst.msk [vmem:[#allocation2 + $0x2d8] sm:$0xff] %vm984_vm5, %v1417_v15  ;;  %v610_v22 = vpop.permute.xlu1 %609 }
 0x214   : > { %675 = vst.msk [vmem:[#allocation2 + $0x2e8] sm:$0xff] %vm643_vm3, %v610_v22  ;;  %3129 = vrot.lane.b32.xlu0 %v7254_v50, %s5200_s28 }
 0x215   : > { %2590 = vrot.lane.b32.xlu1 %v7173_v3, %s5200_s28 }
 0x216   : > { %v1155_v56 = vpop.permute.xlu0 %1154 }
 0x217   : > { %1219 = vst.msk [vmem:[#allocation2 + $0x2f0] sm:$0xff] %vm643_vm3, %v1155_v56  ;;  %v820_v63 = vpop.permute.xlu1 %819  ;;  %v1914_v60 = vpop.f32.mrb[24].mxu0  ;;  %v1643_v38 = vld [vmem:[#allocation2 + $0x2d0] sm:$0xff] }
 0x218   : > { %885 = vst.msk [vmem:[#allocation2 + $0x2e8] sm:$0xff] %vm853_vm4, %v820_v63  ;;  %v1915_v30 = vadd.f32 %v7283_v44, %v1914_v60  ;;  %v1916_v25 = vpop.f32.mrb[25].mxu0  ;;  %3259 = vrot.lane.b32.xlu0 %v7290_v13, %s5199_s24 }
 0x219   : > { %v7319_v57 = vld [vmem:[#allocation3 + $0x98] sm:$0xff]  ;;  %v2378_v16 = vld [vmem:[#allocation3 + $0xa0] sm:$0x3]  ;;  %2798 = vrot.lane.b32.xlu1 %v7189_v48, %s5199_s24 }
 0x21a   : > { %v2140_v17 = vadd.f32 %v6817_v62, %v1915_v30  ;;  %v1285_v26 = vpop.permute.xlu0 %1284  ;;  %v1644_v24 = vld [vmem:[#allocation2 + $0x2d8] sm:$0xff]  ;;  %v2523_v18 = vrot.slane %v7319_v57, 1  ;;  %2425 = vst.msk [vmem:[#allocation2 + $0x138] sm:$0xff] %vm385_vm2, %v7319_v57  ;;  %v2525_v15 = vrot.slane %v2378_v16, 1  ;;  %v2731_v3 = vrot.slane %v7319_v57, 2 }
 0x21b   : > { %1349 = vst.msk [vmem:[#allocation2 + $0x2f0] sm:$0xff] %vm853_vm4, %v1285_v26  ;;  %v951_v22 = vpop.permute.xlu1 %950  ;;  %2002 = vmatprep.mubr.f32.mxu0 %v1644_v24  ;;  %v2733_v56 = vrot.slane %v2378_v16, 2 }
 0x21c   : > { %v2250_v63 = vmax.f32 %v2140_v17, 0.0  ;;  %1016 = vst.msk [vmem:[#allocation2 + $0x2e8] sm:$0xff] %vm984_vm5, %v951_v22  ;;  %2003 = vmatmul.mubr.f32.gmra.mrb[60].mxu0 %v1643_v38  ;;  %v7331_v62 = vsel %vm466_vm1, %v2522_v4, %v2523_v18  ;;  %v7334_v60 = vsel %vm466_vm1, %v2523_v18, %v2525_v15  ;;  %v7337_v30 = vsel %vm676_vm0, %v2730_v58, %v2731_v3 }
 0x21d   : > { %3393 = vrot.lane.b32.xlu0 %v7331_v62, %s5201_s29  ;;  %3086 = vst.msk [vmem:[#allocation2 + $0xf8] sm:$0xff] %vm385_vm2, %v7331_v62  ;;  %3087 = vst.msk [vmem:[#allocation2 + $0x110] sm:$0xff] %vm385_vm2, %v7334_v60  ;;  %v7350_v25 = vsel %vm676_vm0, %v2731_v3, %v2733_v56  ;;  %2928 = vrot.lane.b32.xlu1 %v7236_v53, %s5201_s29 }
 0x21e   : > { %3550 = vst.msk [vmem:[#allocation2 + $0xd0] sm:$0xff] %vm385_vm2, %v7337_v30  ;;  %2338 = vst.msk [vmem:[#allocation3 + $0xa9] sm:$0xff] %vm385_vm2, %v2250_v63  ;;  %v1419_v38 = vpop.permute.xlu0 %1418  ;;  %v3576_v63 = vld [vmem:[#allocation2 + $0x10] sm:$0xff] }
 0x21f   : > { %3551 = vst.msk [vmem:[#allocation2 + $0xe8] sm:$0xff] %vm385_vm2, %v7350_v25  ;;  %v2573_v4 = vpop.permute.xlu1 %2572 }
 0x220   : > { %1483 = vst.msk [vmem:[#allocation2 + $0x2f0] sm:$0xff] %vm984_vm5, %v1419_v38 }
 0x221   : > { %2668 = vst.msk [vmem:[#allocation2] sm:$0xff] %vm643_vm3, %v2573_v4  ;;  %3131 = vrot.lane.b32.xlu0 %v7267_v31, %s5200_s28  ;;  %2592 = vrot.lane.b32.xlu1 %v7248_v37, %s5200_s28  ;;  %v3579_v4 = vld [vmem:[#allocation2 + $0x28] sm:$0xff] }
 0x222   : > { %v3114_v48 = vpop.permute.xlu0 %3113 }
 0x223   : > { %3209 = vst.msk [vmem:[#allocation2 + $0x8] sm:$0xff] %vm643_vm3, %v3114_v48  ;;  %v2781_v16 = vpop.permute.xlu1 %2780  ;;  %v1919_v58 = vpop.f32.mrb[26].mxu0  ;;  %v1646_v24 = vld [vmem:[#allocation2 + $0x2e8] sm:$0xff]  ;;  %v3582_v48 = vld [vmem:[#allocation2 + $0x40] sm:$0xff] }
 0x224   : > { %2876 = vst.msk [vmem:[#allocation2] sm:$0xff] %vm853_vm4, %v2781_v16  ;;  %v1920_v17 = vadd.f32 %v7283_v44, %v1919_v58  ;;  %v1921_v26 = vpop.f32.mrb[27].mxu0 }
 0x225   : > { %3261 = vrot.lane.b32.xlu0 %v7319_v57, %s5199_s24  ;;  %v7368_v18 = vld [vmem:[#allocation3 + $0xa8] sm:$0xff]  ;;  %2800 = vrot.lane.b32.xlu1 %v7254_v50, %s5199_s24  ;;  %v3585_v50 = vld [vmem:[#allocation2 + $0x58] sm:$0xff] }
 0x226   : > { %v2145_v53 = vadd.f32 %v6805_v11, %v1920_v17  ;;  %v3244_v15 = vpop.permute.xlu0 %3243  ;;  %2426 = vst.msk [vmem:[#allocation2 + $0x150] sm:$0xff] %vm385_vm2, %v7368_v18  ;;  %v7378_v11 = vpop.f32.mrb[24].mxu1 }
 0x227   : > { %v1647_v3 = vld [vmem:[#allocation2 + $0x2f0] sm:$0xff]  ;;  %3339 = vst.msk [vmem:[#allocation2 + $0x8] sm:$0xff] %vm853_vm4, %v3244_v15  ;;  %v2911_v22 = vpop.permute.xlu1 %2910  ;;  %v7383_v37 = vpop.f32.mrb[25].mxu1  ;;  %v2735_v15 = vrot.slane %v7368_v18, 2 }
 0x228   : > { %2007 = vmatprep.mubr.f32.mxu0 %v1647_v3  ;;  %v2251_v56 = vmax.f32 %v2145_v53, 0.0  ;;  %3006 = vst.msk [vmem:[#allocation2] sm:$0xff] %vm984_vm5, %v2911_v22  ;;  %v3588_v53 = vld [vmem:[#allocation2 + $0x70] sm:$0xff]  ;;  %v2527_v22 = vrot.slane %v7368_v18, 1 }
 0x229   : > { %2008 = vmatmul.mubr.f32.gmra.mrb[62].mxu0 %v1646_v24  ;;  %3395 = vrot.lane.b32.xlu0 %v7334_v60, %s5201_s29 }
 0x22a   : > { %4891 = vmatprep.mubr.msk.f32.mxu0 %vm385_vm2, %v3576_v63  ;;  %2339 = vst.msk [vmem:[#allocation3 + $0xb1] sm:$0xff] %vm385_vm2, %v2251_v56  ;;  %2930 = vrot.lane.b32.xlu1 %v7290_v13, %s5201_s29  ;;  %v3378_v26 = vpop.permute.xlu0 %3377 }
 0x22b   : > { %v2575_v38 = vpop.permute.xlu1 %2574  ;;  %3473 = vst.msk [vmem:[#allocation2 + $0x8] sm:$0xff] %vm984_vm5, %v3378_v26 }
 0x22c   : > { %2669 = vst.msk [vmem:[#allocation2 + $0x18] sm:$0xff] %vm643_vm3, %v2575_v38 }
 0x22d   : > { %4892 = vmatmul.mubr.msk.f32.vlgmr.msra.gmra.mrb[64].mxu0 %vm385_vm2, %v3579_v4  ;;  %3133 = vrot.lane.b32.xlu0 %v7337_v30, %s5200_s28 }
 0x22e   : > { %4894 = vmatprep.mubr.msk.f32.mxu0 %vm385_vm2, %v3582_v48  ;;  %2594 = vrot.lane.b32.xlu1 %v7251_v8, %s5200_s28  ;;  %v3116_v26 = vpop.permute.xlu0 %3115 }
 0x22f   : > { %v1924_v16 = vpop.f32.mrb[28].mxu0  ;;  %v2783_v58 = vpop.permute.xlu1 %2782  ;;  %3210 = vst.msk [vmem:[#allocation2 + $0x20] sm:$0xff] %vm643_vm3, %v3116_v26 }
 0x230   : > { %v1925_v17 = vadd.f32 %v7283_v44, %v1924_v16  ;;  %2877 = vst.msk [vmem:[#allocation2 + $0x18] sm:$0xff] %vm853_vm4, %v2783_v58  ;;  %v1926_v24 = vpop.f32.mrb[29].mxu0  ;;  %v3591_v16 = vld [vmem:[#allocation2 + $0x88] sm:$0xff] }
 0x231   : > { %4895 = vmatmul.mubr.msk.f32.gmra.mrb[66].mxu0 %vm385_vm2, %v3585_v50  ;;  %3263 = vrot.lane.b32.xlu0 %v7368_v18, %s5199_s24  ;;  %v7400_v13 = vld [vmem:[#allocation3 + $0xb0] sm:$0xff]  ;;  %v2381_v3 = vld [vmem:[#allocation3 + $0xb8] sm:$0x3] }
 0x232   : > { %4897 = vmatprep.mubr.msk.f32.mxu0 %vm385_vm2, %v3588_v53  ;;  %v2150_v56 = vadd.f32 %v6971_v47, %v1925_v17  ;;  %v2528_v63 = vrot.slane %v7400_v13, 1  ;;  %v2736_v38 = vrot.slane %v7400_v13, 2  ;;  %v2738_v4 = vrot.slane %v2381_v3, 2  ;;  %2427 = vst.msk [vmem:[#allocation2 + $0x168] sm:$0xff] %vm385_vm2, %v7400_v13  ;;  %v3594_v47 = vld [vmem:[#allocation2 + $0xa0] sm:$0xff]  ;;  %2802 = vrot.lane.b32.xlu1 %v7267_v31, %s5199_s24 }
 0x233   : > { %v2913_v48 = vpop.permute.xlu1 %2912  ;;  %v2530_v58 = vrot.slane %v2381_v3, 1  ;;  %v3597_v3 = vld [vmem:[#allocation2 + $0xb8] sm:$0xff]  ;;  %v3574_v31 = vld [vmem:[#allocation2] sm:$0xff] }
 0x234   : > { %v2252_v50 = vmax.f32 %v2150_v56, 0.0  ;;  %3007 = vst.msk [vmem:[#allocation2 + $0x18] sm:$0xff] %vm984_vm5, %v2913_v48  ;;  %v7413_v8 = vsel %vm466_vm1, %v2527_v22, %v2528_v63  ;;  %v7416_v17 = vsel %vm676_vm0, %v2735_v15, %v2736_v38  ;;  %v7419_v24 = vsel %vm676_vm0, %v2736_v38, %v2738_v4  ;;  %v3246_v22 = vpop.permute.xlu0 %3245  ;;  %v3575_v56 = vld [vmem:[#allocation2 + $0x8] sm:$0xff]  ;;  %v3600_v38 = vld [vmem:[#allocation2 + $0xd0] sm:$0xff] }
 0x235   : > { %4898 = vmatmul.mubr.msk.f32.gmra.mrb[68].mxu0 %vm385_vm2, %v3591_v16  ;;  %3552 = vst.msk [vmem:[#allocation2 + $0x100] sm:$0xff] %vm385_vm2, %v7416_v17  ;;  %3553 = vst.msk [vmem:[#allocation2 + $0x118] sm:$0xff] %vm385_vm2, %v7419_v24  ;;  %3397 = vrot.lane.b32.xlu0 %v7413_v8, %s5201_s29  ;;  %v7432_v53 = vsel %vm466_vm1, %v2528_v63, %v2530_v58  ;;  %v3603_v48 = vld [vmem:[#allocation2 + $0xe8] sm:$0xff] }
 0x236   : > { %4900 = vmatprep.mubr.msk.f32.mxu0 %vm385_vm2, %v3594_v47  ;;  %3088 = vst.msk [vmem:[#allocation2 + $0x128] sm:$0xff] %vm385_vm2, %v7413_v8  ;;  %2340 = vst.msk [vmem:[#allocation3 + $0xc1] sm:$0xff] %vm385_vm2, %v2252_v50  ;;  %3873 = vmatprep.mubr.f32.mxu1 %v3575_v56 }
 0x237   : > { %3089 = vst.msk [vmem:[#allocation2 + $0x140] sm:$0xff] %vm385_vm2, %v7432_v53  ;;  %v2577_v15 = vpop.permute.xlu1 %2576  ;;  %2932 = vrot.lane.b32.xlu1 %v7319_v57, %s5201_s29  ;;  %3874 = vmatmul.mubr.f32.vlgmr.msra.gmra.mrb[32].mxu1 %v3574_v31 }
 0x238   : > { %2670 = vst.msk [vmem:[#allocation2 + $0x30] sm:$0xff] %vm643_vm3, %v2577_v15  ;;  %v3380_v58 = vpop.permute.xlu0 %3379  ;;  %5075 = vmatpush3.bf16.msra.mxu1 %v6876_v42 }
 0x239   : > { %4901 = vmatmul.mubr.msk.f32.gmra.mrb[70].mxu0 %vm385_vm2, %v3597_v3  ;;  %3340 = vst.msk [vmem:[#allocation2 + $0x20] sm:$0xff] %vm853_vm4, %v3246_v22  ;;  %3135 = vrot.lane.b32.xlu0 %v7350_v25, %s5200_s28 }
 0x23a   : > { %4903 = vmatprep.mubr.msk.f32.mxu0 %vm385_vm2, %v3600_v38  ;;  %3474 = vst.msk [vmem:[#allocation2 + $0x20] sm:$0xff] %vm984_vm5, %v3380_v58  ;;  %5074 = vmatprep.subr.bf16.mxu1 %v6911_v55 }
 0x23b   : > { %v1929_v63 = vpop.f32.mrb[30].mxu0  ;;  %v2785_v4 = vpop.permute.xlu1 %2784  ;;  %2596 = vrot.lane.b32.xlu1 %v7331_v62, %s5200_s28  ;;  %v3577_v31 = vld [vmem:[#allocation2 + $0x18] sm:$0xff] }
 0x23c   : > { %v1930_v16 = vadd.f32 %v7283_v44, %v1929_v63  ;;  %2878 = vst.msk [vmem:[#allocation2 + $0x30] sm:$0xff] %vm853_vm4, %v2785_v4  ;;  %v1931_v50 = vpop.f32.mrb[31].mxu0  ;;  %v3606_v26 = vld [vmem:[#allocation2 + $0x100] sm:$0xff]  ;;  %v3609_v15 = vld [vmem:[#allocation2 + $0x118] sm:$0xff]  ;;  %v3118_v22 = vpop.permute.xlu0 %3117  ;;  %5076 = vmatpush3.bf16.msra.mxu1 %v6911_v55 }
 0x23d   : > { %4904 = vmatmul.mubr.msk.f32.gmra.mrb[72].mxu0 %vm385_vm2, %v3603_v48  ;;  %v7453_v57 = vld [vmem:[#allocation3 + $0xc0] sm:$0xff]  ;;  %3265 = vrot.lane.b32.xlu0 %v7400_v13, %s5199_s24  ;;  %3211 = vst.msk [vmem:[#allocation2 + $0x38] sm:$0xff] %vm643_vm3, %v3118_v22 }
 0x23e   : > { %4906 = vmatprep.mubr.msk.f32.mxu0 %vm385_vm2, %v3606_v26  ;;  %v2155_v47 = vadd.f32 %v6967_v52, %v1930_v16  ;;  %2428 = vst.msk [vmem:[#allocation2 + $0x180] sm:$0xff] %vm385_vm2, %v7453_v57  ;;  %v7467_v52 = vpop.f32.mrb[26].mxu1  ;;  %5067 = vmatprep.subr.bf16.mxu1 %v8767_v19  ;;  %v2740_v58 = vrot.slane %v7453_v57, 2 }
 0x23f   : > { %v2915_v42 = vpop.permute.xlu1 %2914  ;;  %2804 = vrot.lane.b32.xlu1 %v7337_v30, %s5199_s24  ;;  %v7475_v62 = vpop.f32.mrb[27].mxu1 }
 0x240   : > { %v2253_v3 = vmax.f32 %v2155_v47, 0.0  ;;  %3008 = vst.msk [vmem:[#allocation2 + $0x30] sm:$0xff] %vm984_vm5, %v2915_v42  ;;  %v3248_v38 = vpop.permute.xlu0 %3247  ;;  %v2532_v47 = vrot.slane %v7453_v57, 1 }
 0x241   : > { %4907 = vmatmul.mubr.msk.f32.gmra.mrb[74].mxu0 %vm385_vm2, %v3609_v15  ;;  %3399 = vrot.lane.b32.xlu0 %v7432_v53, %s5201_s29  ;;  %v3578_v55 = vld [vmem:[#allocation2 + $0x20] sm:$0xff]  ;;  %3341 = vst.msk [vmem:[#allocation2 + $0x38] sm:$0xff] %vm853_vm4, %v3248_v38 }
 0x242   : > { %2341 = vst.msk [vmem:[#allocation3 + $0xc9] sm:$0xff] %vm385_vm2, %v2253_v3  ;;  %3878 = vmatprep.mubr.f32.mxu1 %v3578_v55 }
 0x243   : > { %v2579_v56 = vpop.permute.xlu1 %2578  ;;  %2934 = vrot.lane.b32.xlu1 %v7368_v18, %s5201_s29  ;;  %3879 = vmatmul.mubr.f32.gmra.mrb[34].mxu1 %v3577_v31 }
 0x244   : > { %2671 = vst.msk [vmem:[#allocation2 + $0x48] sm:$0xff] %vm643_vm3, %v2579_v56  ;;  %v3382_v48 = vpop.permute.xlu0 %3381 }
 0x245   : > { %3137 = vrot.lane.b32.xlu0 %v7416_v17, %s5200_s28  ;;  %3475 = vst.msk [vmem:[#allocation2 + $0x38] sm:$0xff] %vm984_vm5, %v3382_v48 }
 0x247   : > { %v1934_v63 = vpop.f32.mrb[32].mxu0  ;;  %v2787_v30 = vpop.permute.xlu1 %2786  ;;  %2598 = vrot.lane.b32.xlu1 %v7334_v60, %s5200_s28 }
 0x248   : > { %v1935_v4 = vadd.f32 %v7283_v44, %v1934_v63  ;;  %2879 = vst.msk [vmem:[#allocation2 + $0x48] sm:$0xff] %vm853_vm4, %v2787_v30  ;;  %v1936_v16 = vpop.f32.mrb[33].mxu0  ;;  %v3120_v55 = vpop.permute.xlu0 %3119 }
 0x249   : > { %v7487_v50 = vld [vmem:[#allocation3 + $0xc8] sm:$0xff]  ;;  %v2384_v26 = vld [vmem:[#allocation3 + $0xd0] sm:$0x3]  ;;  %3267 = vrot.lane.b32.xlu0 %v7453_v57, %s5199_s24  ;;  %3212 = vst.msk [vmem:[#allocation2 + $0x50] sm:$0xff] %vm643_vm3, %v3120_v55 }
 0x24a   : > { %v2160_v18 = vadd.f32 %v7065_v12, %v1935_v4  ;;  %v2533_v42 = vrot.slane %v7487_v50, 1  ;;  %v2741_v15 = vrot.slane %v7487_v50, 2  ;;  %v2743_v3 = vrot.slane %v2384_v26, 2  ;;  %2429 = vst.msk [vmem:[#allocation2 + $0x198] sm:$0xff] %vm385_vm2, %v7487_v50  ;;  %v3580_v16 = vld [vmem:[#allocation2 + $0x30] sm:$0xff] }
 0x24b   : > { %v2917_v22 = vpop.permute.xlu1 %2916  ;;  %v2535_v56 = vrot.slane %v2384_v26, 1  ;;  %2806 = vrot.lane.b32.xlu1 %v7350_v25, %s5199_s24 }
 0x24c   : > { %v2254_v38 = vmax.f32 %v2160_v18, 0.0  ;;  %3009 = vst.msk [vmem:[#allocation2 + $0x48] sm:$0xff] %vm984_vm5, %v2917_v22  ;;  %v7501_v12 = vsel %vm466_vm1, %v2532_v47, %v2533_v42  ;;  %v7504_v31 = vsel %vm676_vm0, %v2740_v58, %v2741_v15  ;;  %v7507_v60 = vsel %vm676_vm0, %v2741_v15, %v2743_v3  ;;  %v3250_v4 = vpop.permute.xlu0 %3249  ;;  %v3581_v48 = vld [vmem:[#allocation2 + $0x38] sm:$0xff] }
 0x24d   : > { %3554 = vst.msk [vmem:[#allocation2 + $0x130] sm:$0xff] %vm385_vm2, %v7504_v31  ;;  %3555 = vst.msk [vmem:[#allocation2 + $0x148] sm:$0xff] %vm385_vm2, %v7507_v60  ;;  %v7517_v63 = vsel %vm466_vm1, %v2533_v42, %v2535_v56  ;;  %3401 = vrot.lane.b32.xlu0 %v7501_v12, %s5201_s29  ;;  %3883 = vmatprep.mubr.f32.mxu1 %v3581_v48 }
 0x24e   : > { %3090 = vst.msk [vmem:[#allocation2 + $0x158] sm:$0xff] %vm385_vm2, %v7501_v12  ;;  %2342 = vst.msk [vmem:[#allocation3 + $0xd9] sm:$0xff] %vm385_vm2, %v2254_v38  ;;  %3884 = vmatmul.mubr.f32.gmra.mrb[36].mxu1 %v3580_v16 }
 0x24f   : > { %3091 = vst.msk [vmem:[#allocation2 + $0x170] sm:$0xff] %vm385_vm2, %v7517_v63  ;;  %v2581_v30 = vpop.permute.xlu1 %2580  ;;  %2936 = vrot.lane.b32.xlu1 %v7400_v13, %s5201_s29 }
 0x250   : > { %2672 = vst.msk [vmem:[#allocation2 + $0x60] sm:$0xff] %vm643_vm3, %v2581_v30  ;;  %v3384_v47 = vpop.permute.xlu0 %3383 }
 0x251   : > { %3342 = vst.msk [vmem:[#allocation2 + $0x50] sm:$0xff] %vm853_vm4, %v3250_v4  ;;  %3139 = vrot.lane.b32.xlu0 %v7419_v24, %s5200_s28 }
 0x252   : > { %3476 = vst.msk [vmem:[#allocation2 + $0x50] sm:$0xff] %vm984_vm5, %v3384_v47 }
 0x253   : > { %v1939_v25 = vpop.f32.mrb[34].mxu0  ;;  %v2789_v58 = vpop.permute.xlu1 %2788  ;;  %2600 = vrot.lane.b32.xlu1 %v7413_v8, %s5200_s28  ;;  %v3583_v48 = vld [vmem:[#allocation2 + $0x48] sm:$0xff] }
 0x254   : > { %v1940_v26 = vadd.f32 %v7283_v44, %v1939_v25  ;;  %2880 = vst.msk [vmem:[#allocation2 + $0x60] sm:$0xff] %vm853_vm4, %v2789_v58  ;;  %v1941_v18 = vpop.f32.mrb[35].mxu0  ;;  %v3612_v42 = vld [vmem:[#allocation2 + $0x130] sm:$0xff]  ;;  %v3615_v15 = vld [vmem:[#allocation2 + $0x148] sm:$0xff]  ;;  %v3122_v38 = vpop.permute.xlu0 %3121 }
 0x255   : > { %4909 = vmatprep.mubr.msk.f32.mxu0 %vm385_vm2, %v3612_v42  ;;  %v7536_v3 = vld [vmem:[#allocation3 + $0xd8] sm:$0xff]  ;;  %3269 = vrot.lane.b32.xlu0 %v7487_v50, %s5199_s24  ;;  %3213 = vst.msk [vmem:[#allocation2 + $0x68] sm:$0xff] %vm643_vm3, %v3122_v38  ;;  %v7548_v55 = vpop.f32.mrb[28].mxu1 }
 0x256   : > { %v2165_v13 = vadd.f32 %v7062_v34, %v1940_v26  ;;  %2430 = vst.msk [vmem:[#allocation2 + $0x1b0] sm:$0xff] %vm385_vm2, %v7536_v3  ;;  %4910 = vmatmul.mubr.msk.f32.gmra.mrb[76].mxu0 %vm385_vm2, %v3615_v15  ;;  %v7555_v34 = vpop.f32.mrb[29].mxu1  ;;  %v2745_v47 = vrot.slane %v7536_v3, 2  ;;  %v2537_v15 = vrot.slane %v7536_v3, 1 }
 0x257   : > { %v2919_v22 = vpop.permute.xlu1 %2918  ;;  %2808 = vrot.lane.b32.xlu1 %v7416_v17, %s5199_s24 }
 0x258   : > { %v2255_v56 = vmax.f32 %v2165_v13, 0.0  ;;  %3010 = vst.msk [vmem:[#allocation2 + $0x60] sm:$0xff] %vm984_vm5, %v2919_v22  ;;  %v3252_v30 = vpop.permute.xlu0 %3251 }
 0x259   : > { %3403 = vrot.lane.b32.xlu0 %v7517_v63, %s5201_s29  ;;  %v3584_v4 = vld [vmem:[#allocation2 + $0x50] sm:$0xff]  ;;  %3343 = vst.msk [vmem:[#allocation2 + $0x68] sm:$0xff] %vm853_vm4, %v3252_v30 }
 0x25a   : > { %2343 = vst.msk [vmem:[#allocation3 + $0xe1] sm:$0xff] %vm385_vm2, %v2255_v56  ;;  %3888 = vmatprep.mubr.f32.mxu1 %v3584_v4 }
 0x25b   : > { %v2583_v8 = vpop.permute.xlu1 %2582  ;;  %2938 = vrot.lane.b32.xlu1 %v7453_v57, %s5201_s29  ;;  %3889 = vmatmul.mubr.f32.gmra.mrb[38].mxu1 %v3583_v48 }
 0x25c   : > { %2673 = vst.msk [vmem:[#allocation2 + $0x78] sm:$0xff] %vm643_vm3, %v2583_v8  ;;  %v3386_v58 = vpop.permute.xlu0 %3385 }
 0x25d   : > { %3141 = vrot.lane.b32.xlu0 %v7504_v31, %s5200_s28  ;;  %3477 = vst.msk [vmem:[#allocation2 + $0x68] sm:$0xff] %vm984_vm5, %v3386_v58 }
 0x25f   : > { %v1944_v16 = vpop.f32.mrb[36].mxu0  ;;  %v2791_v17 = vpop.permute.xlu1 %2790  ;;  %2602 = vrot.lane.b32.xlu1 %v7432_v53, %s5200_s28 }
 0x260   : > { %v1945_v25 = vadd.f32 %v7283_v44, %v1944_v16  ;;  %2881 = vst.msk [vmem:[#allocation2 + $0x78] sm:$0xff] %vm853_vm4, %v2791_v17  ;;  %v1946_v26 = vpop.f32.mrb[37].mxu0  ;;  %v3124_v4 = vpop.permute.xlu0 %3123 }
 0x261   : > { %v7567_v18 = vld [vmem:[#allocation3 + $0xe0] sm:$0xff]  ;;  %v2387_v42 = vld [vmem:[#allocation3 + $0xe8] sm:$0x3]  ;;  %3271 = vrot.lane.b32.xlu0 %v7536_v3, %s5199_s24  ;;  %3214 = vst.msk [vmem:[#allocation2 + $0x80] sm:$0xff] %vm643_vm3, %v3124_v4 }
 0x262   : > { %v2170_v57 = vadd.f32 %v7143_v32, %v1945_v25  ;;  %v2538_v13 = vrot.slane %v7567_v18, 1  ;;  %v2746_v22 = vrot.slane %v7567_v18, 2  ;;  %v2748_v56 = vrot.slane %v2387_v42, 2  ;;  %2431 = vst.msk [vmem:[#allocation2 + $0x1c8] sm:$0xff] %vm385_vm2, %v7567_v18  ;;  %v3586_v26 = vld [vmem:[#allocation2 + $0x60] sm:$0xff] }
 0x263   : > { %v2921_v38 = vpop.permute.xlu1 %2920  ;;  %v2540_v8 = vrot.slane %v2387_v42, 1  ;;  %2810 = vrot.lane.b32.xlu1 %v7419_v24, %s5199_s24 }
 0x264   : > { %v2256_v30 = vmax.f32 %v2170_v57, 0.0  ;;  %3011 = vst.msk [vmem:[#allocation2 + $0x78] sm:$0xff] %vm984_vm5, %v2921_v38  ;;  %v7581_v32 = vsel %vm466_vm1, %v2537_v15, %v2538_v13  ;;  %v7584_v48 = vsel %vm676_vm0, %v2745_v47, %v2746_v22  ;;  %v7587_v53 = vsel %vm676_vm0, %v2746_v22, %v2748_v56  ;;  %v3254_v25 = vpop.permute.xlu0 %3253  ;;  %v3587_v58 = vld [vmem:[#allocation2 + $0x68] sm:$0xff] }
 0x265   : > { %3556 = vst.msk [vmem:[#allocation2 + $0x160] sm:$0xff] %vm385_vm2, %v7584_v48  ;;  %3557 = vst.msk [vmem:[#allocation2 + $0x178] sm:$0xff] %vm385_vm2, %v7587_v53  ;;  %v7597_v16 = vsel %vm466_vm1, %v2538_v13, %v2540_v8  ;;  %3405 = vrot.lane.b32.xlu0 %v7581_v32, %s5201_s29  ;;  %3893 = vmatprep.mubr.f32.mxu1 %v3587_v58 }
 0x266   : > { %3092 = vst.msk [vmem:[#allocation2 + $0x188] sm:$0xff] %vm385_vm2, %v7581_v32  ;;  %2344 = vst.msk [vmem:[#allocation3 + $0xf1] sm:$0xff] %vm385_vm2, %v2256_v30  ;;  %3894 = vmatmul.mubr.f32.gmra.mrb[40].mxu1 %v3586_v26 }
 0x267   : > { %3093 = vst.msk [vmem:[#allocation2 + $0x1a0] sm:$0xff] %vm385_vm2, %v7597_v16  ;;  %v2585_v17 = vpop.permute.xlu1 %2584  ;;  %2940 = vrot.lane.b32.xlu1 %v7487_v50, %s5201_s29 }
 0x268   : > { %2674 = vst.msk [vmem:[#allocation2 + $0x90] sm:$0xff] %vm643_vm3, %v2585_v17  ;;  %v3388_v15 = vpop.permute.xlu0 %3387 }
 0x269   : > { %3344 = vst.msk [vmem:[#allocation2 + $0x80] sm:$0xff] %vm853_vm4, %v3254_v25  ;;  %3143 = vrot.lane.b32.xlu0 %v7507_v60, %s5200_s28 }
 0x26a   : > { %3478 = vst.msk [vmem:[#allocation2 + $0x80] sm:$0xff] %vm984_vm5, %v3388_v15 }
 0x26b   : > { %v1949_v24 = vpop.f32.mrb[38].mxu0  ;;  %v2793_v47 = vpop.permute.xlu1 %2792  ;;  %2604 = vrot.lane.b32.xlu1 %v7501_v12, %s5200_s28  ;;  %v3589_v58 = vld [vmem:[#allocation2 + $0x78] sm:$0xff] }
 0x26c   : > { %v1950_v42 = vadd.f32 %v7283_v44, %v1949_v24  ;;  %2882 = vst.msk [vmem:[#allocation2 + $0x90] sm:$0xff] %vm853_vm4, %v2793_v47  ;;  %v1951_v57 = vpop.f32.mrb[39].mxu0  ;;  %v3618_v13 = vld [vmem:[#allocation2 + $0x160] sm:$0xff]  ;;  %v3621_v22 = vld [vmem:[#allocation2 + $0x178] sm:$0xff]  ;;  %v3126_v30 = vpop.permute.xlu0 %3125 }
 0x26d   : > { %4912 = vmatprep.mubr.msk.f32.mxu0 %vm385_vm2, %v3618_v13  ;;  %v7616_v56 = vld [vmem:[#allocation3 + $0xf0] sm:$0xff]  ;;  %3273 = vrot.lane.b32.xlu0 %v7567_v18, %s5199_s24  ;;  %3215 = vst.msk [vmem:[#allocation2 + $0x98] sm:$0xff] %vm643_vm3, %v3126_v30 }
 0x26e   : > { %v2175_v50 = vadd.f32 %v7140_v45, %v1950_v42  ;;  %2432 = vst.msk [vmem:[#allocation2 + $0x1e0] sm:$0xff] %vm385_vm2, %v7616_v56  ;;  %4913 = vmatmul.mubr.msk.f32.gmra.mrb[78].mxu0 %vm385_vm2, %v3621_v22  ;;  %v2750_v15 = vrot.slane %v7616_v56, 2  ;;  %v2542_v22 = vrot.slane %v7616_v56, 1 }
 0x26f   : > { %v2923_v38 = vpop.permute.xlu1 %2922  ;;  %2812 = vrot.lane.b32.xlu1 %v7504_v31, %s5199_s24 }
 0x270   : > { %v2257_v8 = vmax.f32 %v2175_v50, 0.0  ;;  %3012 = vst.msk [vmem:[#allocation2 + $0x90] sm:$0xff] %vm984_vm5, %v2923_v38  ;;  %v7628_v4 = vpop.f32.mrb[30].mxu1  ;;  %v3256_v17 = vpop.permute.xlu0 %3255 }
 0x271   : > { %3407 = vrot.lane.b32.xlu0 %v7597_v16, %s5201_s29  ;;  %v7635_v45 = vpop.f32.mrb[31].mxu1  ;;  %v3590_v25 = vld [vmem:[#allocation2 + $0x80] sm:$0xff]  ;;  %3345 = vst.msk [vmem:[#allocation2 + $0x98] sm:$0xff] %vm853_vm4, %v3256_v17 }
 0x272   : > { %2345 = vst.msk [vmem:[#allocation3 + $0xf9] sm:$0xff] %vm385_vm2, %v2257_v8  ;;  %3898 = vmatprep.mubr.f32.mxu1 %v3590_v25 }
 0x273   : > { %v2587_v12 = vpop.permute.xlu1 %2586  ;;  %2942 = vrot.lane.b32.xlu1 %v7536_v3, %s5201_s29  ;;  %3899 = vmatmul.mubr.f32.gmra.mrb[42].mxu1 %v3589_v58 }
 0x274   : > { %2675 = vst.msk [vmem:[#allocation2 + $0xa8] sm:$0xff] %vm643_vm3, %v2587_v12 }
 0x275   : > { %3145 = vrot.lane.b32.xlu0 %v7584_v48, %s5200_s28 }
 0x276   : > { %v3390_v47 = vpop.permute.xlu0 %3389 }
 0x277   : > { %v1954_v26 = vpop.f32.mrb[40].mxu0  ;;  %v2795_v31 = vpop.permute.xlu1 %2794  ;;  %3479 = vst.msk [vmem:[#allocation2 + $0x98] sm:$0xff] %vm984_vm5, %v3390_v47  ;;  %2606 = vrot.lane.b32.xlu1 %v7517_v63, %s5200_s28 }
 0x278   : > { %v1955_v24 = vadd.f32 %v7283_v44, %v1954_v26  ;;  %2883 = vst.msk [vmem:[#allocation2 + $0xa8] sm:$0xff] %vm853_vm4, %v2795_v31  ;;  %v1956_v42 = vpop.f32.mrb[41].mxu0 }
 0x279   : > { %v7647_v57 = vld [vmem:[#allocation3 + $0xf8] sm:$0xff]  ;;  %v2390_v13 = vld [vmem:[#allocation3 + $0x100] sm:$0x3]  ;;  %3275 = vrot.lane.b32.xlu0 %v7616_v56, %s5199_s24  ;;  %v3592_v42 = vld [vmem:[#allocation2 + $0x90] sm:$0xff] }
 0x27a   : > { %v2180_v3 = vadd.f32 %v7221_v61, %v1955_v24  ;;  %v2543_v50 = vrot.slane %v7647_v57, 1  ;;  %v2751_v38 = vrot.slane %v7647_v57, 2  ;;  %v2753_v8 = vrot.slane %v2390_v13, 2  ;;  %2433 = vst.msk [vmem:[#allocation2 + $0x1f8] sm:$0xff] %vm385_vm2, %v7647_v57  ;;  %v3128_v25 = vpop.permute.xlu0 %3127 }
 0x27b   : > { %v2925_v30 = vpop.permute.xlu1 %2924  ;;  %v2545_v12 = vrot.slane %v2390_v13, 1  ;;  %3216 = vst.msk [vmem:[#allocation2 + $0xb0] sm:$0xff] %vm643_vm3, %v3128_v25  ;;  %2814 = vrot.lane.b32.xlu1 %v7507_v60, %s5199_s24 }
 0x27c   : > { %v2258_v17 = vmax.f32 %v2180_v3, 0.0  ;;  %3013 = vst.msk [vmem:[#allocation2 + $0xa8] sm:$0xff] %vm984_vm5, %v2925_v30  ;;  %v7661_v61 = vsel %vm466_vm1, %v2542_v22, %v2543_v50  ;;  %v7664_v58 = vsel %vm676_vm0, %v2750_v15, %v2751_v38  ;;  %v7667_v63 = vsel %vm676_vm0, %v2751_v38, %v2753_v8 }
 0x27d   : > { %3558 = vst.msk [vmem:[#allocation2 + $0x190] sm:$0xff] %vm385_vm2, %v7664_v58  ;;  %3559 = vst.msk [vmem:[#allocation2 + $0x1a8] sm:$0xff] %vm385_vm2, %v7667_v63  ;;  %v7677_v26 = vsel %vm466_vm1, %v2543_v50, %v2545_v12  ;;  %3409 = vrot.lane.b32.xlu0 %v7661_v61, %s5201_s29 }
 0x27e   : > { %3094 = vst.msk [vmem:[#allocation2 + $0x1b8] sm:$0xff] %vm385_vm2, %v7661_v61  ;;  %2346 = vst.msk [vmem:[#allocation3 + $0x109] sm:$0xff] %vm385_vm2, %v2258_v17  ;;  %v3258_v24 = vpop.permute.xlu0 %3257  ;;  %v3593_v47 = vld [vmem:[#allocation2 + $0x98] sm:$0xff] }
 0x27f   : > { %3095 = vst.msk [vmem:[#allocation2 + $0x1d0] sm:$0xff] %vm385_vm2, %v7677_v26  ;;  %v2589_v31 = vpop.permute.xlu1 %2588  ;;  %3903 = vmatprep.mubr.f32.mxu1 %v3593_v47  ;;  %2944 = vrot.lane.b32.xlu1 %v7567_v18, %s5201_s29 }
 0x280   : > { %2676 = vst.msk [vmem:[#allocation2 + $0xc0] sm:$0xff] %vm643_vm3, %v2589_v31  ;;  %3904 = vmatmul.mubr.f32.gmra.mrb[44].mxu1 %v3592_v42 }
 0x281   : > { %3346 = vst.msk [vmem:[#allocation2 + $0xb0] sm:$0xff] %vm853_vm4, %v3258_v24  ;;  %3147 = vrot.lane.b32.xlu0 %v7587_v53, %s5200_s28 }
 0x282   : > { %v3392_v22 = vpop.permute.xlu0 %3391 }
 0x283   : > { %v1959_v60 = vpop.f32.mrb[42].mxu0  ;;  %v2797_v15 = vpop.permute.xlu1 %2796  ;;  %3480 = vst.msk [vmem:[#allocation2 + $0xb0] sm:$0xff] %vm984_vm5, %v3392_v22  ;;  %2608 = vrot.lane.b32.xlu1 %v7581_v32, %s5200_s28  ;;  %v3595_v31 = vld [vmem:[#allocation2 + $0xa8] sm:$0xff] }
 0x284   : > { %v1960_v13 = vadd.f32 %v7283_v44, %v1959_v60  ;;  %2884 = vst.msk [vmem:[#allocation2 + $0xc0] sm:$0xff] %vm853_vm4, %v2797_v15  ;;  %v1961_v3 = vpop.f32.mrb[43].mxu0  ;;  %v3624_v50 = vld [vmem:[#allocation2 + $0x190] sm:$0xff]  ;;  %v3627_v38 = vld [vmem:[#allocation2 + $0x1a8] sm:$0xff] }
 0x285   : > { %4915 = vmatprep.mubr.msk.f32.mxu0 %vm385_vm2, %v3624_v50  ;;  %v7696_v8 = vld [vmem:[#allocation3 + $0x108] sm:$0xff]  ;;  %3277 = vrot.lane.b32.xlu0 %v7647_v57, %s5199_s24 }
 0x286   : > { %v2185_v18 = vadd.f32 %v7218_v10, %v1960_v13  ;;  %2434 = vst.msk [vmem:[#allocation2 + $0x210] sm:$0xff] %vm385_vm2, %v7696_v8  ;;  %4916 = vmatmul.mubr.msk.f32.gmra.mrb[80].mxu0 %vm385_vm2, %v3627_v38  ;;  %v3130_v17 = vpop.permute.xlu0 %3129  ;;  %v2755_v15 = vrot.slane %v7696_v8, 2  ;;  %v2547_v3 = vrot.slane %v7696_v8, 1 }
 0x287   : > { %v2927_v30 = vpop.permute.xlu1 %2926  ;;  %3217 = vst.msk [vmem:[#allocation2 + $0xc8] sm:$0xff] %vm643_vm3, %v3130_v17  ;;  %2816 = vrot.lane.b32.xlu1 %v7584_v48, %s5199_s24 }
 0x288   : > { %v2259_v12 = vmax.f32 %v2185_v18, 0.0  ;;  %3014 = vst.msk [vmem:[#allocation2 + $0xc0] sm:$0xff] %vm984_vm5, %v2927_v30 }
 0x289   : > { %3411 = vrot.lane.b32.xlu0 %v7677_v26, %s5201_s29 }
 0x28a   : > { %2347 = vst.msk [vmem:[#allocation3 + $0x111] sm:$0xff] %vm385_vm2, %v2259_v12  ;;  %v3260_v32 = vpop.permute.xlu0 %3259  ;;  %v3596_v25 = vld [vmem:[#allocation2 + $0xb0] sm:$0xff] }
 0x28b   : > { %v2591_v10 = vpop.permute.xlu1 %2590  ;;  %3347 = vst.msk [vmem:[#allocation2 + $0xc8] sm:$0xff] %vm853_vm4, %v3260_v32  ;;  %3908 = vmatprep.mubr.f32.mxu1 %v3596_v25  ;;  %2946 = vrot.lane.b32.xlu1 %v7616_v56, %s5201_s29 }
 0x28c   : > { %2677 = vst.msk [vmem:[#allocation2 + $0xd8] sm:$0xff] %vm643_vm3, %v2591_v10  ;;  %3909 = vmatmul.mubr.f32.gmra.mrb[46].mxu1 %v3595_v31 }
 0x28d   : > { %3149 = vrot.lane.b32.xlu0 %v7664_v58, %s5200_s28 }
 0x28f   : > { %v1964_v24 = vpop.f32.mrb[44].mxu0  ;;  %v2799_v47 = vpop.permute.xlu1 %2798  ;;  %2610 = vrot.lane.b32.xlu1 %v7597_v16, %s5200_s28 }
 0x290   : > { %v1965_v48 = vadd.f32 %v7283_v44, %v1964_v24  ;;  %v3394_v42 = vpop.permute.xlu0 %3393  ;;  %2885 = vst.msk [vmem:[#allocation2 + $0xd8] sm:$0xff] %vm853_vm4, %v2799_v47  ;;  %v1966_v60 = vpop.f32.mrb[45].mxu0 }
 0x291   : > { %3481 = vst.msk [vmem:[#allocation2 + $0xc8] sm:$0xff] %vm984_vm5, %v3394_v42  ;;  %v7723_v13 = vld [vmem:[#allocation3 + $0x110] sm:$0xff]  ;;  %v2393_v22 = vld [vmem:[#allocation3 + $0x118] sm:$0x3]  ;;  %3279 = vrot.lane.b32.xlu0 %v7696_v8, %s5199_s24 }
 0x292   : > { %v2190_v56 = vadd.f32 %v7304_v28, %v1965_v48  ;;  %v2548_v50 = vrot.slane %v7723_v13, 1  ;;  %v2756_v38 = vrot.slane %v7723_v13, 2  ;;  %v2758_v18 = vrot.slane %v2393_v22, 2  ;;  %2435 = vst.msk [vmem:[#allocation2 + $0x228] sm:$0xff] %vm385_vm2, %v7723_v13  ;;  %v3598_v48 = vld [vmem:[#allocation2 + $0xc0] sm:$0xff] }
 0x293   : > { %v2929_v30 = vpop.permute.xlu1 %2928  ;;  %v2550_v12 = vrot.slane %v2393_v22, 1  ;;  %2818 = vrot.lane.b32.xlu1 %v7587_v53, %s5199_s24 }
 0x294   : > { %v2260_v17 = vmax.f32 %v2190_v56, 0.0  ;;  %v3132_v10 = vpop.permute.xlu0 %3131  ;;  %3015 = vst.msk [vmem:[#allocation2 + $0xd8] sm:$0xff] %vm984_vm5, %v2929_v30  ;;  %v7737_v28 = vsel %vm466_vm1, %v2547_v3, %v2548_v50  ;;  %v7740_v32 = vsel %vm676_vm0, %v2755_v15, %v2756_v38  ;;  %v7743_v16 = vsel %vm676_vm0, %v2756_v38, %v2758_v18  ;;  %v7784_v30 = vld [vmem:[#allocation3 + $0x198] sm:$0xff] }
 0x295   : > { %3218 = vst.msk [vmem:[#allocation2 + $0xe0] sm:$0xff] %vm643_vm3, %v3132_v10  ;;  %v7753_v25 = vsel %vm466_vm1, %v2548_v50, %v2550_v12  ;;  %3413 = vrot.lane.b32.xlu0 %v7737_v28, %s5201_s29  ;;  %v8771_v10 = vrot.slane %v6839_v27, 2  ;;  %v7805_v27 = vld [vmem:[%s8715_s2] ss:$0 sm:$0xff] }
 0x296   : > { %3560 = vst.msk [vmem:[#allocation2 + $0x1c0] sm:$0xff] %vm385_vm2, %v7740_v32  ;;  %3561 = vst.msk [vmem:[#allocation2 + $0x1d8] sm:$0xff] %vm385_vm2, %v7743_v16 }
 0x297   : > { %3096 = vst.msk [vmem:[#allocation2 + $0x1e8] sm:$0xff] %vm385_vm2, %v7737_v28  ;;  %2348 = vst.msk [vmem:[#allocation3 + $0x121] sm:$0xff] %vm385_vm2, %v2260_v17  ;;  %v2593_v31 = vpop.permute.xlu1 %2592  ;;  %2948 = vrot.lane.b32.xlu1 %v7647_v57, %s5201_s29 }
 0x298   : > { %3097 = vst.msk [vmem:[#allocation2 + $0x200] sm:$0xff] %vm385_vm2, %v7753_v25  ;;  %v3262_v24 = vpop.permute.xlu0 %3261  ;;  %v3599_v47 = vld [vmem:[#allocation2 + $0xc8] sm:$0xff] }
 0x299   : > { %2678 = vst.msk [vmem:[#allocation2 + $0xf0] sm:$0xff] %vm643_vm3, %v2593_v31  ;;  %3913 = vmatprep.mubr.f32.mxu1 %v3599_v47  ;;  %3151 = vrot.lane.b32.xlu0 %v7667_v63, %s5200_s28 }
 0x29a   : > { %3348 = vst.msk [vmem:[#allocation2 + $0xe0] sm:$0xff] %vm853_vm4, %v3262_v24  ;;  %3914 = vmatmul.mubr.f32.gmra.mrb[48].mxu1 %v3598_v48 }
 0x29b   : > { %v1969_v53 = vpop.f32.mrb[46].mxu0  ;;  %v2801_v15 = vpop.permute.xlu1 %2800  ;;  %2612 = vrot.lane.b32.xlu1 %v7661_v61, %s5200_s28 }
 0x29c   : > { %v1970_v42 = vadd.f32 %v7283_v44, %v1969_v53  ;;  %v3396_v60 = vpop.permute.xlu0 %3395  ;;  %2886 = vst.msk [vmem:[#allocation2 + $0xf0] sm:$0xff] %vm853_vm4, %v2801_v15  ;;  %v1971_v56 = vpop.f32.mrb[47].mxu0 }
 0x29d   : > { %v3630_v22 = vld [vmem:[#allocation2 + $0x1c0] sm:$0xff]  ;;  %v3633_v3 = vld [vmem:[#allocation2 + $0x1d8] sm:$0xff]  ;;  %3482 = vst.msk [vmem:[#allocation2 + $0xe0] sm:$0xff] %vm984_vm5, %v3396_v60  ;;  %3281 = vrot.lane.b32.xlu0 %v7723_v13, %s5199_s24 }
 0x29e   : > { %4918 = vmatprep.mubr.msk.f32.mxu0 %vm385_vm2, %v3630_v22  ;;  %v7772_v50 = vld [vmem:[#allocation3 + $0x120] sm:$0xff]  ;;  %v2195_v57 = vadd.f32 %v7301_v33, %v1970_v42  ;;  %v3505_v33 = vrot.slane %v7784_v30, 2 }
 0x29f   : > { %2436 = vst.msk [vmem:[#allocation2 + $0x240] sm:$0xff] %vm385_vm2, %v7772_v50  ;;  %4919 = vmatmul.mubr.msk.f32.gmra.mrb[82].mxu0 %vm385_vm2, %v3633_v3  ;;  %v2931_v18 = vpop.permute.xlu1 %2930  ;;  %2820 = vrot.lane.b32.xlu1 %v7664_v58, %s5199_s24  ;;  %v3601_v58 = vld [vmem:[#allocation2 + $0xd8] sm:$0xff]  ;;  %v2760_v22 = vrot.slane %v7772_v50, 2 }
 0x2a0   : > { %v2261_v44 = vmax.f32 %v2195_v57, 0.0  ;;  %v3134_v38 = vpop.permute.xlu0 %3133  ;;  %3016 = vst.msk [vmem:[#allocation2 + $0xf0] sm:$0xff] %vm984_vm5, %v2931_v18  ;;  %v3507_v31 = vsel %vm676_vm0, %v3505_v33, %v8771_v10 }
 0x2a1   : > { %3219 = vst.msk [vmem:[#allocation2 + $0xf8] sm:$0xff] %vm643_vm3, %v3134_v38  ;;  %3415 = vrot.lane.b32.xlu0 %v7753_v25, %s5201_s29 }
 0x2a2   : > { %2349 = vst.msk [vmem:[#allocation3 + $0x129] sm:$0xff] %vm385_vm2, %v2261_v44  ;;  %3572 = vst.msk [vmem:[#allocation2 + $0x2e0] sm:$0xff] %vm385_vm2, %v3507_v31 }
 0x2a3   : > { %v2595_v12 = vpop.permute.xlu1 %2594  ;;  %2950 = vrot.lane.b32.xlu1 %v7696_v8, %s5201_s29  ;;  %v2552_v8 = vrot.slane %v7772_v50, 1 }
 0x2a4   : > { %v3264_v61 = vpop.permute.xlu0 %3263  ;;  %v3602_v17 = vld [vmem:[#allocation2 + $0xe0] sm:$0xff]  ;;  %2679 = vst.msk [vmem:[#allocation2 + $0x108] sm:$0xff] %vm643_vm3, %v2595_v12 }
 0x2a5   : > { %3349 = vst.msk [vmem:[#allocation2 + $0xf8] sm:$0xff] %vm853_vm4, %v3264_v61  ;;  %3918 = vmatprep.mubr.f32.mxu1 %v3602_v17  ;;  %3153 = vrot.lane.b32.xlu0 %v7740_v32, %s5200_s28 }
 0x2a6   : > { %3919 = vmatmul.mubr.f32.gmra.mrb[50].mxu1 %v3601_v58 }
 0x2a7   : > { %v1974_v24 = vpop.f32.mrb[48].mxu0  ;;  %v2803_v53 = vpop.permute.xlu1 %2802  ;;  %2614 = vrot.lane.b32.xlu1 %v7677_v26, %s5200_s28 }
 0x2a8   : > { %v1975_v47 = vadd.f32 %v7805_v27, %v1974_v24  ;;  %v3398_v48 = vpop.permute.xlu0 %3397  ;;  %2887 = vst.msk [vmem:[#allocation2 + $0x108] sm:$0xff] %vm853_vm4, %v2803_v53  ;;  %v1976_v42 = vpop.f32.mrb[49].mxu0  ;;  %v3604_v24 = vld [vmem:[#allocation2 + $0xf0] sm:$0xff] }
 0x2a9   : > { %3483 = vst.msk [vmem:[#allocation2 + $0xf8] sm:$0xff] %vm984_vm5, %v3398_v48  ;;  %v7810_v60 = vld [vmem:[#allocation3 + $0x128] sm:$0xff]  ;;  %v2396_v15 = vld [vmem:[#allocation3 + $0x130] sm:$0x3]  ;;  %3283 = vrot.lane.b32.xlu0 %v7772_v50, %s5199_s24 }
 0x2aa   : > { %v2200_v3 = vadd.f32 %v7383_v37, %v1975_v47  ;;  %v2553_v56 = vrot.slane %v7810_v60, 1  ;;  %2437 = vst.msk [vmem:[#allocation2 + $0x258] sm:$0xff] %vm385_vm2, %v7810_v60  ;;  %v2555_v57 = vrot.slane %v2396_v15, 1  ;;  %v2761_v44 = vrot.slane %v7810_v60, 2 }
 0x2ab   : > { %v2763_v38 = vrot.slane %v2396_v15, 2  ;;  %v2933_v61 = vpop.permute.xlu1 %2932  ;;  %2822 = vrot.lane.b32.xlu1 %v7667_v63, %s5199_s24 }
 0x2ac   : > { %v2262_v18 = vmax.f32 %v2200_v3, 0.0  ;;  %v3136_v33 = vpop.permute.xlu0 %3135  ;;  %v7824_v37 = vsel %vm466_vm1, %v2552_v8, %v2553_v56  ;;  %v7827_v12 = vsel %vm466_vm1, %v2553_v56, %v2555_v57  ;;  %v7830_v26 = vsel %vm676_vm0, %v2760_v22, %v2761_v44  ;;  %3017 = vst.msk [vmem:[#allocation2 + $0x108] sm:$0xff] %vm984_vm5, %v2933_v61 }
 0x2ad   : > { %3220 = vst.msk [vmem:[#allocation2 + $0x110] sm:$0xff] %vm643_vm3, %v3136_v33  ;;  %v7841_v17 = vsel %vm676_vm0, %v2761_v44, %v2763_v38  ;;  %3417 = vrot.lane.b32.xlu0 %v7824_v37, %s5201_s29 }
 0x2ae   : > { %3098 = vst.msk [vmem:[#allocation2 + $0x218] sm:$0xff] %vm385_vm2, %v7824_v37  ;;  %3099 = vst.msk [vmem:[#allocation2 + $0x230] sm:$0xff] %vm385_vm2, %v7827_v12 }
 0x2af   : > { %3562 = vst.msk [vmem:[#allocation2 + $0x1f0] sm:$0xff] %vm385_vm2, %v7830_v26  ;;  %2350 = vst.msk [vmem:[#allocation3 + $0x139] sm:$0xff] %vm385_vm2, %v2262_v18  ;;  %v2597_v31 = vpop.permute.xlu1 %2596  ;;  %2952 = vrot.lane.b32.xlu1 %v7723_v13, %s5201_s29 }
 0x2b0   : > { %3563 = vst.msk [vmem:[#allocation2 + $0x208] sm:$0xff] %vm385_vm2, %v7841_v17  ;;  %v3266_v10 = vpop.permute.xlu0 %3265  ;;  %v3605_v58 = vld [vmem:[#allocation2 + $0xf8] sm:$0xff] }
 0x2b1   : > { %3350 = vst.msk [vmem:[#allocation2 + $0x110] sm:$0xff] %vm853_vm4, %v3266_v10  ;;  %3923 = vmatprep.mubr.f32.mxu1 %v3605_v58  ;;  %3155 = vrot.lane.b32.xlu0 %v7743_v16, %s5200_s28 }
 0x2b2   : > { %2680 = vst.msk [vmem:[#allocation2 + $0x120] sm:$0xff] %vm643_vm3, %v2597_v31  ;;  %3924 = vmatmul.mubr.f32.gmra.mrb[52].mxu1 %v3604_v24 }
 0x2b3   : > { %v1979_v63 = vpop.f32.mrb[50].mxu0  ;;  %v2805_v53 = vpop.permute.xlu1 %2804  ;;  %2616 = vrot.lane.b32.xlu1 %v7737_v28, %s5200_s28  ;;  %v3607_v57 = vld [vmem:[#allocation2 + $0x108] sm:$0xff] }
 0x2b4   : > { %v1980_v47 = vadd.f32 %v7805_v27, %v1979_v63  ;;  %v3400_v48 = vpop.permute.xlu0 %3399  ;;  %2888 = vst.msk [vmem:[#allocation2 + $0x120] sm:$0xff] %vm853_vm4, %v2805_v53  ;;  %v1981_v42 = vpop.f32.mrb[51].mxu0 }
 0x2b5   : > { %3484 = vst.msk [vmem:[#allocation2 + $0x110] sm:$0xff] %vm984_vm5, %v3400_v48  ;;  %3285 = vrot.lane.b32.xlu0 %v7810_v60, %s5199_s24 }
 0x2b6   : > { %v7859_v8 = vld [vmem:[#allocation3 + $0x138] sm:$0xff]  ;;  %v2205_v15 = vadd.f32 %v7378_v11, %v1980_v47 }
 0x2b7   : > { %2438 = vst.msk [vmem:[#allocation2 + $0x270] sm:$0xff] %vm385_vm2, %v7859_v8  ;;  %v2935_v3 = vpop.permute.xlu1 %2934  ;;  %2824 = vrot.lane.b32.xlu1 %v7740_v32, %s5199_s24  ;;  %v2557_v10 = vrot.slane %v7859_v8, 1  ;;  %v2765_v58 = vrot.slane %v7859_v8, 2 }
 0x2b8   : > { %v2263_v13 = vmax.f32 %v2205_v15, 0.0  ;;  %v3138_v22 = vpop.permute.xlu0 %3137  ;;  %3018 = vst.msk [vmem:[#allocation2 + $0x120] sm:$0xff] %vm984_vm5, %v2935_v3 }
 0x2b9   : > { %3221 = vst.msk [vmem:[#allocation2 + $0x128] sm:$0xff] %vm643_vm3, %v3138_v22  ;;  %3419 = vrot.lane.b32.xlu0 %v7827_v12, %s5201_s29 }
 0x2ba   : > { %2351 = vst.msk [vmem:[#allocation3 + $0x141] sm:$0xff] %vm385_vm2, %v2263_v13 }
 0x2bb   : > { %v2599_v28 = vpop.permute.xlu1 %2598  ;;  %2954 = vrot.lane.b32.xlu1 %v7772_v50, %s5201_s29 }
 0x2bc   : > { %v3268_v11 = vpop.permute.xlu0 %3267  ;;  %v3608_v56 = vld [vmem:[#allocation2 + $0x110] sm:$0xff]  ;;  %2681 = vst.msk [vmem:[#allocation2 + $0x138] sm:$0xff] %vm643_vm3, %v2599_v28 }
 0x2bd   : > { %3351 = vst.msk [vmem:[#allocation2 + $0x128] sm:$0xff] %vm853_vm4, %v3268_v11  ;;  %3928 = vmatprep.mubr.f32.mxu1 %v3608_v56  ;;  %3157 = vrot.lane.b32.xlu0 %v7830_v26, %s5200_s28 }
 0x2be   : > { %3929 = vmatmul.mubr.f32.gmra.mrb[54].mxu1 %v3607_v57 }
 0x2bf   : > { %v1984_v44 = vpop.f32.mrb[52].mxu0  ;;  %v2807_v18 = vpop.permute.xlu1 %2806  ;;  %2618 = vrot.lane.b32.xlu1 %v7753_v25, %s5200_s28  ;;  %v3610_v56 = vld [vmem:[#allocation2 + $0x120] sm:$0xff] }
 0x2c0   : > { %v1985_v38 = vadd.f32 %v7805_v27, %v1984_v44  ;;  %v3402_v32 = vpop.permute.xlu0 %3401  ;;  %2889 = vst.msk [vmem:[#allocation2 + $0x138] sm:$0xff] %vm853_vm4, %v2807_v18  ;;  %v1986_v33 = vpop.f32.mrb[53].mxu0 }
 0x2c1   : > { %3485 = vst.msk [vmem:[#allocation2 + $0x128] sm:$0xff] %vm984_vm5, %v3402_v32  ;;  %v7884_v61 = vld [vmem:[#allocation3 + $0x140] sm:$0xff]  ;;  %v2399_v31 = vld [vmem:[#allocation3 + $0x148] sm:$0x3]  ;;  %3287 = vrot.lane.b32.xlu0 %v7859_v8, %s5199_s24 }
 0x2c2   : > { %v2210_v50 = vadd.f32 %v7475_v62, %v1985_v38  ;;  %v2558_v24 = vrot.slane %v7884_v61, 1  ;;  %2439 = vst.msk [vmem:[#allocation2 + $0x288] sm:$0xff] %vm385_vm2, %v7884_v61  ;;  %v2560_v63 = vrot.slane %v2399_v31, 1  ;;  %v2766_v47 = vrot.slane %v7884_v61, 2 }
 0x2c3   : > { %v2768_v48 = vrot.slane %v2399_v31, 2  ;;  %v2937_v15 = vpop.permute.xlu1 %2936  ;;  %2826 = vrot.lane.b32.xlu1 %v7743_v16, %s5199_s24 }
 0x2c4   : > { %v2264_v53 = vmax.f32 %v2210_v50, 0.0  ;;  %v3140_v42 = vpop.permute.xlu0 %3139  ;;  %v7898_v62 = vsel %vm466_vm1, %v2557_v10, %v2558_v24  ;;  %v7901_v13 = vsel %vm466_vm1, %v2558_v24, %v2560_v63  ;;  %v7904_v25 = vsel %vm676_vm0, %v2765_v58, %v2766_v47  ;;  %3019 = vst.msk [vmem:[#allocation2 + $0x138] sm:$0xff] %vm984_vm5, %v2937_v15 }
 0x2c5   : > { %3222 = vst.msk [vmem:[#allocation2 + $0x140] sm:$0xff] %vm643_vm3, %v3140_v42  ;;  %v7915_v22 = vsel %vm676_vm0, %v2766_v47, %v2768_v48  ;;  %3421 = vrot.lane.b32.xlu0 %v7898_v62, %s5201_s29 }
 0x2c6   : > { %3100 = vst.msk [vmem:[#allocation2 + $0x248] sm:$0xff] %vm385_vm2, %v7898_v62  ;;  %3101 = vst.msk [vmem:[#allocation2 + $0x260] sm:$0xff] %vm385_vm2, %v7901_v13 }
 0x2c7   : > { %3564 = vst.msk [vmem:[#allocation2 + $0x220] sm:$0xff] %vm385_vm2, %v7904_v25  ;;  %2352 = vst.msk [vmem:[#allocation3 + $0x151] sm:$0xff] %vm385_vm2, %v2264_v53  ;;  %v2601_v11 = vpop.permute.xlu1 %2600  ;;  %2956 = vrot.lane.b32.xlu1 %v7810_v60, %s5201_s29 }
 0x2c8   : > { %3565 = vst.msk [vmem:[#allocation2 + $0x238] sm:$0xff] %vm385_vm2, %v7915_v22  ;;  %v3270_v3 = vpop.permute.xlu0 %3269  ;;  %v3611_v28 = vld [vmem:[#allocation2 + $0x128] sm:$0xff] }
 0x2c9   : > { %3352 = vst.msk [vmem:[#allocation2 + $0x140] sm:$0xff] %vm853_vm4, %v3270_v3  ;;  %3933 = vmatprep.mubr.f32.mxu1 %v3611_v28  ;;  %3159 = vrot.lane.b32.xlu0 %v7841_v17, %s5200_s28 }
 0x2ca   : > { %2682 = vst.msk [vmem:[#allocation2 + $0x150] sm:$0xff] %vm643_vm3, %v2601_v11  ;;  %3934 = vmatmul.mubr.f32.gmra.mrb[56].mxu1 %v3610_v56 }
 0x2cb   : > { %v1989_v16 = vpop.f32.mrb[54].mxu0  ;;  %v2809_v38 = vpop.permute.xlu1 %2808  ;;  %2620 = vrot.lane.b32.xlu1 %v7824_v37, %s5200_s28  ;;  %v3613_v50 = vld [vmem:[#allocation2 + $0x138] sm:$0xff] }
 0x2cc   : > { %v1990_v57 = vadd.f32 %v7805_v27, %v1989_v16  ;;  %v3404_v44 = vpop.permute.xlu0 %3403  ;;  %2890 = vst.msk [vmem:[#allocation2 + $0x150] sm:$0xff] %vm853_vm4, %v2809_v38  ;;  %v1991_v32 = vpop.f32.mrb[55].mxu0 }
 0x2cd   : > { %3486 = vst.msk [vmem:[#allocation2 + $0x140] sm:$0xff] %vm984_vm5, %v3404_v44  ;;  %3289 = vrot.lane.b32.xlu0 %v7884_v61, %s5199_s24 }
 0x2ce   : > { %v7933_v18 = vld [vmem:[#allocation3 + $0x150] sm:$0xff]  ;;  %v2215_v33 = vadd.f32 %v7467_v52, %v1990_v57 }
 0x2cf   : > { %2440 = vst.msk [vmem:[#allocation2 + $0x2a0] sm:$0xff] %vm385_vm2, %v7933_v18  ;;  %v2939_v31 = vpop.permute.xlu1 %2938  ;;  %2828 = vrot.lane.b32.xlu1 %v7830_v26, %s5199_s24  ;;  %v2562_v42 = vrot.slane %v7933_v18, 1  ;;  %v2770_v3 = vrot.slane %v7933_v18, 2 }
 0x2d0   : > { %v2265_v60 = vmax.f32 %v2215_v33, 0.0  ;;  %v3142_v10 = vpop.permute.xlu0 %3141  ;;  %3020 = vst.msk [vmem:[#allocation2 + $0x150] sm:$0xff] %vm984_vm5, %v2939_v31 }
 0x2d1   : > { %3223 = vst.msk [vmem:[#allocation2 + $0x158] sm:$0xff] %vm643_vm3, %v3142_v10  ;;  %3423 = vrot.lane.b32.xlu0 %v7901_v13, %s5201_s29 }
 0x2d2   : > { %2353 = vst.msk [vmem:[#allocation3 + $0x159] sm:$0xff] %vm385_vm2, %v2265_v60 }
 0x2d3   : > { %v2603_v37 = vpop.permute.xlu1 %2602  ;;  %2958 = vrot.lane.b32.xlu1 %v7859_v8, %s5201_s29 }
 0x2d4   : > { %v3272_v52 = vpop.permute.xlu0 %3271  ;;  %v3614_v58 = vld [vmem:[#allocation2 + $0x140] sm:$0xff]  ;;  %2683 = vst.msk [vmem:[#allocation2 + $0x168] sm:$0xff] %vm643_vm3, %v2603_v37 }
 0x2d5   : > { %3353 = vst.msk [vmem:[#allocation2 + $0x158] sm:$0xff] %vm853_vm4, %v3272_v52  ;;  %3938 = vmatprep.mubr.f32.mxu1 %v3614_v58  ;;  %3161 = vrot.lane.b32.xlu0 %v7904_v25, %s5200_s28 }
 0x2d6   : > { %3939 = vmatmul.mubr.f32.gmra.mrb[58].mxu1 %v3613_v50 }
 0x2d7   : > { %v1994_v24 = vpop.f32.mrb[56].mxu0  ;;  %v2811_v47 = vpop.permute.xlu1 %2810  ;;  %2622 = vrot.lane.b32.xlu1 %v7827_v12, %s5200_s28  ;;  %v3616_v52 = vld [vmem:[#allocation2 + $0x150] sm:$0xff] }
 0x2d8   : > { %v1995_v63 = vadd.f32 %v7805_v27, %v1994_v24  ;;  %v3406_v26 = vpop.permute.xlu0 %3405  ;;  %2891 = vst.msk [vmem:[#allocation2 + $0x168] sm:$0xff] %vm853_vm4, %v2811_v47  ;;  %v1996_v48 = vpop.f32.mrb[57].mxu0 }
 0x2d9   : > { %3487 = vst.msk [vmem:[#allocation2 + $0x158] sm:$0xff] %vm984_vm5, %v3406_v26  ;;  %v7958_v53 = vld [vmem:[#allocation3 + $0x158] sm:$0xff]  ;;  %v2402_v15 = vld [vmem:[#allocation3 + $0x160] sm:$0x3]  ;;  %3291 = vrot.lane.b32.xlu0 %v7933_v18, %s5199_s24 }
 0x2da   : > { %v2220_v8 = vadd.f32 %v7555_v34, %v1995_v63  ;;  %v2563_v11 = vrot.slane %v7958_v53, 1  ;;  %2441 = vst.msk [vmem:[#allocation2 + $0x2b8] sm:$0xff] %vm385_vm2, %v7958_v53  ;;  %v2565_v28 = vrot.slane %v2402_v15, 1  ;;  %v2771_v56 = vrot.slane %v7958_v53, 2 }
 0x2db   : > { %v2773_v16 = vrot.slane %v2402_v15, 2  ;;  %v2941_v38 = vpop.permute.xlu1 %2940  ;;  %2830 = vrot.lane.b32.xlu1 %v7841_v17, %s5199_s24 }
 0x2dc   : > { %v2266_v57 = vmax.f32 %v2220_v8, 0.0  ;;  %v3144_v44 = vpop.permute.xlu0 %3143  ;;  %v7972_v34 = vsel %vm466_vm1, %v2562_v42, %v2563_v11  ;;  %v7975_v32 = vsel %vm466_vm1, %v2563_v11, %v2565_v28  ;;  %v7978_v12 = vsel %vm676_vm0, %v2770_v3, %v2771_v56  ;;  %3021 = vst.msk [vmem:[#allocation2 + $0x168] sm:$0xff] %vm984_vm5, %v2941_v38 }
 0x2dd   : > { %3224 = vst.msk [vmem:[#allocation2 + $0x170] sm:$0xff] %vm643_vm3, %v3144_v44  ;;  %v7989_v33 = vsel %vm676_vm0, %v2771_v56, %v2773_v16  ;;  %3425 = vrot.lane.b32.xlu0 %v7972_v34, %s5201_s29 }
 0x2de   : > { %3102 = vst.msk [vmem:[#allocation2 + $0x278] sm:$0xff] %vm385_vm2, %v7972_v34  ;;  %3103 = vst.msk [vmem:[#allocation2 + $0x290] sm:$0xff] %vm385_vm2, %v7975_v32 }
 0x2df   : > { %3566 = vst.msk [vmem:[#allocation2 + $0x250] sm:$0xff] %vm385_vm2, %v7978_v12  ;;  %2354 = vst.msk [vmem:[#allocation3 + $0x169] sm:$0xff] %vm385_vm2, %v2266_v57  ;;  %v2605_v10 = vpop.permute.xlu1 %2604  ;;  %2960 = vrot.lane.b32.xlu1 %v7884_v61, %s5201_s29 }
 0x2e0   : > { %3567 = vst.msk [vmem:[#allocation2 + $0x268] sm:$0xff] %vm385_vm2, %v7989_v33  ;;  %v3274_v60 = vpop.permute.xlu0 %3273  ;;  %v3617_v31 = vld [vmem:[#allocation2 + $0x158] sm:$0xff] }
 0x2e1   : > { %3354 = vst.msk [vmem:[#allocation2 + $0x170] sm:$0xff] %vm853_vm4, %v3274_v60  ;;  %3943 = vmatprep.mubr.f32.mxu1 %v3617_v31  ;;  %3163 = vrot.lane.b32.xlu0 %v7915_v22, %s5200_s28 }
 0x2e2   : > { %2684 = vst.msk [vmem:[#allocation2 + $0x180] sm:$0xff] %vm643_vm3, %v2605_v10  ;;  %3944 = vmatmul.mubr.f32.gmra.mrb[60].mxu1 %v3616_v52 }
 0x2e3   : > { %v2813_v50 = vpop.permute.xlu1 %2812  ;;  %2624 = vrot.lane.b32.xlu1 %v7898_v62, %s5200_s28  ;;  %v3619_v15 = vld [vmem:[#allocation2 + $0x168] sm:$0xff] }
 0x2e4   : > { %v1999_v17 = vpop.f32.mrb[58].mxu0  ;;  %v3408_v58 = vpop.permute.xlu0 %3407  ;;  %2892 = vst.msk [vmem:[#allocation2 + $0x180] sm:$0xff] %vm853_vm4, %v2813_v50 }
 0x2e5   : > { %v2000_v37 = vadd.f32 %v7805_v27, %v1999_v17  ;;  %3488 = vst.msk [vmem:[#allocation2 + $0x170] sm:$0xff] %vm984_vm5, %v3408_v58  ;;  %v2001_v24 = vpop.f32.mrb[59].mxu0  ;;  %3293 = vrot.lane.b32.xlu0 %v7958_v53, %s5199_s24 }
 0x2e6   : > { %v8007_v63 = vld [vmem:[#allocation3 + $0x168] sm:$0xff] }
 0x2e7   : > { %v2225_v26 = vadd.f32 %v7548_v55, %v2000_v37  ;;  %2442 = vst.msk [vmem:[#allocation2 + $0x2d0] sm:$0xff] %vm385_vm2, %v8007_v63  ;;  %v2943_v48 = vpop.permute.xlu1 %2942  ;;  %2832 = vrot.lane.b32.xlu1 %v7904_v25, %s5199_s24  ;;  %v2567_v16 = vrot.slane %v8007_v63, 1  ;;  %v2775_v44 = vrot.slane %v8007_v63, 2 }
 0x2e8   : > { %v3146_v47 = vpop.permute.xlu0 %3145  ;;  %3022 = vst.msk [vmem:[#allocation2 + $0x180] sm:$0xff] %vm984_vm5, %v2943_v48 }
 0x2e9   : > { %v2267_v61 = vmax.f32 %v2225_v26, 0.0  ;;  %3225 = vst.msk [vmem:[#allocation2 + $0x188] sm:$0xff] %vm643_vm3, %v3146_v47  ;;  %3427 = vrot.lane.b32.xlu0 %v7975_v32, %s5201_s29 }
 0x2eb   : > { %2355 = vst.msk [vmem:[#allocation3 + $0x171] sm:$0xff] %vm385_vm2, %v2267_v61  ;;  %v2607_v62 = vpop.permute.xlu1 %2606  ;;  %2962 = vrot.lane.b32.xlu1 %v7933_v18, %s5201_s29 }
 0x2ec   : > { %v3276_v55 = vpop.permute.xlu0 %3275  ;;  %v3620_v42 = vld [vmem:[#allocation2 + $0x170] sm:$0xff]  ;;  %2685 = vst.msk [vmem:[#allocation2 + $0x198] sm:$0xff] %vm643_vm3, %v2607_v62 }
 0x2ed   : > { %3355 = vst.msk [vmem:[#allocation2 + $0x188] sm:$0xff] %vm853_vm4, %v3276_v55  ;;  %3948 = vmatprep.mubr.f32.mxu1 %v3620_v42  ;;  %3165 = vrot.lane.b32.xlu0 %v7978_v12, %s5200_s28 }
 0x2ee   : > { %3949 = vmatmul.mubr.f32.gmra.mrb[62].mxu1 %v3619_v15 }
 0x2ef   : > { %v2004_v3 = vpop.f32.mrb[60].mxu0  ;;  %v2815_v11 = vpop.permute.xlu1 %2814  ;;  %2626 = vrot.lane.b32.xlu1 %v7901_v13, %s5200_s28  ;;  %v3622_v47 = vld [vmem:[#allocation2 + $0x180] sm:$0xff] }
 0x2f0   : > { %v2005_v8 = vadd.f32 %v7805_v27, %v2004_v3  ;;  %v3410_v25 = vpop.permute.xlu0 %3409  ;;  %2893 = vst.msk [vmem:[#allocation2 + $0x198] sm:$0xff] %vm853_vm4, %v2815_v11  ;;  %v2006_v28 = vpop.f32.mrb[61].mxu0 }
 0x2f1   : > { %3489 = vst.msk [vmem:[#allocation2 + $0x188] sm:$0xff] %vm984_vm5, %v3410_v25  ;;  %3295 = vrot.lane.b32.xlu0 %v8007_v63, %s5199_s24 }
 0x2f2   : > { %v8032_v56 = vld [vmem:[#allocation3 + $0x170] sm:$0xff]  ;;  %v2405_v57 = vld [vmem:[#allocation3 + $0x178] sm:$0x3]  ;;  %v2230_v18 = vadd.f32 %v7635_v45, %v2005_v8 }
 0x2f3   : > { %v2568_v38 = vrot.slane %v8032_v56, 1  ;;  %2443 = vst.msk [vmem:[#allocation2 + $0x2e8] sm:$0xff] %vm385_vm2, %v8032_v56  ;;  %v2570_v60 = vrot.slane %v2405_v57, 1  ;;  %v2776_v10 = vrot.slane %v8032_v56, 2  ;;  %v2778_v31 = vrot.slane %v2405_v57, 2  ;;  %v2945_v37 = vpop.permute.xlu1 %2944  ;;  %2834 = vrot.lane.b32.xlu1 %v7915_v22, %s5199_s24 }
 0x2f4   : > { %v2268_v52 = vmax.f32 %v2230_v18, 0.0  ;;  %v3148_v17 = vpop.permute.xlu0 %3147  ;;  %3023 = vst.msk [vmem:[#allocation2 + $0x198] sm:$0xff] %vm984_vm5, %v2945_v37 }
 0x2f5   : > { %v8046_v45 = vsel %vm466_vm1, %v2567_v16, %v2568_v38  ;;  %v8049_v58 = vsel %vm466_vm1, %v2568_v38, %v2570_v60  ;;  %v8052_v13 = vsel %vm676_vm0, %v2775_v44, %v2776_v10  ;;  %3226 = vst.msk [vmem:[#allocation2 + $0x1a0] sm:$0xff] %vm643_vm3, %v3148_v17  ;;  %v8063_v50 = vsel %vm676_vm0, %v2776_v10, %v2778_v31 }
 0x2f6   : > { %3104 = vst.msk [vmem:[#allocation2 + $0x2a8] sm:$0xff] %vm385_vm2, %v8046_v45  ;;  %3105 = vst.msk [vmem:[#allocation2 + $0x2c0] sm:$0xff] %vm385_vm2, %v8049_v58  ;;  %3429 = vrot.lane.b32.xlu0 %v8046_v45, %s5201_s29 }
 0x2f7   : > { %3568 = vst.msk [vmem:[#allocation2 + $0x280] sm:$0xff] %vm385_vm2, %v8052_v13  ;;  %2356 = vst.msk [vmem:[#allocation3 + $0x181] sm:$0xff] %vm385_vm2, %v2268_v52  ;;  %v2609_v26 = vpop.permute.xlu1 %2608  ;;  %2964 = vrot.lane.b32.xlu1 %v7958_v53, %s5201_s29 }
 0x2f8   : > { %3569 = vst.msk [vmem:[#allocation2 + $0x298] sm:$0xff] %vm385_vm2, %v8063_v50  ;;  %v3278_v24 = vpop.permute.xlu0 %3277  ;;  %v3623_v61 = vld [vmem:[#allocation2 + $0x188] sm:$0xff] }
 0x2f9   : > { %3356 = vst.msk [vmem:[#allocation2 + $0x1a0] sm:$0xff] %vm853_vm4, %v3278_v24  ;;  %3953 = vmatprep.mubr.f32.mxu1 %v3623_v61 }
 0x2fa   : > { %2686 = vst.msk [vmem:[#allocation2 + $0x1b0] sm:$0xff] %vm643_vm3, %v2609_v26  ;;  %3167 = vrot.lane.b32.xlu0 %v7989_v33, %s5200_s28  ;;  %3954 = vmatmul.mubr.f32.gmra.mrb[64].mxu1 %v3622_v47 }
 0x2fb   : > { %v2817_v62 = vpop.permute.xlu1 %2816  ;;  %2628 = vrot.lane.b32.xlu1 %v7972_v34, %s5200_s28  ;;  %v3625_v57 = vld [vmem:[#allocation2 + $0x198] sm:$0xff] }
 0x2fc   : > { %v2009_v22 = vpop.f32.mrb[62].mxu0  ;;  %v3412_v55 = vpop.permute.xlu0 %3411  ;;  %2894 = vst.msk [vmem:[#allocation2 + $0x1b0] sm:$0xff] %vm853_vm4, %v2817_v62 }
 0x2fd   : > { %v2010_v48 = vadd.f32 %v7805_v27, %v2009_v22  ;;  %3490 = vst.msk [vmem:[#allocation2 + $0x1a0] sm:$0xff] %vm984_vm5, %v3412_v55  ;;  %v2011_v42 = vpop.f32.mrb[63].mxu0 }
 0x2fe   : > { %3297 = vrot.lane.b32.xlu0 %v8032_v56, %s5199_s24 }
 0x2ff   : > { %v2235_v15 = vadd.f32 %v7628_v4, %v2010_v48  ;;  %v2947_v27 = vpop.permute.xlu1 %2946  ;;  %2836 = vrot.lane.b32.xlu1 %v7978_v12, %s5199_s24  ;;  %v8105_v12 = vld [vmem:[#allocation3 + $0x180] sm:$0xff] }
 0x300   : > { %v8086_v53 = vpop.f32.mrb[64].mxu0  ;;  %v3150_v8 = vpop.permute.xlu0 %3149  ;;  %3024 = vst.msk [vmem:[#allocation2 + $0x1b0] sm:$0xff] %vm984_vm5, %v2947_v27  ;;  %v3039_v10 = vrot.slane %v8105_v12, 1  ;;  %v3108_v31 = vrot.slane %v8105_v12, 2  ;;  %v8128_v48 = vld [vmem:[%s8717_s4] ss:$0 sm:$0xff] }
 0x301   : > { %v2269_v3 = vmax.f32 %v2235_v15, 0.0  ;;  %3227 = vst.msk [vmem:[#allocation2 + $0x1b8] sm:$0xff] %vm643_vm3, %v3150_v8  ;;  %v4100_v25 = vpop.f32.mrb[65].mxu0 }
 0x302   : > { %3431 = vrot.lane.b32.xlu0 %v8049_v58, %s5201_s29 }
 0x303   : > { %2357 = vst.msk [vmem:[#allocation3 + $0x189] sm:$0xff] %vm385_vm2, %v2269_v3  ;;  %v2611_v11 = vpop.permute.xlu1 %2610  ;;  %2966 = vrot.lane.b32.xlu1 %v8007_v63, %s5201_s29 }
 0x304   : > { %v8095_v4 = vpop.f32.mrb[66].mxu0  ;;  %v3280_v34 = vpop.permute.xlu0 %3279  ;;  %v3626_v28 = vld [vmem:[#allocation2 + $0x1a0] sm:$0xff]  ;;  %2687 = vst.msk [vmem:[#allocation2 + $0x1c8] sm:$0xff] %vm643_vm3, %v2611_v11 }
 0x305   : > { %3357 = vst.msk [vmem:[#allocation2 + $0x1b8] sm:$0xff] %vm853_vm4, %v3280_v34  ;;  %3958 = vmatprep.mubr.f32.mxu1 %v3626_v28  ;;  %v8099_v16 = vpop.f32.mrb[67].mxu0 }
 0x306   : > { %3169 = vrot.lane.b32.xlu0 %v8052_v13, %s5200_s28  ;;  %3959 = vmatmul.mubr.f32.gmra.mrb[66].mxu1 %v3625_v57 }
 0x307   : > { %v2819_v38 = vpop.permute.xlu1 %2818  ;;  %2630 = vrot.lane.b32.xlu1 %v7975_v32, %s5200_s28 }
 0x308   : > { %v8107_v44 = vpop.f32.mrb[68].mxu0  ;;  %v3414_v18 = vpop.permute.xlu0 %3413  ;;  %2895 = vst.msk [vmem:[#allocation2 + $0x1c8] sm:$0xff] %vm853_vm4, %v2819_v38 }
 0x309   : > { %3491 = vst.msk [vmem:[#allocation2 + $0x1b8] sm:$0xff] %vm984_vm5, %v3414_v18  ;;  %v8111_v60 = vpop.f32.mrb[69].mxu0 }
 0x30a   : > { %v8115_v52 = vld [vmem:[#allocation3 + $0x188] sm:$0xff]  ;;  %v2408_v63 = vld [vmem:[#allocation3 + $0x190] sm:$0x3]  ;;  %3299 = vrot.lane.b32.xlu0 %v8105_v12, %s5199_s24  ;;  %v3875_v3 = vpop.f32.mrb[32].mxu1 }
 0x30b   : > { %v3040_v17 = vrot.slane %v8115_v52, 1  ;;  %v3042_v37 = vrot.slane %v2408_v63, 1  ;;  %v3109_v24 = vrot.slane %v8115_v52, 2  ;;  %v3111_v26 = vrot.slane %v2408_v63, 2  ;;  %v2949_v22 = vpop.permute.xlu1 %2948  ;;  %2838 = vrot.lane.b32.xlu1 %v7989_v33, %s5199_s24  ;;  %v3877_v27 = vpop.f32.mrb[33].mxu1  ;;  %v3628_v33 = vld [vmem:[#allocation2 + $0x1b0] sm:$0xff] }
 0x30c   : > { %v8123_v61 = vpop.f32.mrb[70].mxu0  ;;  %v3152_v47 = vpop.permute.xlu0 %3151  ;;  %3025 = vst.msk [vmem:[#allocation2 + $0x1c8] sm:$0xff] %vm984_vm5, %v2949_v22  ;;  %v3876_v8 = vadd.f32 %v8128_v48, %v3875_v3  ;;  %v5132_v3 = vld [vmem:[#allocation3 + $0x1a0] sm:$0xff] }
 0x30d   : > { %v3041_v55 = vsel %vm466_vm1, %v3039_v10, %v3040_v17  ;;  %v3043_v62 = vsel %vm466_vm1, %v3040_v17, %v3042_v37  ;;  %v3110_v32 = vsel %vm676_vm0, %v3108_v31, %v3109_v24  ;;  %v8134_v42 = vsel %vm676_vm0, %v3109_v24, %v3111_v26  ;;  %3228 = vst.msk [vmem:[#allocation2 + $0x1d0] sm:$0xff] %vm643_vm3, %v3152_v47  ;;  %v8138_v15 = vpop.f32.mrb[71].mxu0 }
 0x30e   : > { %3106 = vst.msk [vmem:[#allocation2 + $0x2d8] sm:$0xff] %vm385_vm2, %v3041_v55  ;;  %3107 = vst.msk [vmem:[#allocation2 + $0x2f0] sm:$0xff] %vm385_vm2, %v3043_v62  ;;  %3433 = vrot.lane.b32.xlu0 %v3041_v55, %s5201_s29  ;;  %v8151_v18 = vadd.f32 %v4100_v25, %v3876_v8  ;;  %v3373_v8 = vrot.slane %v5132_v3, 1 }
 0x30f   : > { %3570 = vst.msk [vmem:[#allocation2 + $0x2b0] sm:$0xff] %vm385_vm2, %v3110_v32  ;;  %3571 = vst.msk [vmem:[#allocation2 + $0x2c8] sm:$0xff] %vm385_vm2, %v8134_v42  ;;  %v2613_v28 = vpop.permute.xlu1 %2612  ;;  %2968 = vrot.lane.b32.xlu1 %v8032_v56, %s5201_s29 }
 0x310   : > { %v8149_v34 = vpop.f32.mrb[72].mxu0  ;;  %v3282_v11 = vpop.permute.xlu0 %3281  ;;  %v3629_v57 = vld [vmem:[#allocation2 + $0x1b8] sm:$0xff]  ;;  %2688 = vst.msk [vmem:[#allocation2 + $0x1e0] sm:$0xff] %vm643_vm3, %v2613_v28 }
 0x311   : > { %3358 = vst.msk [vmem:[#allocation2 + $0x1d0] sm:$0xff] %vm853_vm4, %v3282_v11  ;;  %3963 = vmatprep.mubr.f32.mxu1 %v3629_v57  ;;  %v8155_v38 = vpop.f32.mrb[73].mxu0 }
 0x312   : > { %3171 = vrot.lane.b32.xlu0 %v8063_v50, %s5200_s28  ;;  %3964 = vmatmul.mubr.f32.gmra.mrb[68].mxu1 %v3628_v33 }
 0x313   : > { %v2821_v25 = vpop.permute.xlu1 %2820  ;;  %2632 = vrot.lane.b32.xlu1 %v8046_v45, %s5200_s28 }
 0x314   : > { %v8161_v10 = vpop.f32.mrb[74].mxu0  ;;  %v3416_v31 = vpop.permute.xlu0 %3415  ;;  %2896 = vst.msk [vmem:[#allocation2 + $0x1e0] sm:$0xff] %vm853_vm4, %v2821_v25 }
 0x315   : > { %3492 = vst.msk [vmem:[#allocation2 + $0x1d0] sm:$0xff] %vm984_vm5, %v3416_v31  ;;  %v8165_v63 = vpop.f32.mrb[75].mxu0 }
 0x316   : > { %3301 = vrot.lane.b32.xlu0 %v8115_v52, %s5199_s24  ;;  %v3880_v37 = vpop.f32.mrb[34].mxu1 }
 0x317   : > { %v2951_v56 = vpop.permute.xlu1 %2950  ;;  %2840 = vrot.lane.b32.xlu1 %v8052_v13, %s5199_s24  ;;  %v3881_v24 = vadd.f32 %v8128_v48, %v3880_v37  ;;  %v3882_v26 = vpop.f32.mrb[35].mxu1  ;;  %v3631_v13 = vld [vmem:[#allocation2 + $0x1c8] sm:$0xff] }
 0x318   : > { %v3154_v17 = vpop.permute.xlu0 %3153  ;;  %3026 = vst.msk [vmem:[#allocation2 + $0x1e0] sm:$0xff] %vm984_vm5, %v2951_v56  ;;  %v5133_v37 = vld [vmem:[#allocation3 + $0x1a8] sm:$0x3] }
 0x319   : > { %3229 = vst.msk [vmem:[#allocation2 + $0x1e8] sm:$0xff] %vm643_vm3, %v3154_v17  ;;  %v8178_v45 = vadd.f32 %v8086_v53, %v3881_v24 }
 0x31a   : > { %3435 = vrot.lane.b32.xlu0 %v3043_v62, %s5201_s29  ;;  %v3372_v62 = vrot.slane %v7784_v30, 1 }
 0x31b   : > { %v2615_v22 = vpop.permute.xlu1 %2614  ;;  %2970 = vrot.lane.b32.xlu1 %v8105_v12, %s5201_s29 }
 0x31c   : > { %v3284_v47 = vpop.permute.xlu0 %3283  ;;  %v3632_v55 = vld [vmem:[#allocation2 + $0x1d0] sm:$0xff]  ;;  %2689 = vst.msk [vmem:[#allocation2 + $0x1f8] sm:$0xff] %vm643_vm3, %v2615_v22  ;;  %v3374_v53 = vsel %vm466_vm1, %v3372_v62, %v3373_v8 }
 0x31d   : > { %3359 = vst.msk [vmem:[#allocation2 + $0x1e8] sm:$0xff] %vm853_vm4, %v3284_v47  ;;  %3968 = vmatprep.mubr.f32.mxu1 %v3632_v55 }
 0x31e   : > { %3173 = vrot.lane.b32.xlu0 %v3110_v32, %s5200_s28  ;;  %3969 = vmatmul.mubr.f32.gmra.mrb[70].mxu1 %v3631_v13 }
 0x31f   : > { %v2823_v11 = vpop.permute.xlu1 %2822  ;;  %2634 = vrot.lane.b32.xlu1 %v8049_v58, %s5200_s28 }
 0x320   : > { %v3418_v27 = vpop.permute.xlu0 %3417  ;;  %2897 = vst.msk [vmem:[#allocation2 + $0x1f8] sm:$0xff] %vm853_vm4, %v2823_v11 }
 0x321   : > { %3493 = vst.msk [vmem:[#allocation2 + $0x1e8] sm:$0xff] %vm984_vm5, %v3418_v27  ;;  %v3885_v28 = vpop.f32.mrb[36].mxu1 }
 0x322   : > { %3303 = vrot.lane.b32.xlu0 %v7784_v30, %s5199_s24  ;;  %v3886_v57 = vadd.f32 %v8128_v48, %v3885_v28  ;;  %v3887_v30 = vpop.f32.mrb[37].mxu1 }
 0x323   : > { %v2953_v32 = vpop.permute.xlu1 %2952  ;;  %2842 = vrot.lane.b32.xlu1 %v8063_v50, %s5199_s24  ;;  %v3634_v50 = vld [vmem:[#allocation2 + $0x1e0] sm:$0xff] }
 0x324   : > { %v3156_v12 = vpop.permute.xlu0 %3155  ;;  %3027 = vst.msk [vmem:[#allocation2 + $0x1f8] sm:$0xff] %vm984_vm5, %v2953_v32  ;;  %v8200_v25 = vadd.f32 %v8099_v16, %v3886_v57  ;;  %v3375_v16 = vrot.slane %v5133_v37, 1 }
 0x325   : > { %3230 = vst.msk [vmem:[#allocation2 + $0x200] sm:$0xff] %vm643_vm3, %v3156_v12 }
 0x326   : > { %3437 = vrot.lane.b32.xlu0 %v3374_v53, %s5201_s29  ;;  %v3376_v47 = vsel %vm466_vm1, %v3373_v8, %v3375_v16 }
 0x327   : > { %v2617_v31 = vpop.permute.xlu1 %2616  ;;  %2972 = vrot.lane.b32.xlu1 %v8115_v52, %s5201_s29 }
 0x328   : > { %v3286_v33 = vpop.permute.xlu0 %3285  ;;  %v3635_v58 = vld [vmem:[#allocation2 + $0x1e8] sm:$0xff]  ;;  %2690 = vst.msk [vmem:[#allocation2 + $0x210] sm:$0xff] %vm643_vm3, %v2617_v31 }
 0x329   : > { %3360 = vst.msk [vmem:[#allocation2 + $0x200] sm:$0xff] %vm853_vm4, %v3286_v33  ;;  %3973 = vmatprep.mubr.f32.mxu1 %v3635_v58  ;;  %v8204_v17 = vpop.f32.mrb[76].mxu0 }
 0x32a   : > { %3175 = vrot.lane.b32.xlu0 %v8134_v42, %s5200_s28  ;;  %3974 = vmatmul.mubr.f32.gmra.mrb[72].mxu1 %v3634_v50  ;;  %v8210_v56 = vpop.f32.mrb[77].mxu0 }
 0x32b   : > { %v2825_v26 = vpop.permute.xlu1 %2824 }
 0x32c   : > { %v3420_v24 = vpop.permute.xlu0 %3419  ;;  %2898 = vst.msk [vmem:[#allocation2 + $0x210] sm:$0xff] %vm853_vm4, %v2825_v26 }
 0x32d   : > { %3494 = vst.msk [vmem:[#allocation2 + $0x200] sm:$0xff] %vm984_vm5, %v3420_v24 }
 0x32e   : > { %3305 = vrot.lane.b32.xlu0 %v5132_v3, %s5199_s24  ;;  %v3890_v52 = vpop.f32.mrb[38].mxu1  ;;  %v3637_v3 = vld [vmem:[#allocation2 + $0x1f8] sm:$0xff]  ;;  %s5138_s24 = sshll.u32 %s5204_s22, 4  ;;  %s5139_s24 = int_to_ptr.vmem [resolvable:$false] %s5138_s24 }
 0x32f   : > { %v2955_v22 = vpop.permute.xlu1 %2954  ;;  %v3891_v55 = vadd.f32 %v8128_v48, %v3890_v52  ;;  %v3892_v13 = vpop.f32.mrb[39].mxu1  ;;  %s5140_s28 = scalar_lea.vmem %s5139_s24, 8192 }
 0x330   : > { %v3158_v42 = vpop.permute.xlu0 %3157  ;;  %3028 = vst.msk [vmem:[#allocation2 + $0x210] sm:$0xff] %vm984_vm5, %v2955_v22 }
 0x331   : > { %3231 = vst.msk [vmem:[#allocation2 + $0x218] sm:$0xff] %vm643_vm3, %v3158_v42  ;;  %v8221_v53 = vadd.f32 %v8095_v4, %v3891_v55 }
 0x332   : > { %3439 = vrot.lane.b32.xlu0 %v3376_v47, %s5201_s29  ;;  %s323_s29 = sand.u32 1, %s5188_s10  }
 0x333   : > { %v2619_v27 = vpop.permute.xlu1 %2618  ;;  %s4671_s26 = sshll.u32 %s323_s29, 8  ;;  %s8672_s17 = scalar_lea.sflag [#allocation5], %s323_s29 }
 0x334   : > { %v3288_v62 = vpop.permute.xlu0 %3287  ;;  %v3638_v11 = vld [vmem:[#allocation2 + $0x200] sm:$0xff]  ;;  %2691 = vst.msk [vmem:[#allocation2 + $0x228] sm:$0xff] %vm643_vm3, %v2619_v27  ;;  %s8575_s23 = scalar_lea.vmem [#allocation4], %s4671_s26 }
 0x335   : > { %3361 = vst.msk [vmem:[#allocation2 + $0x218] sm:$0xff] %vm853_vm4, %v3288_v62  ;;  %3978 = vmatprep.mubr.f32.mxu1 %v3638_v11  ;;  %s4605_s14 = sshll.u32 %s8575_s23, 4  ;;  %s8640_s14 = int_to_ptr.vmem [resolvable:$true] %s4605_s14 }
 0x336   : > { %3979 = vmatmul.mubr.f32.gmra.mrb[74].mxu1 %v3637_v3  ;;  %s5134_s21 = scalar_lea.vmem %s8640_s14, 4096  ;;  %p5141_p0 = scmp.lt.s32.totalorder %s8640_s14, %s5139_s24 }
 0x337   : > { %v2827_v12 = vpop.permute.xlu1 %2826  ;;  %v3640_v37 = vld [vmem:[#allocation2 + $0x210] sm:$0xff]  ;;  %p5135_p11 = scmp.ne.s32.totalorder %s8640_s14, %s5134_s21  ;;  %p5142_p1 = scmp.lt.s32.totalorder %s5140_s28, %s5134_s21 }
 0x338   : > { %v3422_v8 = vpop.permute.xlu0 %3421  ;;  %2899 = vst.msk [vmem:[#allocation2 + $0x228] sm:$0xff] %vm853_vm4, %v2827_v12 }
 0x339   : > { %3495 = vst.msk [vmem:[#allocation2 + $0x218] sm:$0xff] %vm984_vm5, %v3422_v8  ;;  %v3895_v4 = vpop.f32.mrb[40].mxu1  ;;  %p5136_p12 = pnand %p5135_p11, %p5295_p5  ;;  %p5143_p2 = por %p5142_p1, %p5141_p0 }
 0x33a   : > { %v3896_v57 = vadd.f32 %v8128_v48, %v3895_v4  ;;  %v3897_v30 = vpop.f32.mrb[41].mxu1 }
 0x33b   : > { %v2957_v28 = vpop.permute.xlu1 %2956  ;;  %p5137_p13 = pneg %p5136_p12 }
 0x33c   : > { %v3160_v32 = vpop.permute.xlu0 %3159  ;;  %3029 = vst.msk [vmem:[#allocation2 + $0x228] sm:$0xff] %vm984_vm5, %v2957_v28  ;;  %v8231_v50 = vadd.f32 %v8111_v60, %v3896_v57 }
 0x33d   : > { %3232 = vst.msk [vmem:[#allocation2 + $0x230] sm:$0xff] %vm643_vm3, %v3160_v32  ;;  %p5144_p3 = pnand %p5143_p2, %p5137_p13 }
 0x33f   : > { %v2621_v31 = vpop.permute.xlu1 %2620 }
 0x340   : > { %v3290_v33 = vpop.permute.xlu0 %3289  ;;  %v3641_v58 = vld [vmem:[#allocation2 + $0x218] sm:$0xff]  ;;  %2692 = vst.msk [vmem:[#allocation2 + $0x240] sm:$0xff] %vm643_vm3, %v2621_v31 }
 0x341   : > { %3362 = vst.msk [vmem:[#allocation2 + $0x230] sm:$0xff] %vm853_vm4, %v3290_v33  ;;  %3983 = vmatprep.mubr.f32.mxu1 %v3641_v58  ;;  %v8235_v16 = vpop.f32.mrb[78].mxu0 }
 0x342   : > { %3984 = vmatmul.mubr.f32.gmra.mrb[76].mxu1 %v3640_v37  ;;  %v8237_v24 = vpop.f32.mrb[79].mxu0 }
 0x343   : > { %v2829_v47 = vpop.permute.xlu1 %2828  ;;  %v3643_v3 = vld [vmem:[#allocation2 + $0x228] sm:$0xff] }
 0x344   : > { %v3424_v26 = vpop.permute.xlu0 %3423  ;;  %2900 = vst.msk [vmem:[#allocation2 + $0x240] sm:$0xff] %vm853_vm4, %v2829_v47 }
 0x345   : > { %3496 = vst.msk [vmem:[#allocation2 + $0x230] sm:$0xff] %vm984_vm5, %v3424_v26 }
 0x346   : > { %v3900_v22 = vpop.f32.mrb[42].mxu1 }
 0x347   : > { %v2959_v60 = vpop.permute.xlu1 %2958  ;;  %v3901_v52 = vadd.f32 %v8128_v48, %v3900_v22  ;;  %v3902_v55 = vpop.f32.mrb[43].mxu1 }
 0x348   : > { %v3162_v42 = vpop.permute.xlu0 %3161  ;;  %3030 = vst.msk [vmem:[#allocation2 + $0x240] sm:$0xff] %vm984_vm5, %v2959_v60 }
 0x349   : > { %3233 = vst.msk [vmem:[#allocation2 + $0x248] sm:$0xff] %vm643_vm3, %v3162_v42  ;;  %v8245_v11 = vadd.f32 %v8107_v44, %v3901_v52 }
 0x34b   : > { %v2623_v62 = vpop.permute.xlu1 %2622 }
 0x34c   : > { %v3292_v13 = vpop.permute.xlu0 %3291  ;;  %v3644_v27 = vld [vmem:[#allocation2 + $0x230] sm:$0xff]  ;;  %2693 = vst.msk [vmem:[#allocation2 + $0x258] sm:$0xff] %vm643_vm3, %v2623_v62 }
 0x34d   : > { %3363 = vst.msk [vmem:[#allocation2 + $0x248] sm:$0xff] %vm853_vm4, %v3292_v13  ;;  %3988 = vmatprep.mubr.f32.mxu1 %v3644_v27 }
 0x34e   : > { %3989 = vmatmul.mubr.f32.gmra.mrb[78].mxu1 %v3643_v3 }
 0x34f   : > { %v2831_v12 = vpop.permute.xlu1 %2830  ;;  %v3646_v37 = vld [vmem:[#allocation2 + $0x240] sm:$0xff] }
 0x350   : > { %v3426_v8 = vpop.permute.xlu0 %3425  ;;  %2901 = vst.msk [vmem:[#allocation2 + $0x258] sm:$0xff] %vm853_vm4, %v2831_v12 }
 0x351   : > { %3497 = vst.msk [vmem:[#allocation2 + $0x248] sm:$0xff] %vm984_vm5, %v3426_v8 }
 0x353   : > { %v2961_v28 = vpop.permute.xlu1 %2960  ;;  %v3905_v44 = vpop.f32.mrb[44].mxu1 }
 0x354   : > { %v3164_v32 = vpop.permute.xlu0 %3163  ;;  %3031 = vst.msk [vmem:[#allocation2 + $0x258] sm:$0xff] %vm984_vm5, %v2961_v28  ;;  %v3906_v4 = vadd.f32 %v8128_v48, %v3905_v44  ;;  %v3907_v57 = vpop.f32.mrb[45].mxu1 }
 0x355   : > { %3234 = vst.msk [vmem:[#allocation2 + $0x260] sm:$0xff] %vm643_vm3, %v3164_v32 }
 0x356   : > { %v8255_v58 = vadd.f32 %v8138_v15, %v3906_v4 }
 0x357   : > { %v2625_v33 = vpop.permute.xlu1 %2624 }
 0x358   : > { %v3294_v30 = vpop.permute.xlu0 %3293  ;;  %v3647_v31 = vld [vmem:[#allocation2 + $0x248] sm:$0xff]  ;;  %2694 = vst.msk [vmem:[#allocation2 + $0x270] sm:$0xff] %vm643_vm3, %v2625_v33  ;;  %v4270_v54 = vsel %vm385_vm2, %v8255_v58, 0.0 }
 0x359   : > { %3364 = vst.msk [vmem:[#allocation2 + $0x260] sm:$0xff] %vm853_vm4, %v3294_v30  ;;  %3993 = vmatprep.mubr.f32.mxu1 %v3647_v31  ;;  %v8259_v26 = vpop.f32.mrb[80].mxu0 }
 0x35a   : > { %3994 = vmatmul.mubr.f32.gmra.mrb[80].mxu1 %v3646_v37  ;;  %v8261_v47 = vpop.f32.mrb[81].mxu0 }
 0x35b   : > { %v2833_v60 = vpop.permute.xlu1 %2832  ;;  %v3649_v12 = vld [vmem:[#allocation2 + $0x258] sm:$0xff] }
 0x35c   : > { %v3428_v42 = vpop.permute.xlu0 %3427  ;;  %2902 = vst.msk [vmem:[#allocation2 + $0x270] sm:$0xff] %vm853_vm4, %v2833_v60 }
 0x35d   : > { %3498 = vst.msk [vmem:[#allocation2 + $0x260] sm:$0xff] %vm984_vm5, %v3428_v42 }
 0x35f   : > { %v2963_v15 = vpop.permute.xlu1 %2962  ;;  %v3910_v52 = vpop.f32.mrb[46].mxu1 }
 0x360   : > { %v3166_v22 = vpop.permute.xlu0 %3165  ;;  %3032 = vst.msk [vmem:[#allocation2 + $0x270] sm:$0xff] %vm984_vm5, %v2963_v15  ;;  %v3911_v55 = vadd.f32 %v8128_v48, %v3910_v52  ;;  %v3912_v13 = vpop.f32.mrb[47].mxu1 }
 0x361   : > { %3235 = vst.msk [vmem:[#allocation2 + $0x278] sm:$0xff] %vm643_vm3, %v3166_v22 }
 0x362   : > { %v8269_v8 = vadd.f32 %v8123_v61, %v3911_v55 }
 0x363   : > { %v2627_v27 = vpop.permute.xlu1 %2626 }
 0x364   : > { %v3296_v62 = vpop.permute.xlu0 %3295  ;;  %v3650_v3 = vld [vmem:[#allocation2 + $0x260] sm:$0xff]  ;;  %2695 = vst.msk [vmem:[#allocation2 + $0x288] sm:$0xff] %vm643_vm3, %v2627_v27 }
 0x365   : > { %3365 = vst.msk [vmem:[#allocation2 + $0x278] sm:$0xff] %vm853_vm4, %v3296_v62  ;;  %3998 = vmatprep.mubr.f32.mxu1 %v3650_v3 }
 0x366   : > { %3999 = vmatmul.mubr.f32.gmra.mrb[82].mxu1 %v3649_v12 }
 0x367   : > { %v2835_v28 = vpop.permute.xlu1 %2834  ;;  %v3652_v60 = vld [vmem:[#allocation2 + $0x270] sm:$0xff] }
 0x368   : > { %v3430_v32 = vpop.permute.xlu0 %3429  ;;  %2903 = vst.msk [vmem:[#allocation2 + $0x288] sm:$0xff] %vm853_vm4, %v2835_v28 }
 0x369   : > { %3499 = vst.msk [vmem:[#allocation2 + $0x278] sm:$0xff] %vm984_vm5, %v3430_v32 }
 0x36b   : > { %v2965_v4 = vpop.permute.xlu1 %2964 }
 0x36c   : > { %v3168_v44 = vpop.permute.xlu0 %3167  ;;  %3033 = vst.msk [vmem:[#allocation2 + $0x288] sm:$0xff] %vm984_vm5, %v2965_v4 }
 0x36d   : > { %3236 = vst.msk [vmem:[#allocation2 + $0x290] sm:$0xff] %vm643_vm3, %v3168_v44  ;;  %v3915_v61 = vpop.f32.mrb[48].mxu1 }
 0x36e   : > { %v3916_v57 = vadd.f32 %v8128_v48, %v3915_v61  ;;  %v3917_v30 = vpop.f32.mrb[49].mxu1 }
 0x36f   : > { %v2629_v31 = vpop.permute.xlu1 %2628 }
 0x370   : > { %v3298_v33 = vpop.permute.xlu0 %3297  ;;  %v3653_v37 = vld [vmem:[#allocation2 + $0x278] sm:$0xff]  ;;  %v8279_v42 = vadd.f32 %v8155_v38, %v3916_v57  ;;  %2696 = vst.msk [vmem:[#allocation2 + $0x2a0] sm:$0xff] %vm643_vm3, %v2629_v31 }
 0x371   : > { %3366 = vst.msk [vmem:[#allocation2 + $0x290] sm:$0xff] %vm853_vm4, %v3298_v33  ;;  %4003 = vmatprep.mubr.f32.mxu1 %v3653_v37 }
 0x372   : > { %4004 = vmatmul.mubr.f32.gmra.mrb[84].mxu1 %v3652_v60  ;;  %v8283_v22 = vpop.f32.mrb[82].mxu0 }
 0x373   : > { %v8285_v15 = vpop.f32.mrb[83].mxu0  ;;  %v2837_v55 = vpop.permute.xlu1 %2836  ;;  %v3655_v4 = vld [vmem:[#allocation2 + $0x288] sm:$0xff] }
 0x374   : > { %v3432_v52 = vpop.permute.xlu0 %3431  ;;  %2904 = vst.msk [vmem:[#allocation2 + $0x2a0] sm:$0xff] %vm853_vm4, %v2837_v55 }
 0x375   : > { %3500 = vst.msk [vmem:[#allocation2 + $0x290] sm:$0xff] %vm984_vm5, %v3432_v52 }
 0x377   : > { %v2967_v38 = vpop.permute.xlu1 %2966 }
 0x378   : > { %v3170_v13 = vpop.permute.xlu0 %3169  ;;  %3034 = vst.msk [vmem:[#allocation2 + $0x2a0] sm:$0xff] %vm984_vm5, %v2967_v38 }
 0x379   : > { %3237 = vst.msk [vmem:[#allocation2 + $0x2a8] sm:$0xff] %vm643_vm3, %v3170_v13  ;;  %v3920_v62 = vpop.f32.mrb[50].mxu1 }
 0x37a   : > { %v3921_v27 = vadd.f32 %v8128_v48, %v3920_v62  ;;  %v3922_v3 = vpop.f32.mrb[51].mxu1 }
 0x37b   : > { %v2631_v32 = vpop.permute.xlu1 %2630 }
 0x37c   : > { %v3300_v12 = vpop.permute.xlu0 %3299  ;;  %v3656_v28 = vld [vmem:[#allocation2 + $0x290] sm:$0xff]  ;;  %v8293_v44 = vadd.f32 %v8149_v34, %v3921_v27  ;;  %2697 = vst.msk [vmem:[#allocation2 + $0x2b8] sm:$0xff] %vm643_vm3, %v2631_v32 }
 0x37d   : > { %3367 = vst.msk [vmem:[#allocation2 + $0x2a8] sm:$0xff] %vm853_vm4, %v3300_v12  ;;  %4008 = vmatprep.mubr.f32.mxu1 %v3656_v28 }
 0x37e   : > { %4009 = vmatmul.mubr.f32.gmra.mrb[86].mxu1 %v3655_v4 }
 0x37f   : > { %v2839_v57 = vpop.permute.xlu1 %2838  ;;  %v3658_v38 = vld [vmem:[#allocation2 + $0x2a0] sm:$0xff] }
 0x380   : > { %v3434_v61 = vpop.permute.xlu0 %3433  ;;  %2905 = vst.msk [vmem:[#allocation2 + $0x2b8] sm:$0xff] %vm853_vm4, %v2839_v57 }
 0x381   : > { %3501 = vst.msk [vmem:[#allocation2 + $0x2a8] sm:$0xff] %vm984_vm5, %v3434_v61 }
 0x383   : > { %v2969_v33 = vpop.permute.xlu1 %2968 }
 0x384   : > { %v3172_v30 = vpop.permute.xlu0 %3171  ;;  %3035 = vst.msk [vmem:[#allocation2 + $0x2b8] sm:$0xff] %vm984_vm5, %v2969_v33 }
 0x385   : > { %3238 = vst.msk [vmem:[#allocation2 + $0x2c0] sm:$0xff] %vm643_vm3, %v3172_v30  ;;  %v3925_v34 = vpop.f32.mrb[52].mxu1 }
 0x386   : > { %v3926_v31 = vadd.f32 %v8128_v48, %v3925_v34  ;;  %v3927_v37 = vpop.f32.mrb[53].mxu1 }
 0x387   : > { %v2633_v52 = vpop.permute.xlu1 %2632 }
 0x388   : > { %v3302_v60 = vpop.permute.xlu0 %3301  ;;  %v3659_v55 = vld [vmem:[#allocation2 + $0x2a8] sm:$0xff]  ;;  %v8303_v13 = vadd.f32 %v8165_v63, %v3926_v31  ;;  %2698 = vst.msk [vmem:[#allocation2 + $0x2d0] sm:$0xff] %vm643_vm3, %v2633_v52 }
 0x389   : > { %3368 = vst.msk [vmem:[#allocation2 + $0x2c0] sm:$0xff] %vm853_vm4, %v3302_v60  ;;  %4013 = vmatprep.mubr.f32.mxu1 %v3659_v55 }
 0x38a   : > { %4014 = vmatmul.mubr.f32.gmra.mrb[88].mxu1 %v3658_v38 }
 0x38b   : > { %v2841_v27 = vpop.permute.xlu1 %2840  ;;  %v3661_v33 = vld [vmem:[#allocation2 + $0x2b8] sm:$0xff] }
 0x38c   : > { %v3436_v62 = vpop.permute.xlu0 %3435  ;;  %2906 = vst.msk [vmem:[#allocation2 + $0x2d0] sm:$0xff] %vm853_vm4, %v2841_v27 }
 0x38d   : > { %3502 = vst.msk [vmem:[#allocation2 + $0x2c0] sm:$0xff] %vm984_vm5, %v3436_v62 }
 0x38f   : > { %v2971_v12 = vpop.permute.xlu1 %2970 }
 0x390   : > { %v3174_v3 = vpop.permute.xlu0 %3173  ;;  %3036 = vst.msk [vmem:[#allocation2 + $0x2d0] sm:$0xff] %vm984_vm5, %v2971_v12 }
 0x391   : > { %3239 = vst.msk [vmem:[#allocation2 + $0x2d8] sm:$0xff] %vm643_vm3, %v3174_v3  ;;  %v3930_v63 = vpop.f32.mrb[54].mxu1 }
 0x392   : > { %v3931_v32 = vadd.f32 %v8128_v48, %v3930_v63  ;;  %v3932_v28 = vpop.f32.mrb[55].mxu1 }
 0x393   : > { %v2635_v61 = vpop.permute.xlu1 %2634 }
 0x394   : > { %v3304_v4 = vpop.permute.xlu0 %3303  ;;  %v3662_v57 = vld [vmem:[#allocation2 + $0x2c0] sm:$0xff]  ;;  %v8313_v30 = vadd.f32 %v8161_v10, %v3931_v32  ;;  %2699 = vst.msk [vmem:[#allocation2 + $0x2e8] sm:$0xff] %vm643_vm3, %v2635_v61 }
 0x395   : > { %3369 = vst.msk [vmem:[#allocation2 + $0x2d8] sm:$0xff] %vm853_vm4, %v3304_v4  ;;  %4018 = vmatprep.mubr.f32.mxu1 %v3662_v57 }
 0x396   : > { %4019 = vmatmul.mubr.f32.gmra.mrb[90].mxu1 %v3661_v33  ;;  %v3639_v33 = vld [vmem:[#allocation2 + $0x208] sm:$0xff] }
 0x397   : > { %v2843_v31 = vpop.permute.xlu1 %2842  ;;  %v3664_v3 = vld [vmem:[#allocation2 + $0x2d0] sm:$0xff] }
 0x398   : > { %v3438_v34 = vpop.permute.xlu0 %3437  ;;  %2907 = vst.msk [vmem:[#allocation2 + $0x2e8] sm:$0xff] %vm853_vm4, %v2843_v31  ;;  %v3645_v31 = vld [vmem:[#allocation2 + $0x238] sm:$0xff] }
 0x399   : > { %3503 = vst.msk [vmem:[#allocation2 + $0x2d8] sm:$0xff] %vm984_vm5, %v3438_v34  ;;  %v3642_v34 = vld [vmem:[#allocation2 + $0x220] sm:$0xff] }
 0x39b   : > { %v2973_v60 = vpop.permute.xlu1 %2972 }
 0x39c   : > { %v3176_v37 = vpop.permute.xlu0 %3175  ;;  %3037 = vst.msk [vmem:[#allocation2 + $0x2e8] sm:$0xff] %vm984_vm5, %v2973_v60  ;;  %v3648_v60 = vld [vmem:[#allocation2 + $0x250] sm:$0xff] }
 0x39d   : > { %3240 = vst.msk [vmem:[#allocation2 + $0x2f0] sm:$0xff] %vm643_vm3, %v3176_v37  ;;  %v3935_v10 = vpop.f32.mrb[56].mxu1 }
 0x39e   : > { %v3936_v52 = vadd.f32 %v8128_v48, %v3935_v10  ;;  %v3937_v55 = vpop.f32.mrb[57].mxu1 }
 0x39f   : > { %v3651_v55 = vld [vmem:[#allocation2 + $0x268] sm:$0xff] }
 0x3a0   : > { %v3306_v38 = vpop.permute.xlu0 %3305  ;;  %v3665_v62 = vld [vmem:[#allocation2 + $0x2d8] sm:$0xff]  ;;  %v8323_v27 = vadd.f32 %v8210_v56, %v3936_v52  ;;  %v3636_v56 = vld [vmem:[#allocation2 + $0x1f0] sm:$0xff] }
 0x3a1   : > { %3370 = vst.msk [vmem:[#allocation2 + $0x2f0] sm:$0xff] %vm853_vm4, %v3306_v38  ;;  %4023 = vmatprep.mubr.f32.mxu1 %v3665_v62  ;;  %v3654_v38 = vld [vmem:[#allocation2 + $0x280] sm:$0xff]  ;;  %v3657_v62 = vld [vmem:[#allocation2 + $0x298] sm:$0xff] }
 0x3a2   : > { %4024 = vmatmul.mubr.f32.gmra.mrb[92].mxu1 %v3664_v3  ;;  %v3660_v3 = vld [vmem:[#allocation2 + $0x2b0] sm:$0xff] }
 0x3a3   : > { %v3667_v57 = vld [vmem:[#allocation2 + $0x2e8] sm:$0xff] }
 0x3a4   : > { %v3440_v12 = vpop.permute.xlu0 %3439 }
 0x3a5   : > { %3504 = vst.msk [vmem:[#allocation2 + $0x2f0] sm:$0xff] %vm984_vm5, %v3440_v12  ;;  %v3666_v12 = vld [vmem:[#allocation2 + $0x2e0] sm:$0xff] }
 0x3a9   : > { %v3940_v63 = vpop.f32.mrb[58].mxu1 }
 0x3aa   : > { %v3941_v32 = vadd.f32 %v8128_v48, %v3940_v63  ;;  %v3942_v28 = vpop.f32.mrb[59].mxu1  ;;  %v3663_v63 = vld [vmem:[#allocation2 + $0x2c8] sm:$0xff] }
 0x3ac   : > { %v3668_v4 = vld [vmem:[#allocation2 + $0x2f0] sm:$0xff]  ;;  %v8329_v61 = vadd.f32 %v8204_v17, %v3941_v32 }
 0x3ad   : > { %4028 = vmatprep.mubr.f32.mxu1 %v3668_v4  ;;  %v3669_v4 = vld [vmem:[#allocation2 + $0x2f8] sm:$0xff] }
 0x3ae   : > { %4029 = vmatmul.mubr.f32.gmra.mrb[94].mxu1 %v3667_v57 }
 0x3af   : > { %4921 = vmatprep.mubr.msk.f32.mxu1 %vm385_vm2, %v3636_v56 }
 0x3b2   : > { %4922 = vmatmul.mubr.msk.f32.vlgmr.msra.gmra.mrb[96].mxu1 %vm385_vm2, %v3639_v33 }
 0x3b3   : > { %4924 = vmatprep.mubr.msk.f32.mxu1 %vm385_vm2, %v3642_v34 }
 0x3b5   : > { %v3945_v37 = vpop.f32.mrb[60].mxu1 }
 0x3b6   : > { %4925 = vmatmul.mubr.msk.f32.gmra.mrb[98].mxu1 %vm385_vm2, %v3645_v31  ;;  %v3946_v17 = vadd.f32 %v8128_v48, %v3945_v37  ;;  %v3947_v10 = vpop.f32.mrb[61].mxu1 }
 0x3b7   : > { %4927 = vmatprep.mubr.msk.f32.mxu1 %vm385_vm2, %v3648_v60 }
 0x3b8   : > { %v8338_v52 = vadd.f32 %v8237_v24, %v3946_v17 }
 0x3ba   : > { %4928 = vmatmul.mubr.msk.f32.gmra.mrb[100].mxu1 %vm385_vm2, %v3651_v55 }
 0x3bb   : > { %4930 = vmatprep.mubr.msk.f32.mxu1 %vm385_vm2, %v3654_v38 }
 0x3be   : > { %4931 = vmatmul.mubr.msk.f32.gmra.mrb[102].mxu1 %vm385_vm2, %v3657_v62 }
 0x3bf   : > { %4933 = vmatprep.mubr.msk.f32.mxu1 %vm385_vm2, %v3660_v3 }
 0x3c1   : > { %v3950_v32 = vpop.f32.mrb[62].mxu1 }
 0x3c2   : > { %4934 = vmatmul.mubr.msk.f32.gmra.mrb[104].mxu1 %vm385_vm2, %v3663_v63  ;;  %v3951_v24 = vadd.f32 %v8128_v48, %v3950_v32  ;;  %v3952_v28 = vpop.f32.mrb[63].mxu1 }
 0x3c3   : > { %4936 = vmatprep.mubr.msk.f32.mxu1 %vm385_vm2, %v3666_v12 }
 0x3c4   : > { %v8348_v57 = vadd.f32 %v8235_v16, %v3951_v24 }
 0x3c6   : > { %4937 = vmatmul.mubr.msk.f32.gmra.mrb[106].mxu1 %vm385_vm2, %v3669_v4 }
 0x3cd   : > { %v3955_v56 = vpop.f32.mrb[64].mxu1 }
 0x3ce   : > { %v3956_v33 = vadd.f32 %v8128_v48, %v3955_v56  ;;  %v3957_v34 = vpop.f32.mrb[65].mxu1 }
 0x3d0   : > { %v8353_v31 = vadd.f32 %v8261_v47, %v3956_v33  ;;  %v4331_v33 = vld [vmem:[%s8718_s5 + $0x8] sm:$0xff] }
 0x3d9   : > { %v3960_v37 = vpop.f32.mrb[66].mxu1 }
 0x3da   : > { %v3961_v60 = vadd.f32 %v8128_v48, %v3960_v37  ;;  %v3962_v17 = vpop.f32.mrb[67].mxu1 }
 0x3db   : > { %v4333_v17 = vld [vmem:[%s8718_s5 + $0x18] sm:$0xff] }
 0x3dc   : > { %v8357_v10 = vadd.f32 %v8259_v26, %v3961_v60  ;;  %v4332_v60 = vld [vmem:[%s8718_s5 + $0x10] sm:$0xff] }
 0x3e5   : > { %v3965_v55 = vpop.f32.mrb[68].mxu1 }
 0x3e6   : > { %v3966_v16 = vadd.f32 %v8128_v48, %v3965_v55  ;;  %v3967_v38 = vpop.f32.mrb[69].mxu1  ;;  %v5071_v55 = vpack.c.bf16 %v4333_v17, %v4332_v60  ;;  %v4262_v60 = vsel %vm385_vm2, %v8200_v25, 0.0 }
 0x3e8   : > { %v8361_v62 = vadd.f32 %v8285_v15, %v3966_v16  ;;  %v4330_v15 = vld [vmem:[%s8718_s5] sm:$0xff] }
 0x3e9   : > { %v5068_v34 = vpack.c.bf16 %v4331_v33, %v4330_v15 }
 0x3eb   : > { %5069 = vmatpush3.bf16.msra.mxu1 %v5068_v34  ;;  %v4260_v34 = vsel %vm385_vm2, %v8178_v45, 0.0 }
 0x3ec   : > { %5070 = vmatprep.subr.bf16.mxu1 %v8767_v19 }
 0x3ef   : > { %5072 = vmatpush3.bf16.msra.mxu1 %v5071_v55  ;;  %v4264_v55 = vsel %vm385_vm2, %v8221_v53, 0.0 }
 0x3f1   : > { %v3970_v3 = vpop.f32.mrb[70].mxu1 }
 0x3f2   : > { %v3971_v12 = vadd.f32 %v8128_v48, %v3970_v3  ;;  %v3972_v63 = vpop.f32.mrb[71].mxu1  ;;  %v8772_v3 = vmov 0.0  }
 0x3f3   : > { %4947 = vmatprep.mubr.msk.f32.mxu1 %vm5203_vm7, %v8772_v3  ;;  %4950 = vmatprep.subr.mxu1 %v8772_v3 }
 0x3f4   : > { %v8365_v47 = vadd.f32 %v8283_v22, %v3971_v12 }
 0x3fd   : > { %v8367_v32 = vpop.f32.mrb[72].mxu1 }
 0x3fe   : > { %v3977_v24 = vpop.f32.mrb[73].mxu1 }
 0x409   : > { %v8369_v28 = vpop.f32.mrb[74].mxu1 }
 0x40a   : > { %v3982_v26 = vpop.f32.mrb[75].mxu1 }
 0x415   : > { %v8371_v4 = vpop.f32.mrb[76].mxu1 }
 0x416   : > { %v3987_v56 = vpop.f32.mrb[77].mxu1 }
 0x421   : > { %v8380_v22 = vpop.f32.mrb[78].mxu1 }
 0x422   : > { %v3992_v37 = vpop.f32.mrb[79].mxu1 }
 0x423   : > { %v4259_v37 = vsel %vm385_vm2, %v8151_v18, 0.0 }
 0x424   : > { %v4261_v17 = vadd.f32 %v4260_v34, %v4259_v37  ;;  %v4272_v34 = vsel %vm385_vm2, %v8269_v8, 0.0 }
 0x42d   : > { %v8388_v16 = vpop.f32.mrb[80].mxu1 }
 0x42e   : > { %v3997_v38 = vpop.f32.mrb[81].mxu1 }
 0x42f   : > { %v4263_v38 = vadd.f32 %v4262_v60, %v4261_v17  ;;  %v4274_v60 = vsel %vm385_vm2, %v8279_v42, 0.0 }
 0x439   : > { %v8393_v19 = vpop.f32.mrb[82].mxu1 }
 0x43a   : > { %v4002_v12 = vpop.f32.mrb[83].mxu1 }
 0x43b   : > { %v4266_v12 = vsel %vm385_vm2, %v8231_v50, 0.0 }
 0x445   : > { %v8395_v63 = vpop.f32.mrb[84].mxu1 }
 0x446   : > { %v4007_v24 = vpop.f32.mrb[85].mxu1 }
 0x447   : > { %v4265_v24 = vadd.f32 %v4264_v55, %v4263_v38  ;;  %v4276_v55 = vsel %vm385_vm2, %v8293_v44, 0.0 }
 0x449   : > { %v4267_v20 = vadd.f32 %v4266_v12, %v4265_v24  ;;  %v4278_v12 = vsel %vm385_vm2, %v8303_v13, 0.0  ;;  %v4280_v24 = vsel %vm385_vm2, %v8313_v30, 0.0 }
 0x451   : > { %v8397_v26 = vpop.f32.mrb[86].mxu1 }
 0x452   : > { %v4012_v56 = vpop.f32.mrb[87].mxu1 }
 0x453   : > { %v4268_v56 = vsel %vm385_vm2, %v8245_v11, 0.0 }
 0x454   : > { %v4269_v39 = vadd.f32 %v4268_v56, %v4267_v20 }
 0x456   : > { %v4271_v37 = vadd.f32 %v4270_v54, %v4269_v39  ;;  %v4282_v39 = vsel %vm385_vm2, %v8323_v27, 0.0 }
 0x458   : > { %v4273_v17 = vadd.f32 %v4272_v34, %v4271_v37  ;;  %v4284_v34 = vsel %vm385_vm2, %v8329_v61, 0.0 }
 0x45a   : > { %v4275_v38 = vadd.f32 %v4274_v60, %v4273_v17  ;;  %v4286_v60 = vsel %vm385_vm2, %v8338_v52, 0.0 }
 0x45d   : > { %v8399_v15 = vpop.f32.mrb[88].mxu1 }
 0x45e   : > { %v4017_v33 = vpop.f32.mrb[89].mxu1 }
 0x469   : > { %v8413_v33 = vpop.f32.mrb[90].mxu1 }
 0x46a   : > { %v4022_v0 = vpop.f32.mrb[91].mxu1 }
 0x46b   : > { %v4277_v0 = vadd.f32 %v4276_v55, %v4275_v38  ;;  %v4288_v55 = vsel %vm385_vm2, %v8348_v57, 0.0 }
 0x46d   : > { %v4279_v56 = vadd.f32 %v4278_v12, %v4277_v0  ;;  %v4290_v12 = vsel %vm385_vm2, %v8353_v31, 0.0  ;;  %v4292_v0 = vsel %vm385_vm2, %v8357_v10, 0.0 }
 0x46f   : > { %v4281_v54 = vadd.f32 %v4280_v24, %v4279_v56 }
 0x471   : > { %v4283_v37 = vadd.f32 %v4282_v39, %v4281_v54  ;;  %v4294_v39 = vsel %vm385_vm2, %v8361_v62, 0.0 }
 0x473   : > { %v4285_v17 = vadd.f32 %v4284_v34, %v4283_v37  ;;  %v3981_v34 = vadd.f32 %v8128_v48, %v8369_v28  ;;  %v4296_v37 = vsel %vm385_vm2, %v8365_v47, 0.0  ;;  %v3986_v28 = vadd.f32 %v8128_v48, %v8371_v4 }
 0x474   : > { %v3996_v4 = vadd.f32 %v8128_v48, %v8388_v16  ;;  %v4006_v16 = vadd.f32 %v8128_v48, %v8395_v63  ;;  %v4016_v63 = vadd.f32 %v8128_v48, %v8399_v15 }
 0x475   : > { %v8427_v20 = vpop.f32.mrb[92].mxu1  ;;  %v4287_v38 = vadd.f32 %v4286_v60, %v4285_v17  ;;  %v3976_v60 = vadd.f32 %v8128_v48, %v8367_v32 }
 0x476   : > { %v4027_v14 = vpop.f32.mrb[93].mxu1 }
 0x477   : > { %v4289_v14 = vadd.f32 %v4288_v55, %v4287_v38 }
 0x479   : > { %v4291_v56 = vadd.f32 %v4290_v12, %v4289_v14 }
 0x47b   : > { %v4293_v54 = vadd.f32 %v4292_v0, %v4291_v56 }
 0x47d   : > { %v4295_v55 = vadd.f32 %v4294_v39, %v4293_v54 }
 0x47f   : > { %v4297_v14 = vadd.f32 %v4296_v37, %v4295_v55 }
 0x481   : > { %v4030_v24 = vpop.f32.mrb[94].mxu1 }
 0x482   : > { %v4032_v43 = vpop.f32.mrb[95].mxu1 }
 0x483   : > { %v3991_v43 = vadd.f32 %v8128_v48, %v8380_v22  ;;  %v4001_v22 = vadd.f32 %v8128_v48, %v8393_v19  ;;  %v4011_v19 = vadd.f32 %v8128_v48, %v8397_v26  ;;  %v4021_v26 = vadd.f32 %v8128_v48, %v8413_v33 }
 0x485   : > { %v4923_v17 = vpop.f32.mrb[96].mxu1 }
 0x486   : > { %v8449_v38 = vadd.f32 %v4923_v17, %v3981_v34  ;;  %v4200_v40 = vpop.f32.mrb[97].mxu1 }
 0x487   : > { %v8451_v12 = vadd.f32 %v4200_v40, %v3976_v60 }
 0x488   : > { %v4300_v54 = vsel %vm385_vm2, %v8449_v38, 0.0 }
 0x489   : > { %v4298_v0 = vsel %vm385_vm2, %v8451_v12, 0.0  ;;  %v4926_v56 = vpop.f32.mrb[98].mxu1 }
 0x48a   : > { %v4299_v23 = vadd.f32 %v4298_v0, %v4297_v14  ;;  %v8459_v32 = vadd.f32 %v4926_v56, %v3991_v43  ;;  %v4210_v39 = vpop.f32.mrb[99].mxu1 }
 0x48b   : > { %v8463_v40 = vadd.f32 %v4210_v39, %v3986_v28 }
 0x48c   : > { %v4301_v34 = vadd.f32 %v4300_v54, %v4299_v23  ;;  %v4304_v14 = vsel %vm385_vm2, %v8459_v32, 0.0 }
 0x48d   : > { %v4302_v37 = vsel %vm385_vm2, %v8463_v40, 0.0  ;;  %v4929_v60 = vpop.f32.mrb[100].mxu1 }
 0x48e   : > { %v4303_v17 = vadd.f32 %v4302_v37, %v4301_v34  ;;  %v8471_v55 = vadd.f32 %v4929_v60, %v4001_v22  ;;  %v4220_v43 = vpop.f32.mrb[101].mxu1 }
 0x48f   : > { %v8475_v28 = vadd.f32 %v4220_v43, %v3996_v4 }
 0x490   : > { %v4305_v23 = vadd.f32 %v4304_v14, %v4303_v17  ;;  %v4308_v34 = vsel %vm385_vm2, %v8471_v55, 0.0 }
 0x491   : > { %v4306_v0 = vsel %vm385_vm2, %v8475_v28, 0.0  ;;  %v4932_v56 = vpop.f32.mrb[102].mxu1 }
 0x492   : > { %v4307_v39 = vadd.f32 %v4306_v0, %v4305_v23  ;;  %v8483_v54 = vadd.f32 %v4932_v56, %v4011_v19  ;;  %v4230_v22 = vpop.f32.mrb[103].mxu1  ;;  %v4031_v0 = vadd.f32 %v8128_v48, %v4030_v24  ;;  %v4026_v56 = vadd.f32 %v8128_v48, %v8427_v20 }
 0x493   : > { %v8487_v4 = vadd.f32 %v4230_v22, %v4006_v16 }
 0x494   : > { %v4309_v37 = vadd.f32 %v4308_v34, %v4307_v39  ;;  %v4312_v23 = vsel %vm385_vm2, %v8483_v54, 0.0 }
 0x495   : > { %v4310_v60 = vsel %vm385_vm2, %v8487_v4, 0.0  ;;  %v4935_v17 = vpop.f32.mrb[104].mxu1 }
 0x496   : > { %v4311_v43 = vadd.f32 %v4310_v60, %v4309_v37  ;;  %v8495_v14 = vadd.f32 %v4935_v17, %v4021_v26  ;;  %v4240_v19 = vpop.f32.mrb[105].mxu1 }
 0x497   : > { %v8499_v16 = vadd.f32 %v4240_v19, %v4016_v63 }
 0x498   : > { %v4313_v33 = vadd.f32 %v4312_v23, %v4311_v43  ;;  %v4316_v37 = vsel %vm385_vm2, %v8495_v14, 0.0 }
 0x499   : > { %v4314_v15 = vsel %vm385_vm2, %v8499_v16, 0.0  ;;  %v4938_v39 = vpop.f32.mrb[106].mxu1 }
 0x49a   : > { %v4315_v22 = vadd.f32 %v4314_v15, %v4313_v33  ;;  %v8506_v34 = vadd.f32 %v4938_v39, %v4031_v0  ;;  %v4250_v26 = vpop.f32.mrb[107].mxu1 }
 0x49b   : > { %v8510_v60 = vadd.f32 %v4250_v26, %v4026_v56  ;;  %v4409_v56 = vld [vmem:[%s8720_s7] sm:$0xff] }
 0x49c   : > { %v4317_v63 = vadd.f32 %v4316_v37, %v4315_v22  ;;  %v4320_v48 = vsel %vm385_vm2, %v8506_v34, 0.0  ;;  %v4334_v22 = vld [vmem:[%s8719_s6] sm:$0x1] }
 0x49d   : > { %v4318_v24 = vsel %vm385_vm2, %v8510_v60, 0.0 }
 0x49e   : > { %v4319_v17 = vadd.f32 %v4318_v24, %v4317_v63 }
 0x4a0   : > { %v4321_v20 = vadd.f32 %v4320_v48, %v4319_v17  ;;  %v4410_v17 = vld [vmem:[%s8721_s8] sm:$0x1] }
 0x4a2   : > { %v4322_v43 = vrot.slane %v4321_v20, 4 }
 0x4a4   : > { %v4323_v19 = vadd.f32 %v4322_v43, %v4321_v20 }
 0x4a6   : > { %v4324_v23 = vrot.slane %v4323_v19, 2 }
 0x4a8   : > { %v4325_v0 = vadd.f32 %v4324_v23, %v4323_v19 }
 0x4aa   : > { %v4326_v33 = vrot.slane %v4325_v0, 1 }
 0x4ac   : > { %v4327_v15 = vadd.f32 %v4326_v33, %v4325_v0  ;;  %v4491_v0 = vlaneseq }
 0x4ae   : > { %v4329_v39 = vmul.f32 0.00390625, %v4327_v15  ;;  %v4492_v33 = vshrl.u32 %v4491_v0, 7  ;;  %v8779_v0 = vld [vmem:[#allocation13_spill] sm:$0xff] }
 0x4b0   : > { %4948 = vmatmul.mubr.msk.f32.vlgmr.msra.gmra.mrb[108].mxu1 %vm385_vm2, %v4329_v39  ;;  %v4493_v15 = vsub.s32 0, %v4492_v33 }
 0x4b1   : > { %4952 = vmatprep.mubr.msk.f32.mxu1 %vm5203_vm7, %v8772_v3  ;;  %4951 = vmatpush3.msra.mxu1 %v4409_v56 }
 0x583   : > { %v4404_v26 = vpop.f32.mrb[108].mxu1 }
 0x584   : > { %v4405_v37 = vadd.f32 %v4404_v26, %v4334_v22  ;;  %v4949_v63 = vpop.f32.mrb[109].mxu1 }
 0x586   : > { %v4408_v24 = vmax.f32 %v4405_v37, 0.0 }
 0x588   : > { %4953 = vmatmul.mubr.msk.f32.vlgmr.msra.gmra.mrb[110].mxu1 %vm4411_vm8, %v4408_v24 }
 0x65b   : > { %v4481_v3 = vpop.f32.mrb[110].mxu1 }
 0x65c   : > { %v4482_v48 = vadd.f32 %v4481_v3, %v4410_v17  ;;  %v4954_v20 = vpop.f32.mrb[111].mxu1 }
 0x65e   : > { %v4741_v43 = vmul.f32 -1.442695, %v4482_v48 }
 0x660   : > { %5125 = vpow2.f32 %v4741_v43 }
 0x66a   : > { %v5126_v19 = vpop.eup %5125 }
 0x66b   : > { %v4488_v23 = vadd.f32 1.0, %v5126_v19 }
 0x66d   : > { %5127 = vrcp.f32 %v4488_v23 }
 0x677   : > { %v5128_v39 = vpop.eup %5127 }
 0x678   : > { %v4494_v56 = vrot.slane %v5128_v39, %v4493_v15  ;;  %v8780_v15 = vld [vmem:[#allocation14_spill] sm:$0xff] }
 0x67a   : > { %v4495_v22 = vmul.f32 %v4494_v56, %v8151_v18  ;;  %v4496_v26 = vmul.f32 %v4494_v56, %v8178_v45  ;;  %v4497_v37 = vmul.f32 %v4494_v56, %v8200_v25  ;;  %v4498_v63 = vmul.f32 %v4494_v56, %v8221_v53 }
 0x67b   : > { %v4499_v24 = vmul.f32 %v4494_v56, %v8231_v50  ;;  %v4500_v17 = vmul.f32 %v4494_v56, %v8245_v11  ;;  %v4501_v3 = vmul.f32 %v4494_v56, %v8255_v58  ;;  %v4502_v48 = vmul.f32 %v4494_v56, %v8269_v8 }
 0x67c   : > { %v4503_v20 = vmul.f32 %v4494_v56, %v8279_v42  ;;  %v4504_v18 = vmul.f32 %v4494_v56, %v8293_v44  ;;  %v4505_v45 = vmul.f32 %v4494_v56, %v8303_v13  ;;  %v4506_v43 = vmul.f32 %v4494_v56, %v8313_v30 }
 0x67d   : > { %v4507_v25 = vmul.f32 %v4494_v56, %v8323_v27  ;;  %v4508_v53 = vmul.f32 %v4494_v56, %v8329_v61  ;;  %v4509_v50 = vmul.f32 %v4494_v56, %v8338_v52  ;;  %v4510_v11 = vmul.f32 %v4494_v56, %v8348_v57 }
 0x67e   : > { %v4511_v58 = vmul.f32 %v4494_v56, %v8353_v31  ;;  %v4512_v8 = vmul.f32 %v4494_v56, %v8357_v10  ;;  %v4513_v42 = vmul.f32 %v4494_v56, %v8361_v62  ;;  %v4514_v44 = vmul.f32 %v4494_v56, %v8365_v47 }
 0x67f   : > { %v4515_v13 = vmul.f32 %v4494_v56, %v8451_v12  ;;  %v4516_v30 = vmul.f32 %v4494_v56, %v8449_v38  ;;  %v4517_v27 = vmul.f32 %v4494_v56, %v8463_v40  ;;  %v4518_v61 = vmul.f32 %v4494_v56, %v8459_v32 }
 0x680   : > { %v4519_v52 = vmul.f32 %v4494_v56, %v8475_v28  ;;  %v4520_v57 = vmul.f32 %v4494_v56, %v8471_v55  ;;  %v4521_v31 = vmul.f32 %v4494_v56, %v8487_v4  ;;  %v4522_v10 = vmul.f32 %v4494_v56, %v8483_v54 }
 0x681   : > { %v4523_v62 = vmul.f32 %v4494_v56, %v8499_v16  ;;  %v4524_v47 = vmul.f32 %v4494_v56, %v8495_v14  ;;  %v4525_v12 = vmul.f32 %v4494_v56, %v8510_v60  ;;  %v4526_v38 = vmul.f32 %v4494_v56, %v8506_v34  ;;  %v8781_v56 = vld [vmem:[#allocation15_spill] sm:$0xff] }
 0x682   : > { %v4527_v40 = vadd.f32 %v4495_v22, %v5484_v1  ;;  %v4528_v32 = vadd.f32 %v4496_v26, %v5504_v7  ;;  %v4529_v28 = vadd.f32 %v4497_v37, %v5430_v46  ;;  %v4530_v55 = vadd.f32 %v4498_v63, %v5469_v59  ;;  %v8773_v7 = vld [vmem:[#allocation7_spill] sm:$0xff]  ;;  %v8774_v46 = vld [vmem:[#allocation8_spill] sm:$0xff] }
 0x683   : > { %v4531_v4 = vadd.f32 %v4499_v24, %v5501_v6  ;;  %v4532_v54 = vadd.f32 %v4500_v17, %v5519_v21  ;;  %v4533_v16 = vadd.f32 %v4501_v3, %v5542_v29  ;;  %v4534_v14 = vadd.f32 %v4502_v48, %v5557_v35  ;;  %v8775_v6 = vld [vmem:[#allocation9_spill] sm:$0xff]  ;;  %v8776_v29 = vld [vmem:[#allocation10_spill] sm:$0xff]  ;;  %v8782_v17 = vld [vmem:[#allocation16_spill] sm:$0xff] }
 0x684   : > { %v4535_v60 = vadd.f32 %v4503_v20, %v5573_v41  ;;  %v4536_v34 = vadd.f32 %v4504_v18, %v5595_v49  ;;  %v4537_v1 = vadd.f32 %v4505_v45, %v5630_v9  ;;  %v4538_v19 = vadd.f32 %v4506_v43, %v8773_v7  ;;  %4559 = vst.msk [vmem:[%s8575_s23] sm:$0xff] %vm385_vm2, %v4527_v40  ;;  %v8777_v41 = vld [vmem:[#allocation11_spill] sm:$0xff]  ;;  %v8778_v9 = vld [vmem:[#allocation12_spill] sm:$0xff]  ;;  %v8783_v48 = vld [vmem:[#allocation17_spill] sm:$0xff] }
 0x685   : > { %4560 = vst.msk [vmem:[%s8575_s23 + $0x8] sm:$0xff] %vm385_vm2, %v4528_v32  ;;  %4561 = vst.msk [vmem:[%s8575_s23 + $0x10] sm:$0xff] %vm385_vm2, %v4529_v28  ;;  %v4539_v59 = vadd.f32 %v4507_v25, %v8774_v46  ;;  %v4540_v21 = vadd.f32 %v4508_v53, %v8775_v6  ;;  %v4541_v35 = vadd.f32 %v4509_v50, %v8776_v29  ;;  %v8785_v20 = vld [vmem:[#allocation19_spill] sm:$0xff]  ;;  %v8786_v18 = vld [vmem:[#allocation20_spill] sm:$0xff] }
 0x686   : > { %4562 = vst.msk [vmem:[%s8575_s23 + $0x18] sm:$0xff] %vm385_vm2, %v4530_v55  ;;  %v4542_v49 = vadd.f32 %v4510_v11, %v8777_v41  ;;  %4563 = vst.msk [vmem:[%s8575_s23 + $0x20] sm:$0xff] %vm385_vm2, %v4531_v4  ;;  %v4543_v23 = vadd.f32 %v4511_v58, %v8778_v9  ;;  %v4544_v33 = vadd.f32 %v4512_v8, %v8779_v0  ;;  %v8787_v43 = vld [vmem:[#allocation21_spill] sm:$0xff]  ;;  %v8788_v53 = vld [vmem:[#allocation22_spill] sm:$0xff] }
 0x687   : > { %4564 = vst.msk [vmem:[%s8575_s23 + $0x28] sm:$0xff] %vm385_vm2, %v4532_v54  ;;  %4565 = vst.msk [vmem:[%s8575_s23 + $0x30] sm:$0xff] %vm385_vm2, %v4533_v16  ;;  %v4545_v39 = vadd.f32 %v4513_v42, %v8780_v15  ;;  %v4546_v22 = vadd.f32 %v4514_v44, %v8781_v56  ;;  %v4547_v26 = vadd.f32 %v4515_v13, %v5948_v51  ;;  %v8789_v11 = vld [vmem:[#allocation23_spill] sm:$0xff] }
 0x688   : > { %4566 = vst.msk [vmem:[%s8575_s23 + $0x38] sm:$0xff] %vm385_vm2, %v4534_v14  ;;  %4567 = vst.msk [vmem:[%s8575_s23 + $0x40] sm:$0xff] %vm385_vm2, %v4535_v60  ;;  %v4548_v37 = vadd.f32 %v4516_v30, %v5973_v5  ;;  %v4549_v63 = vadd.f32 %v4517_v27, %v6012_v2  ;;  %v4550_v24 = vadd.f32 %v4518_v61, %v6044_v36  ;;  %v8784_v5 = vld [vmem:[#allocation18_spill] sm:$0xff] }
 0x689   : > { %4568 = vst.msk [vmem:[%s8575_s23 + $0x48] sm:$0xff] %vm385_vm2, %v4536_v34  ;;  %4569 = vst.msk [vmem:[%s8575_s23 + $0x50] sm:$0xff] %vm385_vm2, %v4537_v1  ;;  %v4551_v3 = vadd.f32 %v4519_v52, %v8782_v17  ;;  %v4552_v51 = vadd.f32 %v4520_v57, %v8783_v48  ;;  %v4553_v2 = vadd.f32 %v4521_v31, %v8784_v5 }
 0x68a   : > { %4570 = vst.msk [vmem:[%s8575_s23 + $0x58] sm:$0xff] %vm385_vm2, %v4538_v19  ;;  %4571 = vst.msk [vmem:[%s8575_s23 + $0x60] sm:$0xff] %vm385_vm2, %v4539_v59  ;;  %v4554_v36 = vadd.f32 %v4522_v10, %v8785_v20  ;;  %v4555_v45 = vadd.f32 %v4523_v62, %v8786_v18  ;;  %v4556_v25 = vadd.f32 %v4524_v47, %v8787_v43 }
 0x68b   : > { %4572 = vst.msk [vmem:[%s8575_s23 + $0x68] sm:$0xff] %vm385_vm2, %v4540_v21  ;;  %4573 = vst.msk [vmem:[%s8575_s23 + $0x70] sm:$0xff] %vm385_vm2, %v4541_v35  ;;  %v4557_v50 = vadd.f32 %v4525_v12, %v8788_v53  ;;  %v4558_v58 = vadd.f32 %v4526_v38, %v8789_v11 }
 0x68c   : > { %4574 = vst.msk [vmem:[%s8575_s23 + $0x78] sm:$0xff] %vm385_vm2, %v4542_v49  ;;  %4575 = vst.msk [vmem:[%s8575_s23 + $0x80] sm:$0xff] %vm385_vm2, %v4543_v23 }
 0x68d   : > { %4576 = vst.msk [vmem:[%s8575_s23 + $0x88] sm:$0xff] %vm385_vm2, %v4544_v33  ;;  %4577 = vst.msk [vmem:[%s8575_s23 + $0x90] sm:$0xff] %vm385_vm2, %v4545_v39 }
 0x68e   : > { %4578 = vst.msk [vmem:[%s8575_s23 + $0x98] sm:$0xff] %vm385_vm2, %v4546_v22  ;;  %4579 = vst.msk [vmem:[%s8575_s23 + $0xa0] sm:$0xff] %vm385_vm2, %v4547_v26 }
 0x68f   : > { %4580 = vst.msk [vmem:[%s8575_s23 + $0xa8] sm:$0xff] %vm385_vm2, %v4548_v37  ;;  %4581 = vst.msk [vmem:[%s8575_s23 + $0xb0] sm:$0xff] %vm385_vm2, %v4549_v63 }
 0x690   : > { %4582 = vst.msk [vmem:[%s8575_s23 + $0xb8] sm:$0xff] %vm385_vm2, %v4550_v24  ;;  %4583 = vst.msk [vmem:[%s8575_s23 + $0xc0] sm:$0xff] %vm385_vm2, %v4551_v3 }
 0x691   : > { %4584 = vst.msk [vmem:[%s8575_s23 + $0xc8] sm:$0xff] %vm385_vm2, %v4552_v51  ;;  %4585 = vst.msk [vmem:[%s8575_s23 + $0xd0] sm:$0xff] %vm385_vm2, %v4553_v2 }
 0x692   : > { %4586 = vst.msk [vmem:[%s8575_s23 + $0xd8] sm:$0xff] %vm385_vm2, %v4554_v36  ;;  %4587 = vst.msk [vmem:[%s8575_s23 + $0xe0] sm:$0xff] %vm385_vm2, %v4555_v45 }
 0x693   : > { %4588 = vst.msk [vmem:[%s8575_s23 + $0xe8] sm:$0xff] %vm385_vm2, %v4556_v25  ;;  %4589 = vst.msk [vmem:[%s8575_s23 + $0xf0] sm:$0xff] %vm385_vm2, %v4557_v50 }
 0x694   : > { %4590 = vst.msk [vmem:[%s8575_s23 + $0xf8] sm:$0xff] %vm385_vm2, %v4558_v58 }
 0x695   : > { %5147 = shalt.err (!%p5144_p3)
}
 0x696   : > { %s5148_s29 = scalar_lea.hbm %s8638_s27, 4096  ;;  %s5152_s25 = scalar_lea.hbm %s8722_s9, 8192 }
 0x697   : > { %p5149_p4 = scmp.ne.s32.totalorder %s8638_s27, %s5148_s29  ;;  %p5153_p9 = scmp.lt.u32.totalorder %s8638_s27, %s8722_s9 }
 0x698   : > { %p5154_p10 = scmp.lt.u32.totalorder %s5152_s25, %s5148_s29  ;;  %p5156_p12 = scmp.lt.u32.totalorder %s5148_s29, %s8638_s27 }
 0x699   : > { %p5150_p7 = pnand %p5149_p4, %p5295_p5 }
 0x69a   : > { %p5155_p11 = por %p5154_p10, %p5153_p9 }
 0x69b   : > { %p5151_p8 = pneg %p5150_p7 }
 0x69c   : > { %p5157_p13 = por %p5156_p12, %p5155_p11 }
 0x69e   : > { %p5158_p0 = pnand %p5157_p13, %p5151_p8 }
 0x6a0   : > { %5161 = shalt.err (!%p5158_p0)
}
 0x6a1   : > { %s5205_s21 = smov 128   ;;  %s5206_s22 = smov 8  }
 0x6a2   : > { %5078 = dma.vmem_to_hbm [thread:$0]  (%p5295_p5), %s8640_s14, 4096, %s8638_s27, %s8672_s17, %s5205_s21, %s5205_s21, %s5206_s22  }
 0x6a3 PF: > { %p5084_p1 = scmp.ge.s32.totalorder %s5196_s12, 2  ;;  %s4620_s24 = sand.u32 1, %s5184_s30  }
 0x6a4   : > { %s4621_s28 = scalar_lea.sflag [#allocation5], %s4620_s24 }
 0x6a5   : > { %p5081_p2 = pnand %p5084_p1, %p5299_p6 }
 0x6a7   : > { %5179 = dma.done.wait (!%p5081_p2), %s4621_s28, 4096  }
 0x6a8   : > { %5181 = vsyncadd (!%p5081_p2), %s4621_s28, 4294963200  ;;  %p19_p3 = scmp.ge.s32.totalorder %s5282_s15, 4   ;;  %s8790_s30 = smov %s5188_s10 }
 0x6a9   : > { %s8791_s10 = smov %s5192_s11  ;;  %s8792_s11 = smov %s5293_s18 }
 0x6aa   : > { %s8793_s12 = smov %s5282_s15  ;;  %21 = sbr.rel (!%p19_p3) target bundleno = 3 (0x3), region = 92 }
 0x6b1   :  { %4626 = vsyncpa [#allocation5], 1 }
 0x6b2   :  { %4628 = vsyncpa [#allocation5 + $0x1], 1 }

</bundles_post_ra>
